<compile_context>
chip_gen: v7x
topology: tpu7x:2x2x1
jax: 0.10.0
libtpu: 0.0.40
codegen_flags: <defaults>
</compile_context>

<pallas_src>
import jax
import jax.numpy as jnp
import numpy as np
from jax import lax
from jax.experimental import pallas as pl
from jax.experimental.pallas import tpu as pltpu

EPS = 1e-5          # nn.BatchNorm2d default eps
_LANE = 128


def _round_up(n, m):
    return ((n + m - 1) // m) * m


def _row_tile(n):
    """Largest sublane-aligned (multiple-of-8) row tile <= 1024 dividing n exactly."""
    for t in range(min(n, 1024), 7, -8):
        if n % t == 0:
            return t
    return min(n, 8)


def _vmem_limit_bytes():
    """Generation-aware VMEM cap: 3/4 of physical VMEM (48 MiB v7x, 96 MiB v5e/v6e)."""
    cap = 64 * 1024 * 1024
    try:
        cap = int(getattr(pltpu.get_tpu_info(), "vmem_capacity_bytes", cap))
    except Exception:
        pass
    return min((cap * 3) // 4, 100 * 1024 * 1024)


def _compiler_params(num_grid_axes):
    # All grid axes are embarrassingly parallel (per-block partial BN stats, no
    # cross-block accumulator), so v7x's two TensorCores can both be used.
    return pltpu.CompilerParams(
        dimension_semantics=("parallel",) * num_grid_axes,
        vmem_limit_bytes=_vmem_limit_bytes(),
    )


# --------------------------------------------------------------------------- kernels


def _conv1_kernel(x_ref, w_ref, h_ref, s_ref, ss_ref):
    """1x1 conv (row matmul, bf16 MXU operands) + per-block partial BN1 statistics."""
    h = jnp.dot(x_ref[...], w_ref[...], preferred_element_type=jnp.float32)
    h_ref[...] = h.astype(h_ref.dtype)            # bf16 HBM intermediate (half the bytes)
    tm, c = h.shape
    hb = h.reshape(tm // 8, 8, c)                 # stats from the un-rounded f32 result
    s_ref[...] = jnp.sum(hb, axis=0)
    ss_ref[...] = jnp.sum(hb * hb, axis=0)


def _conv2_kernel(h1_ref, sc_ref, sh_ref, w_ref, h2_ref, s_ref, ss_ref, pad_ref):
    """BN1-apply + ReLU + 3x3 conv (aligned halo scratch, 3 accumulating K=3C matmuls)
    + per-block partial BN2 statistics."""
    H, W, C = h1_ref.shape
    # Zero only the 1-pixel halo border every step (the interior is fully rewritten
    # below).  Per-step border zeroing -- not a program_id==0-gated init -- stays
    # correct when the "parallel" grid axis is split across TensorCores, since each
    # core owns a private scratch.
    zrow = jnp.zeros((1, W + 2, C), jnp.bfloat16)
    zcol = jnp.zeros((H + 2, 1, C), jnp.bfloat16)
    pad_ref[0:1, :, :] = zrow
    pad_ref[H + 1:H + 2, :, :] = zrow
    pad_ref[:, 0:1, :] = zcol
    pad_ref[:, W + 1:W + 2, :] = zcol
    # BN1-apply + ReLU in f32 (VPU), one rounding to bf16 (MXU operand), single
    # interior store into the halo buffer (no concatenate relayouts of the image).
    y = jnp.maximum(h1_ref[...].astype(jnp.float32) * sc_ref[...] + sh_ref[...], 0.0)
    pad_ref[1:H + 1, 1:W + 1, :] = y.astype(jnp.bfloat16)
    # dj-expanded patches: K = 3*C per matmul (>= 256 with C padded to 128k), then three
    # accumulating matmuls over di (di only slices the free leading H axis).
    ydj = jnp.concatenate([pad_ref[:, dj:dj + W, :] for dj in range(3)], axis=-1)
    h2 = jnp.zeros((H * W, C), jnp.float32)
    for di in range(3):                                      # static, unrolled
        h2 = h2 + jnp.dot(ydj[di:di + H].reshape(H * W, 3 * C),
                          w_ref[di * 3 * C:(di + 1) * 3 * C, :],
                          preferred_element_type=jnp.float32)
    h2_ref[...] = h2.reshape(H, W, C).astype(h2_ref.dtype)   # bf16 HBM intermediate
    hb = h2.reshape((H * W) // 8, 8, C)
    s_ref[...] = jnp.sum(hb, axis=0)
    ss_ref[...] = jnp.sum(hb * hb, axis=0)


def _conv3_kernel(h2_ref, sc_ref, sh_ref, w_ref, h3_ref, s_ref, ss_ref):
    """BN2-apply + ReLU + 1x1 conv (row matmul) + per-block partial BN3 statistics."""
    y = jnp.maximum(h2_ref[...].astype(jnp.float32) * sc_ref[...] + sh_ref[...], 0.0)
    h3 = jnp.dot(y.astype(jnp.bfloat16), w_ref[...],
                 preferred_element_type=jnp.float32)
    h3_ref[...] = h3.astype(h3_ref.dtype)         # bf16 HBM intermediate
    tm, c = h3.shape
    hb = h3.reshape(tm // 8, 8, c)
    s_ref[...] = jnp.sum(hb, axis=0)
    ss_ref[...] = jnp.sum(hb * hb, axis=0)


def _finalize_kernel(h3_ref, x_ref, sc_ref, sh_ref, o_ref):
    """BN3-apply + identity residual + final ReLU (all f32 VPU work)."""
    o_ref[...] = jnp.maximum(
        h3_ref[...].astype(jnp.float32) * sc_ref[...] + sh_ref[...]
        + x_ref[...].astype(jnp.float32), 0.0)


# --------------------------------------------------------------------- pallas wrappers
# NOTE: constant-index operands (weights, scale/shift) could be marked
# pipeline_mode=pl.Buffered(1) to avoid double-buffering; left at the default here
# since block-revisiting already skips the re-DMA and the per-step footprint is far
# below the VMEM limit at these channel widths.


def _call_conv1(x_bf16, w, tm):
    n, cin = x_bf16.shape
    cout = w.shape[1]
    nblk = n // tm
    return pl.pallas_call(
        _conv1_kernel,
        out_shape=(
            jax.ShapeDtypeStruct((n, cout), jnp.bfloat16),
            jax.ShapeDtypeStruct((nblk * 8, cout), jnp.float32),
            jax.ShapeDtypeStruct((nblk * 8, cout), jnp.float32),
        ),
        grid=(nblk,),
        in_specs=[
            pl.BlockSpec((tm, cin), lambda i: (i, 0)),
            pl.BlockSpec((cin, cout), lambda i: (0, 0)),
        ],
        out_specs=(
            pl.BlockSpec((tm, cout), lambda i: (i, 0)),
            pl.BlockSpec((8, cout), lambda i: (i, 0)),
            pl.BlockSpec((8, cout), lambda i: (i, 0)),
        ),
        compiler_params=_compiler_params(1),
    )(x_bf16, w)


def _call_conv2(h1_img, scale1, shift1, w2):
    b, h, w, c = h1_img.shape
    # TODO(synk): at realistic ResNet H*W*C on v7x, tile conv2 over (image, H-strip)
    # with a 1-row halo to bound per-step VMEM and give the DMA pipeline depth.
    return pl.pallas_call(
        _conv2_kernel,
        out_shape=(
            jax.ShapeDtypeStruct((b, h, w, c), jnp.bfloat16),
            jax.ShapeDtypeStruct((b * 8, c), jnp.float32),
            jax.ShapeDtypeStruct((b * 8, c), jnp.float32),
        ),
        grid=(b,),
        in_specs=[
            pl.BlockSpec((None, h, w, c), lambda i: (i, 0, 0, 0)),
            pl.BlockSpec((1, c), lambda i: (0, 0)),
            pl.BlockSpec((1, c), lambda i: (0, 0)),
            pl.BlockSpec((9 * c, c), lambda i: (0, 0)),
        ],
        out_specs=(
            pl.BlockSpec((None, h, w, c), lambda i: (i, 0, 0, 0)),
            pl.BlockSpec((8, c), lambda i: (i, 0)),
            pl.BlockSpec((8, c), lambda i: (i, 0)),
        ),
        scratch_shapes=[pltpu.VMEM((h + 2, w + 2, c), jnp.bfloat16)],
        compiler_params=_compiler_params(1),
    )(h1_img, scale1, shift1, w2)


def _call_conv3(h2_bf16, scale2, shift2, w3, tm):
    n, cin = h2_bf16.shape
    cout = w3.shape[1]
    nblk = n // tm
    return pl.pallas_call(
        _conv3_kernel,
        out_shape=(
            jax.ShapeDtypeStruct((n, cout), jnp.bfloat16),
            jax.ShapeDtypeStruct((nblk * 8, cout), jnp.float32),
            jax.ShapeDtypeStruct((nblk * 8, cout), jnp.float32),
        ),
        grid=(nblk,),
        in_specs=[
            pl.BlockSpec((tm, cin), lambda i: (i, 0)),
            pl.BlockSpec((1, cin), lambda i: (0, 0)),
            pl.BlockSpec((1, cin), lambda i: (0, 0)),
            pl.BlockSpec((cin, cout), lambda i: (0, 0)),
        ],
        out_specs=(
            pl.BlockSpec((tm, cout), lambda i: (i, 0)),
            pl.BlockSpec((8, cout), lambda i: (i, 0)),
            pl.BlockSpec((8, cout), lambda i: (i, 0)),
        ),
        compiler_params=_compiler_params(1),
    )(h2_bf16, scale2, shift2, w3)


def _call_finalize(h3_bf16, x_bf16, scale3, shift3, tm):
    n, c = h3_bf16.shape
    nblk = n // tm
    return pl.pallas_call(
        _finalize_kernel,
        out_shape=jax.ShapeDtypeStruct((n, c), jnp.float32),
        grid=(nblk,),
        in_specs=[
            pl.BlockSpec((tm, c), lambda i: (i, 0)),
            pl.BlockSpec((tm, c), lambda i: (i, 0)),
            pl.BlockSpec((1, c), lambda i: (0, 0)),
            pl.BlockSpec((1, c), lambda i: (0, 0)),
        ],
        out_specs=pl.BlockSpec((tm, c), lambda i: (i, 0)),
        compiler_params=_compiler_params(1),
    )(h3_bf16, x_bf16, scale3, shift3)


# --------------------------------------------------------------------------- wrapper


def _bn_scale_shift(psum, psumsq, count, gamma, beta):
    """Finalize training-mode BN from accumulated (sum, sum_of_squares) partials."""
    mean = jnp.sum(psum, axis=0, keepdims=True) / count
    ex2 = jnp.sum(psumsq, axis=0, keepdims=True) / count
    # NOTE: E[x^2]-E[x]^2 is less stable than a centered two-pass variance, but the
    # activations here are O(1), accumulation is f32, so it is well inside BN's eps.
    var = jnp.maximum(ex2 - mean * mean, 0.0)
    scale = gamma * lax.rsqrt(var + EPS)
    shift = beta - mean * scale
    return scale, shift


def bottleneck_block(x_nchw, params):
    """Forward pass of BottleneckBlock (stride=1, downsample=None, training-mode BN)."""
    w1, w2, w3, g1, b1, g2, b2, g3, b3 = params
    B, Cin, H, W = x_nchw.shape
    P = w1.shape[0]                      # torch conv1 weight: (P, Cin, 1, 1)
    Cout = w3.shape[0]                   # torch conv3 weight: (4P, P, 1, 1)
    assert Cout == Cin, "identity shortcut requires inplanes == planes * expansion"
    # TODO(synk): stride > 1 and a downsample shortcut are not implemented (the module
    # defaults exercised here are stride=1, downsample=None).

    N = B * H * W
    assert N % 8 == 0 and (H * W) % 8 == 0, "row counts must be sublane (8) aligned"
    Cin_p = _round_up(Cin, _LANE)
    Pp = _round_up(P, _LANE)
    Cout_p = _round_up(Cout, _LANE)
    tm = _row_tile(N)

    # ---- single HBM copy of the input: lane-dense (rows, 128k channels), bf16.  It is
    # both conv1's MXU operand and the residual read by finalize (upcast in-kernel).
    x_rows_bf16 = jnp.pad(
        jnp.transpose(x_nchw, (0, 2, 3, 1)).astype(jnp.float32).reshape(N, Cin),
        ((0, 0), (0, Cin_p - Cin))).astype(jnp.bfloat16)

    # ---- weights: bf16 MXU operands, zero-padded to the lane-dense channel widths.
    w1_m = jnp.pad(jnp.transpose(w1[:, :, 0, 0], (1, 0)),
                   ((0, Cin_p - Cin), (0, Pp - P))).astype(jnp.bfloat16)     # (Cin_p, Pp)
    w2_hwio = jnp.transpose(w2, (2, 3, 1, 0))                                # (3,3,in,out)
    w2_m = jnp.pad(w2_hwio, ((0, 0), (0, 0), (0, Pp - P), (0, Pp - P)))
    w2_m = w2_m.reshape(9 * Pp, Pp).astype(jnp.bfloat16)                     # (di,dj,cin)-major K
    w3_m = jnp.pad(jnp.transpose(w3[:, :, 0, 0], (1, 0)),
                   ((0, Pp - P), (0, Cout_p - Cout))).astype(jnp.bfloat16)   # (Pp, Cout_p)

    # gamma/beta padded with ZEROS so padded lanes stay exactly zero end-to-end.
    pad_vec = lambda v, wd: jnp.pad(v.astype(jnp.float32), (0, wd - v.shape[0])).reshape(1, wd)
    g1p, b1p = pad_vec(g1, Pp), pad_vec(b1, Pp)
    g2p, b2p = pad_vec(g2, Pp), pad_vec(b2, Pp)
    g3p, b3p = pad_vec(g3, Cout_p), pad_vec(b3, Cout_p)

    # ---- conv1 (+ BN1 partial stats) -> BN1 affine (tiny wrapper-side finalize)
    h1, s1, ss1 = _call_conv1(x_rows_bf16, w1_m, tm)
    scale1, shift1 = _bn_scale_shift(s1, ss1, N, g1p, b1p)

    # ---- BN1+ReLU -> 3x3 conv (halo scratch, 3x K=3C matmuls) -> BN2 affine
    h2_img, s2, ss2 = _call_conv2(h1.reshape(B, H, W, Pp), scale1, shift1, w2_m)
    scale2, shift2 = _bn_scale_shift(s2, ss2, N, g2p, b2p)

    # ---- BN2+ReLU -> conv3 (+ BN3 partial stats) -> BN3 affine
    h3, s3, ss3 = _call_conv3(h2_img.reshape(N, Pp), scale2, shift2, w3_m, tm)
    scale3, shift3 = _bn_scale_shift(s3, ss3, N, g3p, b3p)

    # ---- BN3 + identity residual + final ReLU
    out_rows = _call_finalize(h3, x_rows_bf16, scale3, shift3, tm)

    # Return NCHW to match the PyTorch module; an NHWC consumer could skip the
    # transpose (and the un-pad slice when Cout % 128 == 0) to save one pass over out.
    out = out_rows[:, :Cout].reshape(B, H, W, Cout)
    return jnp.transpose(out, (0, 3, 1, 2))


# -------------------------------------------------------------------------- reference


def reference(x_nchw, params, matmul_dtype=jnp.float32):
    """Pure-JAX reference (training-mode BN).  matmul_dtype=bfloat16 mirrors the
    kernel's bf16 MXU operands (inputs rounded to bf16, f32 accumulation)."""
    w1, w2, w3, g1, b1, g2, b2, g3, b3 = params
    cast = lambda a: a.astype(matmul_dtype).astype(jnp.float32)

    def conv(h, w, pad):
        return lax.conv_general_dilated(
            cast(h), cast(w), (1, 1), pad,
            dimension_numbers=('NCHW', 'OIHW', 'NCHW'),
            precision=lax.Precision.HIGHEST)

    def bnorm(h, g, b):
        mu = jnp.mean(h, axis=(0, 2, 3), keepdims=True)
        var = jnp.mean((h - mu) ** 2, axis=(0, 2, 3), keepdims=True)
        return (h - mu) * lax.rsqrt(var + EPS) * g.reshape(1, -1, 1, 1) \
            + b.reshape(1, -1, 1, 1)

    h = jax.nn.relu(bnorm(conv(x_nchw, w1, 'VALID'), g1, b1))
    h = jax.nn.relu(bnorm(conv(h, w2, [(1, 1), (1, 1)]), g2, b2))
    h = bnorm(conv(h, w3, 'VALID'), g3, b3)
    return jax.nn.relu(h + x_nchw)


if __name__ == "__main__":
    # inplanes = planes * expansion so the identity shortcut (downsample=None) is valid.
    B, inplanes, planes, H, W = 2, 16, 4, 16, 16
    expansion = 4

    key = jax.random.PRNGKey(0)
    k1, k2, k3, kx = jax.random.split(key, 4)

    # Variance-preserving weight scales keep pre-BN activations O(1) so the bf16-vs-f32
    # comparisons below stay well conditioned.
    w1 = jax.random.normal(k1, (planes, inplanes, 1, 1), jnp.float32) / np.sqrt(inplanes)
    w2 = jax.random.normal(k2, (planes, planes, 3, 3), jnp.float32) / np.sqrt(9 * planes)
    w3 = jax.random.normal(k3, (planes * expansion, planes, 1, 1), jnp.float32) / np.sqrt(planes)
    # BatchNorm default init: weight=1, bias=0
    g1, b1 = jnp.ones((planes,), jnp.float32), jnp.zeros((planes,), jnp.float32)
    g2, b2 = jnp.ones((planes,), jnp.float32), jnp.zeros((planes,), jnp.float32)
    g3 = jnp.ones((planes * expansion,), jnp.float32)
    b3 = jnp.zeros((planes * expansion,), jnp.float32)
    params = (w1, w2, w3, g1, b1, g2, b2, g3, b3)

    x = jax.random.normal(kx, (B, inplanes, H, W), jnp.float32)

    out = jax.block_until_ready(jax.jit(bottleneck_block)(x, params))
    assert out.shape == (B, planes * expansion, H, W)

    # Structural-correctness check against a reference with matching bf16-rounded
    # matmul inputs (kernel additionally stores intermediates / the residual in bf16,
    # hence the slightly looser tolerance).
    ref_bf16 = jax.block_until_ready(reference(x, params, matmul_dtype=jnp.bfloat16))
    np.testing.assert_allclose(np.asarray(out), np.asarray(ref_bf16), atol=5e-2, rtol=5e-2)

    # Sanity check against the full-f32 reference (bounds total bf16 drift).
    ref_f32 = jax.block_until_ready(reference(x, params, matmul_dtype=jnp.float32))
    np.testing.assert_allclose(np.asarray(out), np.asarray(ref_f32), atol=1.5e-1, rtol=1e-1)

    print("KERNEL_OK")
</pallas_src>

<mosaic_0001>
module attributes {stable_mosaic.version = 11 : i64} {
  func.func @_conv1_kernel(%arg0: i32, %arg1: memref<512x128xbf16, #tpu.memory_space<vmem>>, %arg2: memref<128x128xbf16, #tpu.memory_space<vmem>>, %arg3: memref<512x128xbf16, #tpu.memory_space<vmem>>, %arg4: memref<8x128xf32, #tpu.memory_space<vmem>>, %arg5: memref<8x128xf32, #tpu.memory_space<vmem>>) attributes {dimension_semantics = [#tpu.dimension_semantics<parallel>], iteration_bounds = array<i64: 1>, scalar_prefetch = 0 : i64, scratch_operands = 0 : i64, tpu.core_type = #tpu.core_type<tc>, window_params = [{transform_indices = @transform_0, window_bounds = array<i64: 512, 128>}, {pipeline_mode = #tpu.pipeline_mode<synchronous>, transform_indices = @transform_1, window_bounds = array<i64: 128, 128>}, {transform_indices = @transform_2, window_bounds = array<i64: 512, 128>}, {transform_indices = @transform_3, window_bounds = array<i64: 8, 128>}, {transform_indices = @transform_4, window_bounds = array<i64: 8, 128>}]} {
    %c0 = arith.constant 0 : index
    %c0_0 = arith.constant 0 : index
    %0 = vector.load %arg1[%c0, %c0_0] : memref<512x128xbf16, #tpu.memory_space<vmem>>, vector<512x128xbf16>
    %c0_1 = arith.constant 0 : index
    %c0_2 = arith.constant 0 : index
    %1 = vector.load %arg2[%c0_1, %c0_2] : memref<128x128xbf16, #tpu.memory_space<vmem>>, vector<128x128xbf16>
    %cst = arith.constant dense<0.000000e+00> : vector<512x128xf32>
    %2 = tpu.matmul %0, %1, %cst {dimension_numbers = #tpu.dot_dimension_numbers<[1], [0], [0], [1], [0, 0, 1, 1], [], []>} : vector<512x128xbf16>, vector<128x128xbf16>, vector<512x128xf32> -> vector<512x128xf32>
    %3 = arith.truncf %2 : vector<512x128xf32> to vector<512x128xbf16>
    %c0_3 = arith.constant 0 : index
    %c0_4 = arith.constant 0 : index
    %4 = vector.load %arg3[%c0_3, %c0_4] : memref<512x128xbf16, #tpu.memory_space<vmem>>, vector<512x128xbf16>
    tpu.vector_store %arg3[%c0_3, %c0_4], %3 {strides = array<i32>} : memref<512x128xbf16, #tpu.memory_space<vmem>>, vector<512x128xbf16>,
    %5 = vector.shape_cast %2 : vector<512x128xf32> to vector<64x8x128xf32>
    %cst_5 = arith.constant dense<0.000000e+00> : vector<8x128xf32>
    %6 = vector.multi_reduction <add>, %5, %cst_5 [0] : vector<64x8x128xf32> to vector<8x128xf32>
    %c0_6 = arith.constant 0 : index
    %c0_7 = arith.constant 0 : index
    %7 = vector.load %arg4[%c0_6, %c0_7] : memref<8x128xf32, #tpu.memory_space<vmem>>, vector<8x128xf32>
    tpu.vector_store %arg4[%c0_6, %c0_7], %6 {strides = array<i32>} : memref<8x128xf32, #tpu.memory_space<vmem>>, vector<8x128xf32>,
    %8 = arith.mulf %5, %5 : vector<64x8x128xf32>
    %cst_8 = arith.constant dense<0.000000e+00> : vector<8x128xf32>
    %9 = vector.multi_reduction <add>, %8, %cst_8 [0] : vector<64x8x128xf32> to vector<8x128xf32>
    %c0_9 = arith.constant 0 : index
    %c0_10 = arith.constant 0 : index
    %10 = vector.load %arg5[%c0_9, %c0_10] : memref<8x128xf32, #tpu.memory_space<vmem>>, vector<8x128xf32>
    tpu.vector_store %arg5[%c0_9, %c0_10], %9 {strides = array<i32>} : memref<8x128xf32, #tpu.memory_space<vmem>>, vector<8x128xf32>,
    return
  }
  func.func @transform_0(%arg0: i32) -> (i32, i32) {
    %c0_i32 = arith.constant 0 : i32
    %c0_i32_0 = arith.constant 0 : i32
    return %arg0, %c0_i32 : i32, i32
  }
  func.func @transform_1(%arg0: i32) -> (i32, i32) {
    %c0_i32 = arith.constant 0 : i32
    %c0_i32_0 = arith.constant 0 : i32
    %c0_i32_1 = arith.constant 0 : i32
    return %c0_i32, %c0_i32_0 : i32, i32
  }
  func.func @transform_2(%arg0: i32) -> (i32, i32) {
    %c0_i32 = arith.constant 0 : i32
    %c0_i32_0 = arith.constant 0 : i32
    return %arg0, %c0_i32 : i32, i32
  }
  func.func @transform_3(%arg0: i32) -> (i32, i32) {
    %c0_i32 = arith.constant 0 : i32
    %c0_i32_0 = arith.constant 0 : i32
    return %arg0, %c0_i32 : i32, i32
  }
  func.func @transform_4(%arg0: i32) -> (i32, i32) {
    %c0_i32 = arith.constant 0 : i32
    %c0_i32_0 = arith.constant 0 : i32
    return %arg0, %c0_i32 : i32, i32
  }
}

module attributes {stable_mosaic.version = 11 : i64} {
  func.func @_conv2_kernel(%arg0: i32, %arg1: memref<1x16x16x128xbf16, #tpu.memory_space<vmem>>, %arg2: memref<1x128xf32, #tpu.memory_space<vmem>>, %arg3: memref<1x128xf32, #tpu.memory_space<vmem>>, %arg4: memref<1152x128xbf16, #tpu.memory_space<vmem>>, %arg5: memref<1x16x16x128xbf16, #tpu.memory_space<vmem>>, %arg6: memref<8x128xf32, #tpu.memory_space<vmem>>, %arg7: memref<8x128xf32, #tpu.memory_space<vmem>>, %arg8: memref<18x18x128xbf16, #tpu.memory_space<vmem>>) attributes {dimension_semantics = [#tpu.dimension_semantics<parallel>], iteration_bounds = array<i64: 2>, scalar_prefetch = 0 : i64, scratch_operands = 1 : i64, tpu.core_type = #tpu.core_type<tc>, window_params = [{transform_indices = @transform_0, window_bounds = array<i64: 1, 16, 16, 128>}, {pipeline_mode = #tpu.pipeline_mode<synchronous>, transform_indices = @transform_1, window_bounds = array<i64: 1, 128>}, {pipeline_mode = #tpu.pipeline_mode<synchronous>, transform_indices = @transform_2, window_bounds = array<i64: 1, 128>}, {pipeline_mode = #tpu.pipeline_mode<synchronous>, transform_indices = @transform_3, window_bounds = array<i64: 1152, 128>}, {transform_indices = @transform_4, window_bounds = array<i64: 1, 16, 16, 128>}, {transform_indices = @transform_5, window_bounds = array<i64: 8, 128>}, {transform_indices = @transform_6, window_bounds = array<i64: 8, 128>}]} {
    %cst = arith.constant 0.000000e+00 : bf16
    %0 = vector.broadcast %cst : bf16 to vector<1x18x128xbf16>
    %cst_0 = arith.constant 0.000000e+00 : bf16
    %1 = vector.broadcast %cst_0 : bf16 to vector<18x1x128xbf16>
    %c0 = arith.constant 0 : index
    %c0_1 = arith.constant 0 : index
    %c0_2 = arith.constant 0 : index
    %2 = vector.load %arg8[%c0, %c0_1, %c0_2] : memref<18x18x128xbf16, #tpu.memory_space<vmem>>, vector<1x18x128xbf16>
    tpu.vector_store %arg8[%c0, %c0_1, %c0_2], %0 {strides = array<i32>} : memref<18x18x128xbf16, #tpu.memory_space<vmem>>, vector<1x18x128xbf16>,
    %c17 = arith.constant 17 : index
    %c0_3 = arith.constant 0 : index
    %c0_4 = arith.constant 0 : index
    %3 = vector.load %arg8[%c17, %c0_3, %c0_4] : memref<18x18x128xbf16, #tpu.memory_space<vmem>>, vector<1x18x128xbf16>
    tpu.vector_store %arg8[%c17, %c0_3, %c0_4], %0 {strides = array<i32>} : memref<18x18x128xbf16, #tpu.memory_space<vmem>>, vector<1x18x128xbf16>,
    %c0_5 = arith.constant 0 : index
    %c0_6 = arith.constant 0 : index
    %c0_7 = arith.constant 0 : index
    %4 = vector.load %arg8[%c0_5, %c0_6, %c0_7] : memref<18x18x128xbf16, #tpu.memory_space<vmem>>, vector<18x1x128xbf16>
    tpu.vector_store %arg8[%c0_5, %c0_6, %c0_7], %1 {strides = array<i32>} : memref<18x18x128xbf16, #tpu.memory_space<vmem>>, vector<18x1x128xbf16>,
    %c0_8 = arith.constant 0 : index
    %c17_9 = arith.constant 17 : index
    %c0_10 = arith.constant 0 : index
    %5 = vector.load %arg8[%c0_8, %c17_9, %c0_10] : memref<18x18x128xbf16, #tpu.memory_space<vmem>>, vector<18x1x128xbf16>
    tpu.vector_store %arg8[%c0_8, %c17_9, %c0_10], %1 {strides = array<i32>} : memref<18x18x128xbf16, #tpu.memory_space<vmem>>, vector<18x1x128xbf16>,
    %c0_11 = arith.constant 0 : index
    %c0_12 = arith.constant 0 : index
    %c0_13 = arith.constant 0 : index
    %c0_14 = arith.constant 0 : index
    %6 = vector.load %arg1[%c0_11, %c0_12, %c0_13, %c0_14] : memref<1x16x16x128xbf16, #tpu.memory_space<vmem>>, vector<1x16x16x128xbf16>
    %7 = vector.shape_cast %6 : vector<1x16x16x128xbf16> to vector<16x16x128xbf16>
    %8 = arith.extf %7 : vector<16x16x128xbf16> to vector<16x16x128xf32>
    %c0_15 = arith.constant 0 : index
    %c0_16 = arith.constant 0 : index
    %9 = vector.load %arg2[%c0_15, %c0_16] : memref<1x128xf32, #tpu.memory_space<vmem>>, vector<1x128xf32>
    %10 = vector.shape_cast %9 : vector<1x128xf32> to vector<1x1x128xf32>
    %11 = vector.broadcast %10 : vector<1x1x128xf32> to vector<16x16x128xf32>
    %12 = arith.mulf %8, %11 : vector<16x16x128xf32>
    %c0_17 = arith.constant 0 : index
    %c0_18 = arith.constant 0 : index
    %13 = vector.load %arg3[%c0_17, %c0_18] : memref<1x128xf32, #tpu.memory_space<vmem>>, vector<1x128xf32>
    %14 = vector.shape_cast %13 : vector<1x128xf32> to vector<1x1x128xf32>
    %15 = vector.broadcast %14 : vector<1x1x128xf32> to vector<16x16x128xf32>
    %16 = arith.addf %12, %15 : vector<16x16x128xf32>
    %cst_19 = arith.constant 0.000000e+00 : f32
    %17 = vector.broadcast %cst_19 : f32 to vector<16x16x128xf32>
    %18 = arith.maximumf %16, %17 : vector<16x16x128xf32>
    %19 = arith.truncf %18 : vector<16x16x128xf32> to vector<16x16x128xbf16>
    %c1 = arith.constant 1 : index
    %c1_20 = arith.constant 1 : index
    %c0_21 = arith.constant 0 : index
    %20 = vector.load %arg8[%c1, %c1_20, %c0_21] : memref<18x18x128xbf16, #tpu.memory_space<vmem>>, vector<16x16x128xbf16>
    tpu.vector_store %arg8[%c1, %c1_20, %c0_21], %19 {strides = array<i32>} : memref<18x18x128xbf16, #tpu.memory_space<vmem>>, vector<16x16x128xbf16>,
    %c0_22 = arith.constant 0 : index
    %c0_23 = arith.constant 0 : index
    %c0_24 = arith.constant 0 : index
    %21 = vector.load %arg8[%c0_22, %c0_23, %c0_24] : memref<18x18x128xbf16, #tpu.memory_space<vmem>>, vector<18x16x128xbf16>
    %c0_25 = arith.constant 0 : index
    %c1_26 = arith.constant 1 : index
    %c0_27 = arith.constant 0 : index
    %22 = vector.load %arg8[%c0_25, %c1_26, %c0_27] : memref<18x18x128xbf16, #tpu.memory_space<vmem>>, vector<18x16x128xbf16>
    %c0_28 = arith.constant 0 : index
    %c2 = arith.constant 2 : index
    %c0_29 = arith.constant 0 : index
    %23 = vector.load %arg8[%c0_28, %c2, %c0_29] : memref<18x18x128xbf16, #tpu.memory_space<vmem>>, vector<18x16x128xbf16>
    %24 = tpu.concatenate %21, %22, %23 in 2 : vector<18x16x128xbf16>, vector<18x16x128xbf16>, vector<18x16x128xbf16> -> vector<18x16x384xbf16>
    %cst_30 = arith.constant 0.000000e+00 : f32
    %25 = vector.broadcast %cst_30 : f32 to vector<256x128xf32>
    %26 = vector.extract_strided_slice %24 {offsets = [0, 0, 0], sizes = [16, 16, 384], strides = [1, 1, 1]} : vector<18x16x384xbf16> to vector<16x16x384xbf16>
    %27 = vector.shape_cast %26 : vector<16x16x384xbf16> to vector<256x384xbf16>
    %c0_31 = arith.constant 0 : index
    %c0_32 = arith.constant 0 : index
    %28 = vector.load %arg4[%c0_31, %c0_32] : memref<1152x128xbf16, #tpu.memory_space<vmem>>, vector<384x128xbf16>
    %cst_33 = arith.constant dense<0.000000e+00> : vector<256x128xf32>
    %29 = tpu.matmul %27, %28, %cst_33 {dimension_numbers = #tpu.dot_dimension_numbers<[1], [0], [0], [1], [0, 0, 1, 1], [], []>} : vector<256x384xbf16>, vector<384x128xbf16>, vector<256x128xf32> -> vector<256x128xf32>
    %30 = arith.addf %25, %29 : vector<256x128xf32>
    %31 = vector.extract_strided_slice %24 {offsets = [1, 0, 0], sizes = [16, 16, 384], strides = [1, 1, 1]} : vector<18x16x384xbf16> to vector<16x16x384xbf16>
    %32 = vector.shape_cast %31 : vector<16x16x384xbf16> to vector<256x384xbf16>
    %c384 = arith.constant 384 : index
    %c0_34 = arith.constant 0 : index
    %33 = vector.load %arg4[%c384, %c0_34] : memref<1152x128xbf16, #tpu.memory_space<vmem>>, vector<384x128xbf16>
    %cst_35 = arith.constant dense<0.000000e+00> : vector<256x128xf32>
    %34 = tpu.matmul %32, %33, %cst_35 {dimension_numbers = #tpu.dot_dimension_numbers<[1], [0], [0], [1], [0, 0, 1, 1], [], []>} : vector<256x384xbf16>, vector<384x128xbf16>, vector<256x128xf32> -> vector<256x128xf32>
    %35 = arith.addf %30, %34 : vector<256x128xf32>
    %36 = vector.extract_strided_slice %24 {offsets = [2, 0, 0], sizes = [16, 16, 384], strides = [1, 1, 1]} : vector<18x16x384xbf16> to vector<16x16x384xbf16>
    %37 = vector.shape_cast %36 : vector<16x16x384xbf16> to vector<256x384xbf16>
    %c768 = arith.constant 768 : index
    %c0_36 = arith.constant 0 : index
    %38 = vector.load %arg4[%c768, %c0_36] : memref<1152x128xbf16, #tpu.memory_space<vmem>>, vector<384x128xbf16>
    %cst_37 = arith.constant dense<0.000000e+00> : vector<256x128xf32>
    %39 = tpu.matmul %37, %38, %cst_37 {dimension_numbers = #tpu.dot_dimension_numbers<[1], [0], [0], [1], [0, 0, 1, 1], [], []>} : vector<256x384xbf16>, vector<384x128xbf16>, vector<256x128xf32> -> vector<256x128xf32>
    %40 = arith.addf %35, %39 : vector<256x128xf32>
    %41 = vector.shape_cast %40 : vector<256x128xf32> to vector<16x16x128xf32>
    %42 = arith.truncf %41 : vector<16x16x128xf32> to vector<16x16x128xbf16>
    %c0_38 = arith.constant 0 : index
    %c0_39 = arith.constant 0 : index
    %c0_40 = arith.constant 0 : index
    %c0_41 = arith.constant 0 : index
    %43 = vector.load %arg5[%c0_38, %c0_39, %c0_40, %c0_41] : memref<1x16x16x128xbf16, #tpu.memory_space<vmem>>, vector<1x16x16x128xbf16>
    %44 = vector.shape_cast %43 : vector<1x16x16x128xbf16> to vector<16x16x128xbf16>
    %45 = vector.shape_cast %42 : vector<16x16x128xbf16> to vector<1x16x16x128xbf16>
    tpu.vector_store %arg5[%c0_38, %c0_39, %c0_40, %c0_41], %45 {strides = array<i32>} : memref<1x16x16x128xbf16, #tpu.memory_space<vmem>>, vector<1x16x16x128xbf16>,
    %46 = vector.shape_cast %40 : vector<256x128xf32> to vector<32x8x128xf32>
    %cst_42 = arith.constant dense<0.000000e+00> : vector<8x128xf32>
    %47 = vector.multi_reduction <add>, %46, %cst_42 [0] : vector<32x8x128xf32> to vector<8x128xf32>
    %c0_43 = arith.constant 0 : index
    %c0_44 = arith.constant 0 : index
    %48 = vector.load %arg6[%c0_43, %c0_44] : memref<8x128xf32, #tpu.memory_space<vmem>>, vector<8x128xf32>
    tpu.vector_store %arg6[%c0_43, %c0_44], %47 {strides = array<i32>} : memref<8x128xf32, #tpu.memory_space<vmem>>, vector<8x128xf32>,
    %49 = arith.mulf %46, %46 : vector<32x8x128xf32>
    %cst_45 = arith.constant dense<0.000000e+00> : vector<8x128xf32>
    %50 = vector.multi_reduction <add>, %49, %cst_45 [0] : vector<32x8x128xf32> to vector<8x128xf32>
    %c0_46 = arith.constant 0 : index
    %c0_47 = arith.constant 0 : index
    %51 = vector.load %arg7[%c0_46, %c0_47] : memref<8x128xf32, #tpu.memory_space<vmem>>, vector<8x128xf32>
    tpu.vector_store %arg7[%c0_46, %c0_47], %50 {strides = array<i32>} : memref<8x128xf32, #tpu.memory_space<vmem>>, vector<8x128xf32>,
    return
  }
  func.func @transform_0(%arg0: i32) -> (i32, i32, i32, i32) {
    %c0_i32 = arith.constant 0 : i32
    %c0_i32_0 = arith.constant 0 : i32
    %c0_i32_1 = arith.constant 0 : i32
    %c0_i32_2 = arith.constant 0 : i32
    return %arg0, %c0_i32, %c0_i32_0, %c0_i32_1 : i32, i32, i32, i32
  }
  func.func @transform_1(%arg0: i32) -> (i32, i32) {
    %c0_i32 = arith.constant 0 : i32
    %c0_i32_0 = arith.constant 0 : i32
    %c0_i32_1 = arith.constant 0 : i32
    return %c0_i32, %c0_i32_0 : i32, i32
  }
  func.func @transform_2(%arg0: i32) -> (i32, i32) {
    %c0_i32 = arith.constant 0 : i32
    %c0_i32_0 = arith.constant 0 : i32
    %c0_i32_1 = arith.constant 0 : i32
    return %c0_i32, %c0_i32_0 : i32, i32
  }
  func.func @transform_3(%arg0: i32) -> (i32, i32) {
    %c0_i32 = arith.constant 0 : i32
    %c0_i32_0 = arith.constant 0 : i32
    %c0_i32_1 = arith.constant 0 : i32
    return %c0_i32, %c0_i32_0 : i32, i32
  }
  func.func @transform_4(%arg0: i32) -> (i32, i32, i32, i32) {
    %c0_i32 = arith.constant 0 : i32
    %c0_i32_0 = arith.constant 0 : i32
    %c0_i32_1 = arith.constant 0 : i32
    %c0_i32_2 = arith.constant 0 : i32
    return %arg0, %c0_i32, %c0_i32_0, %c0_i32_1 : i32, i32, i32, i32
  }
  func.func @transform_5(%arg0: i32) -> (i32, i32) {
    %c0_i32 = arith.constant 0 : i32
    %c0_i32_0 = arith.constant 0 : i32
    return %arg0, %c0_i32 : i32, i32
  }
  func.func @transform_6(%arg0: i32) -> (i32, i32) {
    %c0_i32 = arith.constant 0 : i32
    %c0_i32_0 = arith.constant 0 : i32
    return %arg0, %c0_i32 : i32, i32
  }
}

module attributes {stable_mosaic.version = 11 : i64} {
  func.func @_conv3_kernel(%arg0: i32, %arg1: memref<512x128xbf16, #tpu.memory_space<vmem>>, %arg2: memref<1x128xf32, #tpu.memory_space<vmem>>, %arg3: memref<1x128xf32, #tpu.memory_space<vmem>>, %arg4: memref<128x128xbf16, #tpu.memory_space<vmem>>, %arg5: memref<512x128xbf16, #tpu.memory_space<vmem>>, %arg6: memref<8x128xf32, #tpu.memory_space<vmem>>, %arg7: memref<8x128xf32, #tpu.memory_space<vmem>>) attributes {dimension_semantics = [#tpu.dimension_semantics<parallel>], iteration_bounds = array<i64: 1>, scalar_prefetch = 0 : i64, scratch_operands = 0 : i64, tpu.core_type = #tpu.core_type<tc>, window_params = [{transform_indices = @transform_0, window_bounds = array<i64: 512, 128>}, {pipeline_mode = #tpu.pipeline_mode<synchronous>, transform_indices = @transform_1, window_bounds = array<i64: 1, 128>}, {pipeline_mode = #tpu.pipeline_mode<synchronous>, transform_indices = @transform_2, window_bounds = array<i64: 1, 128>}, {pipeline_mode = #tpu.pipeline_mode<synchronous>, transform_indices = @transform_3, window_bounds = array<i64: 128, 128>}, {transform_indices = @transform_4, window_bounds = array<i64: 512, 128>}, {transform_indices = @transform_5, window_bounds = array<i64: 8, 128>}, {transform_indices = @transform_6, window_bounds = array<i64: 8, 128>}]} {
    %c0 = arith.constant 0 : index
    %c0_0 = arith.constant 0 : index
    %0 = vector.load %arg1[%c0, %c0_0] : memref<512x128xbf16, #tpu.memory_space<vmem>>, vector<512x128xbf16>
    %1 = arith.extf %0 : vector<512x128xbf16> to vector<512x128xf32>
    %c0_1 = arith.constant 0 : index
    %c0_2 = arith.constant 0 : index
    %2 = vector.load %arg2[%c0_1, %c0_2] : memref<1x128xf32, #tpu.memory_space<vmem>>, vector<1x128xf32>
    %3 = vector.broadcast %2 : vector<1x128xf32> to vector<512x128xf32>
    %4 = arith.mulf %1, %3 : vector<512x128xf32>
    %c0_3 = arith.constant 0 : index
    %c0_4 = arith.constant 0 : index
    %5 = vector.load %arg3[%c0_3, %c0_4] : memref<1x128xf32, #tpu.memory_space<vmem>>, vector<1x128xf32>
    %6 = vector.broadcast %5 : vector<1x128xf32> to vector<512x128xf32>
    %7 = arith.addf %4, %6 : vector<512x128xf32>
    %cst = arith.constant 0.000000e+00 : f32
    %8 = vector.broadcast %cst : f32 to vector<512x128xf32>
    %9 = arith.maximumf %7, %8 : vector<512x128xf32>
    %10 = arith.truncf %9 : vector<512x128xf32> to vector<512x128xbf16>
    %c0_5 = arith.constant 0 : index
    %c0_6 = arith.constant 0 : index
    %11 = vector.load %arg4[%c0_5, %c0_6] : memref<128x128xbf16, #tpu.memory_space<vmem>>, vector<128x128xbf16>
    %cst_7 = arith.constant dense<0.000000e+00> : vector<512x128xf32>
    %12 = tpu.matmul %10, %11, %cst_7 {dimension_numbers = #tpu.dot_dimension_numbers<[1], [0], [0], [1], [0, 0, 1, 1], [], []>} : vector<512x128xbf16>, vector<128x128xbf16>, vector<512x128xf32> -> vector<512x128xf32>
    %13 = arith.truncf %12 : vector<512x128xf32> to vector<512x128xbf16>
    %c0_8 = arith.constant 0 : index
    %c0_9 = arith.constant 0 : index
    %14 = vector.load %arg5[%c0_8, %c0_9] : memref<512x128xbf16, #tpu.memory_space<vmem>>, vector<512x128xbf16>
    tpu.vector_store %arg5[%c0_8, %c0_9], %13 {strides = array<i32>} : memref<512x128xbf16, #tpu.memory_space<vmem>>, vector<512x128xbf16>,
    %15 = vector.shape_cast %12 : vector<512x128xf32> to vector<64x8x128xf32>
    %cst_10 = arith.constant dense<0.000000e+00> : vector<8x128xf32>
    %16 = vector.multi_reduction <add>, %15, %cst_10 [0] : vector<64x8x128xf32> to vector<8x128xf32>
    %c0_11 = arith.constant 0 : index
    %c0_12 = arith.constant 0 : index
    %17 = vector.load %arg6[%c0_11, %c0_12] : memref<8x128xf32, #tpu.memory_space<vmem>>, vector<8x128xf32>
    tpu.vector_store %arg6[%c0_11, %c0_12], %16 {strides = array<i32>} : memref<8x128xf32, #tpu.memory_space<vmem>>, vector<8x128xf32>,
    %18 = arith.mulf %15, %15 : vector<64x8x128xf32>
    %cst_13 = arith.constant dense<0.000000e+00> : vector<8x128xf32>
    %19 = vector.multi_reduction <add>, %18, %cst_13 [0] : vector<64x8x128xf32> to vector<8x128xf32>
    %c0_14 = arith.constant 0 : index
    %c0_15 = arith.constant 0 : index
    %20 = vector.load %arg7[%c0_14, %c0_15] : memref<8x128xf32, #tpu.memory_space<vmem>>, vector<8x128xf32>
    tpu.vector_store %arg7[%c0_14, %c0_15], %19 {strides = array<i32>} : memref<8x128xf32, #tpu.memory_space<vmem>>, vector<8x128xf32>,
    return
  }
  func.func @transform_0(%arg0: i32) -> (i32, i32) {
    %c0_i32 = arith.constant 0 : i32
    %c0_i32_0 = arith.constant 0 : i32
    return %arg0, %c0_i32 : i32, i32
  }
  func.func @transform_1(%arg0: i32) -> (i32, i32) {
    %c0_i32 = arith.constant 0 : i32
    %c0_i32_0 = arith.constant 0 : i32
    %c0_i32_1 = arith.constant 0 : i32
    return %c0_i32, %c0_i32_0 : i32, i32
  }
  func.func @transform_2(%arg0: i32) -> (i32, i32) {
    %c0_i32 = arith.constant 0 : i32
    %c0_i32_0 = arith.constant 0 : i32
    %c0_i32_1 = arith.constant 0 : i32
    return %c0_i32, %c0_i32_0 : i32, i32
  }
  func.func @transform_3(%arg0: i32) -> (i32, i32) {
    %c0_i32 = arith.constant 0 : i32
    %c0_i32_0 = arith.constant 0 : i32
    %c0_i32_1 = arith.constant 0 : i32
    return %c0_i32, %c0_i32_0 : i32, i32
  }
  func.func @transform_4(%arg0: i32) -> (i32, i32) {
    %c0_i32 = arith.constant 0 : i32
    %c0_i32_0 = arith.constant 0 : i32
    return %arg0, %c0_i32 : i32, i32
  }
  func.func @transform_5(%arg0: i32) -> (i32, i32) {
    %c0_i32 = arith.constant 0 : i32
    %c0_i32_0 = arith.constant 0 : i32
    return %arg0, %c0_i32 : i32, i32
  }
  func.func @transform_6(%arg0: i32) -> (i32, i32) {
    %c0_i32 = arith.constant 0 : i32
    %c0_i32_0 = arith.constant 0 : i32
    return %arg0, %c0_i32 : i32, i32
  }
}

module attributes {stable_mosaic.version = 11 : i64} {
  func.func @_finalize_kernel(%arg0: i32, %arg1: memref<512x128xbf16, #tpu.memory_space<vmem>>, %arg2: memref<512x128xbf16, #tpu.memory_space<vmem>>, %arg3: memref<1x128xf32, #tpu.memory_space<vmem>>, %arg4: memref<1x128xf32, #tpu.memory_space<vmem>>, %arg5: memref<512x128xf32, #tpu.memory_space<vmem>>) attributes {dimension_semantics = [#tpu.dimension_semantics<parallel>], iteration_bounds = array<i64: 1>, scalar_prefetch = 0 : i64, scratch_operands = 0 : i64, tpu.core_type = #tpu.core_type<tc>, window_params = [{transform_indices = @transform_0, window_bounds = array<i64: 512, 128>}, {transform_indices = @transform_1, window_bounds = array<i64: 512, 128>}, {pipeline_mode = #tpu.pipeline_mode<synchronous>, transform_indices = @transform_2, window_bounds = array<i64: 1, 128>}, {pipeline_mode = #tpu.pipeline_mode<synchronous>, transform_indices = @transform_3, window_bounds = array<i64: 1, 128>}, {transform_indices = @transform_4, window_bounds = array<i64: 512, 128>}]} {
    %c0 = arith.constant 0 : index
    %c0_0 = arith.constant 0 : index
    %0 = vector.load %arg1[%c0, %c0_0] : memref<512x128xbf16, #tpu.memory_space<vmem>>, vector<512x128xbf16>
    %1 = arith.extf %0 : vector<512x128xbf16> to vector<512x128xf32>
    %c0_1 = arith.constant 0 : index
    %c0_2 = arith.constant 0 : index
    %2 = vector.load %arg3[%c0_1, %c0_2] : memref<1x128xf32, #tpu.memory_space<vmem>>, vector<1x128xf32>
    %3 = vector.broadcast %2 : vector<1x128xf32> to vector<512x128xf32>
    %4 = arith.mulf %1, %3 : vector<512x128xf32>
    %c0_3 = arith.constant 0 : index
    %c0_4 = arith.constant 0 : index
    %5 = vector.load %arg4[%c0_3, %c0_4] : memref<1x128xf32, #tpu.memory_space<vmem>>, vector<1x128xf32>
    %6 = vector.broadcast %5 : vector<1x128xf32> to vector<512x128xf32>
    %7 = arith.addf %4, %6 : vector<512x128xf32>
    %c0_5 = arith.constant 0 : index
    %c0_6 = arith.constant 0 : index
    %8 = vector.load %arg2[%c0_5, %c0_6] : memref<512x128xbf16, #tpu.memory_space<vmem>>, vector<512x128xbf16>
    %9 = arith.extf %8 : vector<512x128xbf16> to vector<512x128xf32>
    %10 = arith.addf %7, %9 : vector<512x128xf32>
    %cst = arith.constant 0.000000e+00 : f32
    %11 = vector.broadcast %cst : f32 to vector<512x128xf32>
    %12 = arith.maximumf %10, %11 : vector<512x128xf32>
    %c0_7 = arith.constant 0 : index
    %c0_8 = arith.constant 0 : index
    %13 = vector.load %arg5[%c0_7, %c0_8] : memref<512x128xf32, #tpu.memory_space<vmem>>, vector<512x128xf32>
    tpu.vector_store %arg5[%c0_7, %c0_8], %12 {strides = array<i32>} : memref<512x128xf32, #tpu.memory_space<vmem>>, vector<512x128xf32>,
    return
  }
  func.func @transform_0(%arg0: i32) -> (i32, i32) {
    %c0_i32 = arith.constant 0 : i32
    %c0_i32_0 = arith.constant 0 : i32
    return %arg0, %c0_i32 : i32, i32
  }
  func.func @transform_1(%arg0: i32) -> (i32, i32) {
    %c0_i32 = arith.constant 0 : i32
    %c0_i32_0 = arith.constant 0 : i32
    return %arg0, %c0_i32 : i32, i32
  }
  func.func @transform_2(%arg0: i32) -> (i32, i32) {
    %c0_i32 = arith.constant 0 : i32
    %c0_i32_0 = arith.constant 0 : i32
    %c0_i32_1 = arith.constant 0 : i32
    return %c0_i32, %c0_i32_0 : i32, i32
  }
  func.func @transform_3(%arg0: i32) -> (i32, i32) {
    %c0_i32 = arith.constant 0 : i32
    %c0_i32_0 = arith.constant 0 : i32
    %c0_i32_1 = arith.constant 0 : i32
    return %c0_i32, %c0_i32_0 : i32, i32
  }
  func.func @transform_4(%arg0: i32) -> (i32, i32) {
    %c0_i32 = arith.constant 0 : i32
    %c0_i32_0 = arith.constant 0 : i32
    return %arg0, %c0_i32 : i32, i32
  }
}

</mosaic_0001>

<bundles_post_ra>
// kernel: bottleneck_block.4
= control target key start
LH: loop header
LB: loop body
LE: loop exit
PB: predicated region body
PF: predicated region fallthrough
CT: control target
= control target key end

     0   :  { %s2122_s1 = inlined_call_operand.vmem [shape: bf16[128,128], index: 1, kind: input, shape index: {}]   ;;  %s2123_s0 = inlined_call_operand.vmem [shape: bf16[512,128], index: 0, kind: input, shape index: {}]   ;;  %s2124_s2 = inlined_call_operand.vmem [shape: bf16[512,128], index: 2, kind: output, shape index: {0}]   ;;  %s2125_s3 = inlined_call_operand.vmem [shape: f32[8,128], index: 3, kind: output, shape index: {1}]   ;;  %s2126_s4 = inlined_call_operand.vmem [shape: f32[8,128], index: 4, kind: output, shape index: {2}]  }
   0x1   :  { %v1643_v0 = vld [vmem:[%s2122_s1] sm:$0xff]   ;;  %v1644_v1 = vld [vmem:[%s2122_s1 + $0x8] sm:$0xff]   ;;  %v1645_v2 = vld [vmem:[%s2122_s1 + $0x10] sm:$0xff]  }
   0x2   :  { %1547 = vmatprep.subr.bf16.mxu0 %v1643_v0  ;;  %1627 = vmatprep.subr.bf16.mxu1 %v1643_v0  ;;  %v1646_v3 = vld [vmem:[%s2122_s1 + $0x18] sm:$0xff]   ;;  %v1651_v4 = vld [vmem:[%s2123_s0] sm:$0xff]   ;;  %v1648_v6 = vld [vmem:[%s2122_s1 + $0x28] sm:$0xff]  }
   0x3   :  { %1548 = vmatpush3.bf16.msra.mxu0 %v1643_v0  ;;  %1635 = vmatpush3.bf16.msra.mxu1 %v1643_v0  ;;  %v1647_v5 = vld [vmem:[%s2122_s1 + $0x20] sm:$0xff]   ;;  %v1649_v7 = vld [vmem:[%s2122_s1 + $0x30] sm:$0xff]   ;;  %v1650_v8 = vld [vmem:[%s2122_s1 + $0x38] sm:$0xff]  }
   0x4   :  { %1549 = vmatprep.subr.bf16.mxu0 %v1644_v1  ;;  %1628 = vmatprep.subr.bf16.mxu1 %v1644_v1  ;;  %v1667_v9 = vld [vmem:[%s2123_s0 + $0x80] sm:$0xff]   ;;  %v1652_v10 = vld [vmem:[%s2123_s0 + $0x8] sm:$0xff]   ;;  %v1653_v11 = vld [vmem:[%s2123_s0 + $0x10] sm:$0xff]  }
   0x5   :  { %1563 = vmatprep.mubr.bf16.mxu0 %v1651_v4  ;;  %1595 = vmatprep.mubr.bf16.mxu1 %v1667_v9  ;;  %v1668_v12 = vld [vmem:[%s2123_s0 + $0x88] sm:$0xff]   ;;  %v1669_v13 = vld [vmem:[%s2123_s0 + $0x90] sm:$0xff]   ;;  %v1654_v14 = vld [vmem:[%s2123_s0 + $0x18] sm:$0xff]  }
   0x6   :  { %v1655_v15 = vld [vmem:[%s2123_s0 + $0x20] sm:$0xff]   ;;  %v1670_v16 = vld [vmem:[%s2123_s0 + $0x98] sm:$0xff]   ;;  %v1656_v18 = vld [vmem:[%s2123_s0 + $0x28] sm:$0xff]  }
   0x7   :  { %1550 = vmatpush3.bf16.msra.mxu0 %v1644_v1  ;;  %1636 = vmatpush3.bf16.msra.mxu1 %v1644_v1  ;;  %v1671_v17 = vld [vmem:[%s2123_s0 + $0xa0] sm:$0xff]   ;;  %v1672_v19 = vld [vmem:[%s2123_s0 + $0xa8] sm:$0xff]   ;;  %v1657_v20 = vld [vmem:[%s2123_s0 + $0x30] sm:$0xff]  }
   0x8   :  { %1551 = vmatprep.subr.bf16.mxu0 %v1645_v2  ;;  %1629 = vmatprep.subr.bf16.mxu1 %v1645_v2  ;;  %v1673_v21 = vld [vmem:[%s2123_s0 + $0xb0] sm:$0xff]   ;;  %v1658_v22 = vld [vmem:[%s2123_s0 + $0x38] sm:$0xff]   ;;  %v1659_v24 = vld [vmem:[%s2123_s0 + $0x40] sm:$0xff]  }
   0x9   :  { %v1674_v23 = vld [vmem:[%s2123_s0 + $0xb8] sm:$0xff]   ;;  %v1675_v25 = vld [vmem:[%s2123_s0 + $0xc0] sm:$0xff]   ;;  %v1660_v26 = vld [vmem:[%s2123_s0 + $0x48] sm:$0xff]  }
   0xa   :  { %v1676_v27 = vld [vmem:[%s2123_s0 + $0xc8] sm:$0xff]   ;;  %v1661_v28 = vld [vmem:[%s2123_s0 + $0x50] sm:$0xff]   ;;  %v1662_v30 = vld [vmem:[%s2123_s0 + $0x58] sm:$0xff]  }
   0xb   :  { %1552 = vmatpush3.bf16.msra.mxu0 %v1645_v2  ;;  %1637 = vmatpush3.bf16.msra.mxu1 %v1645_v2  ;;  %v1677_v29 = vld [vmem:[%s2123_s0 + $0xd0] sm:$0xff]   ;;  %v1678_v31 = vld [vmem:[%s2123_s0 + $0xd8] sm:$0xff]   ;;  %v1663_v32 = vld [vmem:[%s2123_s0 + $0x60] sm:$0xff]  }
   0xc   :  { %1553 = vmatprep.subr.bf16.mxu0 %v1646_v3  ;;  %1630 = vmatprep.subr.bf16.mxu1 %v1646_v3  ;;  %v1679_v33 = vld [vmem:[%s2123_s0 + $0xe0] sm:$0xff]   ;;  %v1664_v34 = vld [vmem:[%s2123_s0 + $0x68] sm:$0xff]   ;;  %v1665_v36 = vld [vmem:[%s2123_s0 + $0x70] sm:$0xff]  }
   0xd   :  { %v1680_v35 = vld [vmem:[%s2123_s0 + $0xe8] sm:$0xff]   ;;  %v1681_v37 = vld [vmem:[%s2123_s0 + $0xf0] sm:$0xff]   ;;  %v1666_v38 = vld [vmem:[%s2123_s0 + $0x78] sm:$0xff]  }
   0xe   :  { %v1682_v39 = vld [vmem:[%s2123_s0 + $0xf8] sm:$0xff]  }
   0xf   :  { %1554 = vmatpush3.bf16.msra.mxu0 %v1646_v3  ;;  %1638 = vmatpush3.bf16.msra.mxu1 %v1646_v3 }
  0x10   :  { %1555 = vmatprep.subr.bf16.mxu0 %v1647_v5  ;;  %1631 = vmatprep.subr.bf16.mxu1 %v1647_v5 }
  0x13   :  { %1556 = vmatpush3.bf16.msra.mxu0 %v1647_v5  ;;  %1639 = vmatpush3.bf16.msra.mxu1 %v1647_v5 }
  0x14   :  { %1557 = vmatprep.subr.bf16.mxu0 %v1648_v6  ;;  %1632 = vmatprep.subr.bf16.mxu1 %v1648_v6 }
  0x17   :  { %1558 = vmatpush3.bf16.msra.mxu0 %v1648_v6  ;;  %1640 = vmatpush3.bf16.msra.mxu1 %v1648_v6 }
  0x18   :  { %1559 = vmatprep.subr.bf16.mxu0 %v1649_v7  ;;  %1633 = vmatprep.subr.bf16.mxu1 %v1649_v7 }
  0x1b   :  { %1560 = vmatpush3.bf16.msra.mxu0 %v1649_v7  ;;  %1641 = vmatpush3.bf16.msra.mxu1 %v1649_v7 }
  0x1c   :  { %1561 = vmatprep.subr.bf16.mxu0 %v1650_v8  ;;  %1634 = vmatprep.subr.bf16.mxu1 %v1650_v8 }
  0x1f   :  { %1562 = vmatpush3.bf16.msra.mxu0 %v1650_v8  ;;  %1642 = vmatpush3.bf16.msra.mxu1 %v1650_v8 }
  0x22   :  { %1564 = vmatmul.mubr.bf16.vlgmr.msra.gmra.mrb[0].mxu0 %v1652_v10  ;;  %1596 = vmatmul.mubr.bf16.vlgmr.msra.gmra.mrb[0].mxu1 %v1668_v12 }
  0x23   :  { %1567 = vmatprep.mubr.bf16.mxu0 %v1653_v11  ;;  %1599 = vmatprep.mubr.bf16.mxu1 %v1669_v13 }
  0x2a   :  { %1568 = vmatmul.mubr.bf16.gmra.mrb[4].mxu0 %v1654_v14  ;;  %1600 = vmatmul.mubr.bf16.gmra.mrb[4].mxu1 %v1670_v16 }
  0x2b   :  { %1571 = vmatprep.mubr.bf16.mxu0 %v1655_v15  ;;  %1603 = vmatprep.mubr.bf16.mxu1 %v1671_v17 }
  0x32   :  { %1572 = vmatmul.mubr.bf16.gmra.mrb[8].mxu0 %v1656_v18  ;;  %1604 = vmatmul.mubr.bf16.gmra.mrb[8].mxu1 %v1672_v19 }
  0x33   :  { %1575 = vmatprep.mubr.bf16.mxu0 %v1657_v20  ;;  %1607 = vmatprep.mubr.bf16.mxu1 %v1673_v21 }
  0x3a   :  { %1576 = vmatmul.mubr.bf16.gmra.mrb[12].mxu0 %v1658_v22  ;;  %1608 = vmatmul.mubr.bf16.gmra.mrb[12].mxu1 %v1674_v23 }
  0x3b   :  { %1579 = vmatprep.mubr.bf16.mxu0 %v1659_v24  ;;  %1611 = vmatprep.mubr.bf16.mxu1 %v1675_v25 }
  0x42   :  { %1580 = vmatmul.mubr.bf16.gmra.mrb[16].mxu0 %v1660_v26  ;;  %1612 = vmatmul.mubr.bf16.gmra.mrb[16].mxu1 %v1676_v27 }
  0x43   :  { %1583 = vmatprep.mubr.bf16.mxu0 %v1661_v28  ;;  %1615 = vmatprep.mubr.bf16.mxu1 %v1677_v29 }
  0x4a   :  { %1584 = vmatmul.mubr.bf16.gmra.mrb[20].mxu0 %v1662_v30  ;;  %1616 = vmatmul.mubr.bf16.gmra.mrb[20].mxu1 %v1678_v31 }
  0x4b   :  { %1587 = vmatprep.mubr.bf16.mxu0 %v1663_v32  ;;  %1619 = vmatprep.mubr.bf16.mxu1 %v1679_v33 }
  0x52   :  { %1588 = vmatmul.mubr.bf16.gmra.mrb[24].mxu0 %v1664_v34  ;;  %1620 = vmatmul.mubr.bf16.gmra.mrb[24].mxu1 %v1680_v35 }
  0x53   :  { %1591 = vmatprep.mubr.bf16.mxu0 %v1665_v36  ;;  %1623 = vmatprep.mubr.bf16.mxu1 %v1681_v37 }
  0x5a   :  { %1592 = vmatmul.mubr.bf16.gmra.mrb[28].mxu0 %v1666_v38  ;;  %1624 = vmatmul.mubr.bf16.gmra.mrb[28].mxu1 %v1682_v39 }
  0xf5   :  { %v1565_v40 = vpop.f32.mrb[0].mxu0  ;;  %v1828_v41 = vpop.f32.mrb[0].mxu1 }
  0xf6   :  { %v369_v42 = vpop.f32.mrb[1].mxu0  ;;  %v1830_v43 = vpop.f32.mrb[1].mxu1  ;;  %v1010_v55 = vmul.f32 %v1565_v40, %v1565_v40 }
  0xf7   :  { %v1566_v44 = vpop.f32.mrb[2].mxu0  ;;  %v1832_v45 = vpop.f32.mrb[2].mxu1  ;;  %v1008_v46 = vmul.f32 %v369_v42, %v369_v42 }
  0xf8   :  { %v1324_v47 = vpack.c.bf16 %v1566_v44, %v1565_v40  ;;  %v372_v48 = vpop.f32.mrb[3].mxu0  ;;  %v1404_v49 = vpack.c.bf16 %v1832_v45, %v1828_v41  ;;  %v1836_v50 = vpop.f32.mrb[3].mxu1  ;;  %v1011_v58 = vmul.f32 %v1566_v44, %v1566_v44 }
  0xf9   :  { %v1319_v51 = vpack.c.bf16 %v372_v48, %v369_v42  ;;  %v944_v52 = vadd.f32 %v372_v48, %v369_v42  ;;  %v1009_v53 = vmul.f32 %v372_v48, %v372_v48  ;;  %v1399_v54 = vpack.c.bf16 %v1836_v50, %v1830_v43 }
  0xfa   :  { %1476 = vst [vmem:[%s2124_s2 + $0x8] sm:$0xff] %v1324_v47   ;;  %1492 = vst [vmem:[%s2124_s2 + $0x88] sm:$0xff] %v1404_v49  }
  0xfb   :  { %1320 = vst [vmem:[%s2124_s2] sm:$0xff] %v1319_v51   ;;  %v945_v56 = vadd.f32 %v1565_v40, %v944_v52  ;;  %v1072_v57 = vadd.f32 %v1009_v53, %v1008_v46  ;;  %1491 = vst [vmem:[%s2124_s2 + $0x80] sm:$0xff] %v1399_v54  }
  0xfd   :  { %v1073_v59 = vadd.f32 %v1072_v57, %v1010_v55  ;;  %v1569_v60 = vpop.f32.mrb[4].mxu0  ;;  %v946_v61 = vadd.f32 %v1566_v44, %v945_v56  ;;  %v1852_v62 = vpop.f32.mrb[4].mxu1 }
  0xfe   :  { %v385_v63 = vpop.f32.mrb[5].mxu0  ;;  %v1854_v0 = vpop.f32.mrb[5].mxu1  ;;  %v1014_v15 = vmul.f32 %v1569_v60, %v1569_v60 }
  0xff   :  { %v947_v1 = vadd.f32 %v946_v61, %v385_v63  ;;  %v1012_v2 = vmul.f32 %v385_v63, %v385_v63  ;;  %v1074_v3 = vadd.f32 %v1073_v59, %v1011_v58  ;;  %v1570_v4 = vpop.f32.mrb[6].mxu0  ;;  %v1856_v5 = vpop.f32.mrb[6].mxu1 }
 0x100   :  { %v1334_v6 = vpack.c.bf16 %v1570_v4, %v1569_v60  ;;  %v388_v7 = vpop.f32.mrb[7].mxu0  ;;  %v1414_v8 = vpack.c.bf16 %v1856_v5, %v1852_v62  ;;  %v1860_v9 = vpop.f32.mrb[7].mxu1  ;;  %v1015_v18 = vmul.f32 %v1570_v4, %v1570_v4 }
 0x101   :  { %v1075_v10 = vadd.f32 %v1074_v3, %v1012_v2  ;;  %v1329_v11 = vpack.c.bf16 %v388_v7, %v385_v63  ;;  %v948_v12 = vadd.f32 %v947_v1, %v388_v7  ;;  %v1013_v13 = vmul.f32 %v388_v7, %v388_v7 }
 0x102   :  { %1478 = vst [vmem:[%s2124_s2 + $0x18] sm:$0xff] %v1334_v6   ;;  %1494 = vst [vmem:[%s2124_s2 + $0x98] sm:$0xff] %v1414_v8   ;;  %v1409_v14 = vpack.c.bf16 %v1860_v9, %v1854_v0 }
 0x103   :  { %1477 = vst [vmem:[%s2124_s2 + $0x10] sm:$0xff] %v1329_v11   ;;  %v949_v16 = vadd.f32 %v1569_v60, %v948_v12  ;;  %v1076_v17 = vadd.f32 %v1075_v10, %v1013_v13 }
 0x104   :  { %1493 = vst [vmem:[%s2124_s2 + $0x90] sm:$0xff] %v1409_v14  }
 0x105   :  { %v1077_v19 = vadd.f32 %v1076_v17, %v1014_v15  ;;  %v1573_v20 = vpop.f32.mrb[8].mxu0  ;;  %v950_v21 = vadd.f32 %v1570_v4, %v949_v16  ;;  %v1876_v22 = vpop.f32.mrb[8].mxu1 }
 0x106   :  { %v401_v23 = vpop.f32.mrb[9].mxu0  ;;  %v1878_v24 = vpop.f32.mrb[9].mxu1  ;;  %v1018_v39 = vmul.f32 %v1573_v20, %v1573_v20 }
 0x107   :  { %v951_v25 = vadd.f32 %v950_v21, %v401_v23  ;;  %v1016_v26 = vmul.f32 %v401_v23, %v401_v23  ;;  %v1078_v27 = vadd.f32 %v1077_v19, %v1015_v18  ;;  %v1574_v28 = vpop.f32.mrb[10].mxu0  ;;  %v1880_v29 = vpop.f32.mrb[10].mxu1 }
 0x108   :  { %v1344_v30 = vpack.c.bf16 %v1574_v28, %v1573_v20  ;;  %v404_v31 = vpop.f32.mrb[11].mxu0  ;;  %v1424_v32 = vpack.c.bf16 %v1880_v29, %v1876_v22  ;;  %v1884_v33 = vpop.f32.mrb[11].mxu1  ;;  %v1019_v44 = vmul.f32 %v1574_v28, %v1574_v28 }
 0x109   :  { %v1079_v34 = vadd.f32 %v1078_v27, %v1016_v26  ;;  %v1339_v35 = vpack.c.bf16 %v404_v31, %v401_v23  ;;  %v952_v36 = vadd.f32 %v951_v25, %v404_v31  ;;  %v1017_v37 = vmul.f32 %v404_v31, %v404_v31 }
 0x10a   :  { %1480 = vst [vmem:[%s2124_s2 + $0x28] sm:$0xff] %v1344_v30   ;;  %1496 = vst [vmem:[%s2124_s2 + $0xa8] sm:$0xff] %v1424_v32   ;;  %v1419_v38 = vpack.c.bf16 %v1884_v33, %v1878_v24 }
 0x10b   :  { %1479 = vst [vmem:[%s2124_s2 + $0x20] sm:$0xff] %v1339_v35   ;;  %v953_v40 = vadd.f32 %v1573_v20, %v952_v36  ;;  %v1080_v42 = vadd.f32 %v1079_v34, %v1017_v37 }
 0x10c   :  { %1495 = vst [vmem:[%s2124_s2 + $0xa0] sm:$0xff] %v1419_v38  }
 0x10d   :  { %v1081_v46 = vadd.f32 %v1080_v42, %v1018_v39  ;;  %v1577_v47 = vpop.f32.mrb[12].mxu0  ;;  %v954_v48 = vadd.f32 %v1574_v28, %v953_v40  ;;  %v1900_v49 = vpop.f32.mrb[12].mxu1 }
 0x10e   :  { %v417_v51 = vpop.f32.mrb[13].mxu0  ;;  %v1902_v52 = vpop.f32.mrb[13].mxu1  ;;  %v1022_v6 = vmul.f32 %v1577_v47, %v1577_v47 }
 0x10f   :  { %v955_v53 = vadd.f32 %v954_v48, %v417_v51  ;;  %v1020_v54 = vmul.f32 %v417_v51, %v417_v51  ;;  %v1082_v55 = vadd.f32 %v1081_v46, %v1019_v44  ;;  %v1578_v56 = vpop.f32.mrb[14].mxu0  ;;  %v1904_v57 = vpop.f32.mrb[14].mxu1 }
 0x110   :  { %v1354_v58 = vpack.c.bf16 %v1578_v56, %v1577_v47  ;;  %v420_v59 = vpop.f32.mrb[15].mxu0  ;;  %v1434_v60 = vpack.c.bf16 %v1904_v57, %v1900_v49  ;;  %v1908_v61 = vpop.f32.mrb[15].mxu1  ;;  %v1023_v10 = vmul.f32 %v1578_v56, %v1578_v56 }
 0x111   :  { %v1083_v63 = vadd.f32 %v1082_v55, %v1020_v54  ;;  %v1349_v1 = vpack.c.bf16 %v420_v59, %v417_v51  ;;  %v956_v2 = vadd.f32 %v955_v53, %v420_v59  ;;  %v1021_v3 = vmul.f32 %v420_v59, %v420_v59 }
 0x112   :  { %1482 = vst [vmem:[%s2124_s2 + $0x38] sm:$0xff] %v1354_v58   ;;  %1498 = vst [vmem:[%s2124_s2 + $0xb8] sm:$0xff] %v1434_v60   ;;  %v1429_v4 = vpack.c.bf16 %v1908_v61, %v1902_v52 }
 0x113   :  { %1481 = vst [vmem:[%s2124_s2 + $0x30] sm:$0xff] %v1349_v1   ;;  %v957_v7 = vadd.f32 %v1577_v47, %v956_v2  ;;  %v1084_v8 = vadd.f32 %v1083_v63, %v1021_v3 }
 0x114   :  { %1497 = vst [vmem:[%s2124_s2 + $0xb0] sm:$0xff] %v1429_v4  }
 0x115   :  { %v1085_v11 = vadd.f32 %v1084_v8, %v1022_v6  ;;  %v1581_v12 = vpop.f32.mrb[16].mxu0  ;;  %v958_v13 = vadd.f32 %v1578_v56, %v957_v7  ;;  %v1924_v14 = vpop.f32.mrb[16].mxu1 }
 0x116   :  { %v433_v15 = vpop.f32.mrb[17].mxu0  ;;  %v1926_v16 = vpop.f32.mrb[17].mxu1  ;;  %v1026_v35 = vmul.f32 %v1581_v12, %v1581_v12 }
 0x117   :  { %v959_v17 = vadd.f32 %v958_v13, %v433_v15  ;;  %v1024_v18 = vmul.f32 %v433_v15, %v433_v15  ;;  %v1086_v19 = vadd.f32 %v1085_v11, %v1023_v10  ;;  %v1582_v20 = vpop.f32.mrb[18].mxu0  ;;  %v1928_v21 = vpop.f32.mrb[18].mxu1 }
 0x118   :  { %v1364_v23 = vpack.c.bf16 %v1582_v20, %v1581_v12  ;;  %v436_v25 = vpop.f32.mrb[19].mxu0  ;;  %v1444_v26 = vpack.c.bf16 %v1928_v21, %v1924_v14  ;;  %v1932_v27 = vpop.f32.mrb[19].mxu1  ;;  %v1027_v38 = vmul.f32 %v1582_v20, %v1582_v20 }
 0x119   :  { %v1087_v28 = vadd.f32 %v1086_v19, %v1024_v18  ;;  %v1359_v30 = vpack.c.bf16 %v436_v25, %v433_v15  ;;  %v960_v31 = vadd.f32 %v959_v17, %v436_v25  ;;  %v1025_v32 = vmul.f32 %v436_v25, %v436_v25 }
 0x11a   :  { %1484 = vst [vmem:[%s2124_s2 + $0x48] sm:$0xff] %v1364_v23   ;;  %1500 = vst [vmem:[%s2124_s2 + $0xc8] sm:$0xff] %v1444_v26   ;;  %v1439_v34 = vpack.c.bf16 %v1932_v27, %v1926_v16 }
 0x11b   :  { %1483 = vst [vmem:[%s2124_s2 + $0x40] sm:$0xff] %v1359_v30   ;;  %v961_v36 = vadd.f32 %v1581_v12, %v960_v31  ;;  %v1088_v37 = vadd.f32 %v1087_v28, %v1025_v32 }
 0x11c   :  { %1499 = vst [vmem:[%s2124_s2 + $0xc0] sm:$0xff] %v1439_v34  }
 0x11d   :  { %v1089_v39 = vadd.f32 %v1088_v37, %v1026_v35  ;;  %v1585_v40 = vpop.f32.mrb[20].mxu0  ;;  %v962_v42 = vadd.f32 %v1582_v20, %v961_v36  ;;  %v1948_v44 = vpop.f32.mrb[20].mxu1 }
 0x11e   :  { %v449_v46 = vpop.f32.mrb[21].mxu0  ;;  %v1950_v47 = vpop.f32.mrb[21].mxu1  ;;  %v1030_v6 = vmul.f32 %v1585_v40, %v1585_v40 }
 0x11f   :  { %v963_v48 = vadd.f32 %v962_v42, %v449_v46  ;;  %v1028_v51 = vmul.f32 %v449_v46, %v449_v46  ;;  %v1090_v53 = vadd.f32 %v1089_v39, %v1027_v38  ;;  %v1586_v54 = vpop.f32.mrb[22].mxu0  ;;  %v1952_v55 = vpop.f32.mrb[22].mxu1 }
 0x120   :  { %v1374_v56 = vpack.c.bf16 %v1586_v54, %v1585_v40  ;;  %v452_v58 = vpop.f32.mrb[23].mxu0  ;;  %v1454_v59 = vpack.c.bf16 %v1952_v55, %v1948_v44  ;;  %v1956_v60 = vpop.f32.mrb[23].mxu1  ;;  %v1031_v10 = vmul.f32 %v1586_v54, %v1586_v54 }
 0x121   :  { %v1091_v63 = vadd.f32 %v1090_v53, %v1028_v51  ;;  %v1369_v1 = vpack.c.bf16 %v452_v58, %v449_v46  ;;  %v964_v2 = vadd.f32 %v963_v48, %v452_v58  ;;  %v1029_v3 = vmul.f32 %v452_v58, %v452_v58 }
 0x122   :  { %1486 = vst [vmem:[%s2124_s2 + $0x58] sm:$0xff] %v1374_v56   ;;  %1502 = vst [vmem:[%s2124_s2 + $0xd8] sm:$0xff] %v1454_v59   ;;  %v1449_v4 = vpack.c.bf16 %v1956_v60, %v1950_v47 }
 0x123   :  { %1485 = vst [vmem:[%s2124_s2 + $0x50] sm:$0xff] %v1369_v1   ;;  %v965_v7 = vadd.f32 %v1585_v40, %v964_v2  ;;  %v1092_v8 = vadd.f32 %v1091_v63, %v1029_v3 }
 0x124   :  { %1501 = vst [vmem:[%s2124_s2 + $0xd0] sm:$0xff] %v1449_v4  }
 0x125   :  { %v1093_v11 = vadd.f32 %v1092_v8, %v1030_v6  ;;  %v1589_v12 = vpop.f32.mrb[24].mxu0  ;;  %v966_v13 = vadd.f32 %v1586_v54, %v965_v7  ;;  %v1972_v15 = vpop.f32.mrb[24].mxu1 }
 0x126   :  { %v465_v17 = vpop.f32.mrb[25].mxu0  ;;  %v1974_v18 = vpop.f32.mrb[25].mxu1  ;;  %v1034_v39 = vmul.f32 %v1589_v12, %v1589_v12 }
 0x127   :  { %v967_v19 = vadd.f32 %v966_v13, %v465_v17  ;;  %v1032_v20 = vmul.f32 %v465_v17, %v465_v17  ;;  %v1094_v23 = vadd.f32 %v1093_v11, %v1031_v10  ;;  %v1590_v25 = vpop.f32.mrb[26].mxu0  ;;  %v1976_v26 = vpop.f32.mrb[26].mxu1 }
 0x128   :  { %v1384_v28 = vpack.c.bf16 %v1590_v25, %v1589_v12  ;;  %v468_v30 = vpop.f32.mrb[27].mxu0  ;;  %v1464_v31 = vpack.c.bf16 %v1976_v26, %v1972_v15  ;;  %v1980_v32 = vpop.f32.mrb[27].mxu1  ;;  %v1035_v46 = vmul.f32 %v1590_v25, %v1590_v25 }
 0x129   :  { %v1095_v34 = vadd.f32 %v1094_v23, %v1032_v20  ;;  %v1379_v35 = vpack.c.bf16 %v468_v30, %v465_v17  ;;  %v968_v36 = vadd.f32 %v967_v19, %v468_v30  ;;  %v1033_v37 = vmul.f32 %v468_v30, %v468_v30 }
 0x12a   :  { %1488 = vst [vmem:[%s2124_s2 + $0x68] sm:$0xff] %v1384_v28   ;;  %1504 = vst [vmem:[%s2124_s2 + $0xe8] sm:$0xff] %v1464_v31   ;;  %v1459_v38 = vpack.c.bf16 %v1980_v32, %v1974_v18  ;;  %v1040_v31 = vmul.f32 %v1830_v43, %v1830_v43 }
 0x12b   :  { %1487 = vst [vmem:[%s2124_s2 + $0x60] sm:$0xff] %v1379_v35   ;;  %v969_v40 = vadd.f32 %v1589_v12, %v968_v36  ;;  %v1096_v42 = vadd.f32 %v1095_v34, %v1033_v37 }
 0x12c   :  { %1503 = vst [vmem:[%s2124_s2 + $0xe0] sm:$0xff] %v1459_v38   ;;  %v1041_v38 = vmul.f32 %v1836_v50, %v1836_v50 }
 0x12d   :  { %v1097_v48 = vadd.f32 %v1096_v42, %v1034_v39  ;;  %v1593_v51 = vpop.f32.mrb[28].mxu0  ;;  %v970_v53 = vadd.f32 %v1590_v25, %v969_v40  ;;  %v1996_v54 = vpop.f32.mrb[28].mxu1  ;;  %v1042_v39 = vmul.f32 %v1828_v41, %v1828_v41 }
 0x12e   :  { %v481_v56 = vpop.f32.mrb[29].mxu0  ;;  %v1998_v58 = vpop.f32.mrb[29].mxu1  ;;  %v1038_v19 = vmul.f32 %v1593_v51, %v1593_v51 }
 0x12f   :  { %v971_v59 = vadd.f32 %v970_v53, %v481_v56  ;;  %v1036_v63 = vmul.f32 %v481_v56, %v481_v56  ;;  %v1098_v1 = vadd.f32 %v1097_v48, %v1035_v46  ;;  %v1594_v2 = vpop.f32.mrb[30].mxu0  ;;  %v2000_v3 = vpop.f32.mrb[30].mxu1  ;;  %v1043_v46 = vmul.f32 %v1832_v45, %v1832_v45 }
 0x130   :  { %v1394_v4 = vpack.c.bf16 %v1594_v2, %v1593_v51  ;;  %v484_v6 = vpop.f32.mrb[31].mxu0  ;;  %v1474_v7 = vpack.c.bf16 %v2000_v3, %v1996_v54  ;;  %v2004_v8 = vpop.f32.mrb[31].mxu1  ;;  %v1039_v25 = vmul.f32 %v1594_v2, %v1594_v2 }
 0x131   :  { %v1099_v10 = vadd.f32 %v1098_v1, %v1036_v63  ;;  %v1389_v11 = vpack.c.bf16 %v484_v6, %v481_v56  ;;  %v972_v12 = vadd.f32 %v971_v59, %v484_v6  ;;  %v1037_v13 = vmul.f32 %v484_v6, %v484_v6 }
 0x132   :  { %1490 = vst [vmem:[%s2124_s2 + $0x78] sm:$0xff] %v1394_v4   ;;  %1506 = vst [vmem:[%s2124_s2 + $0xf8] sm:$0xff] %v1474_v7   ;;  %v1469_v17 = vpack.c.bf16 %v2004_v8, %v1998_v58  ;;  %v1045_v63 = vmul.f32 %v1860_v9, %v1860_v9 }
 0x133   :  { %1489 = vst [vmem:[%s2124_s2 + $0x70] sm:$0xff] %v1389_v11   ;;  %v973_v20 = vadd.f32 %v1593_v51, %v972_v12  ;;  %v1100_v23 = vadd.f32 %v1099_v10, %v1037_v13  ;;  %v1049_v12 = vmul.f32 %v1884_v33, %v1884_v33 }
 0x134   :  { %1505 = vst [vmem:[%s2124_s2 + $0xf0] sm:$0xff] %v1469_v17  }
 0x135   :  { %v1101_v28 = vadd.f32 %v1100_v23, %v1038_v19  ;;  %v974_v30 = vadd.f32 %v1594_v2, %v973_v20 }
 0x137   :  { %v975_v34 = vadd.f32 %v974_v30, %v1830_v43  ;;  %v1102_v35 = vadd.f32 %v1101_v28, %v1039_v25  ;;  %v1044_v43 = vmul.f32 %v1854_v0, %v1854_v0  ;;  %v1053_v30 = vmul.f32 %v1908_v61, %v1908_v61 }
 0x139   :  { %v1103_v36 = vadd.f32 %v1102_v35, %v1040_v31  ;;  %v976_v37 = vadd.f32 %v975_v34, %v1836_v50 }
 0x13b   :  { %v977_v40 = vadd.f32 %v1828_v41, %v976_v37  ;;  %v1104_v42 = vadd.f32 %v1103_v36, %v1041_v38  ;;  %v1046_v41 = vmul.f32 %v1852_v62, %v1852_v62 }
 0x13d   :  { %v1105_v48 = vadd.f32 %v1104_v42, %v1042_v39  ;;  %v978_v51 = vadd.f32 %v1832_v45, %v977_v40  ;;  %v1047_v45 = vmul.f32 %v1856_v5, %v1856_v5  ;;  %v1057_v40 = vmul.f32 %v1932_v27, %v1932_v27 }
 0x13f   :  { %v979_v53 = vadd.f32 %v978_v51, %v1854_v0  ;;  %v1106_v56 = vadd.f32 %v1105_v48, %v1043_v46  ;;  %v1048_v0 = vmul.f32 %v1878_v24, %v1878_v24 }
 0x141   :  { %v1107_v59 = vadd.f32 %v1106_v56, %v1044_v43  ;;  %v980_v50 = vadd.f32 %v979_v53, %v1860_v9 }
 0x143   :  { %v981_v1 = vadd.f32 %v1852_v62, %v980_v50  ;;  %v1108_v2 = vadd.f32 %v1107_v59, %v1045_v63  ;;  %v1050_v62 = vmul.f32 %v1876_v22, %v1876_v22  ;;  %v1061_v59 = vmul.f32 %v1956_v60, %v1956_v60 }
 0x145   :  { %v1109_v4 = vadd.f32 %v1108_v2, %v1046_v41  ;;  %v982_v6 = vadd.f32 %v1856_v5, %v981_v1  ;;  %v1051_v5 = vmul.f32 %v1880_v29, %v1880_v29 }
 0x147   :  { %v983_v7 = vadd.f32 %v982_v6, %v1878_v24  ;;  %v1110_v10 = vadd.f32 %v1109_v4, %v1047_v45  ;;  %v1052_v24 = vmul.f32 %v1902_v52, %v1902_v52  ;;  %v1065_v6 = vmul.f32 %v1980_v32, %v1980_v32 }
 0x149   :  { %v1111_v11 = vadd.f32 %v1110_v10, %v1048_v0  ;;  %v984_v9 = vadd.f32 %v983_v7, %v1884_v33 }
 0x14b   :  { %v985_v13 = vadd.f32 %v1876_v22, %v984_v9  ;;  %v1112_v17 = vadd.f32 %v1111_v11, %v1049_v12  ;;  %v1054_v22 = vmul.f32 %v1900_v49, %v1900_v49 }
 0x14d   :  { %v1113_v19 = vadd.f32 %v1112_v17, %v1050_v62  ;;  %v986_v20 = vadd.f32 %v1880_v29, %v985_v13  ;;  %v1055_v29 = vmul.f32 %v1904_v57, %v1904_v57  ;;  %v1069_v13 = vmul.f32 %v2004_v8, %v2004_v8 }
 0x14f   :  { %v987_v23 = vadd.f32 %v986_v20, %v1902_v52  ;;  %v1114_v25 = vadd.f32 %v1113_v19, %v1051_v5  ;;  %v1056_v52 = vmul.f32 %v1926_v16, %v1926_v16 }
 0x151   :  { %v1115_v28 = vadd.f32 %v1114_v25, %v1052_v24  ;;  %v988_v33 = vadd.f32 %v987_v23, %v1908_v61 }
 0x153   :  { %v989_v31 = vadd.f32 %v1900_v49, %v988_v33  ;;  %v1116_v34 = vadd.f32 %v1115_v28, %v1053_v30  ;;  %v1058_v49 = vmul.f32 %v1924_v14, %v1924_v14 }
 0x155   :  { %v1117_v35 = vadd.f32 %v1116_v34, %v1054_v22  ;;  %v990_v36 = vadd.f32 %v1904_v57, %v989_v31  ;;  %v1059_v57 = vmul.f32 %v1928_v21, %v1928_v21 }
 0x157   :  { %v991_v37 = vadd.f32 %v990_v36, %v1926_v16  ;;  %v1118_v38 = vadd.f32 %v1117_v35, %v1055_v29  ;;  %v1060_v16 = vmul.f32 %v1950_v47, %v1950_v47 }
 0x159   :  { %v1119_v39 = vadd.f32 %v1118_v38, %v1056_v52  ;;  %v992_v61 = vadd.f32 %v991_v37, %v1932_v27 }
 0x15b   :  { %v993_v42 = vadd.f32 %v1924_v14, %v992_v61  ;;  %v1120_v46 = vadd.f32 %v1119_v39, %v1057_v40  ;;  %v1062_v14 = vmul.f32 %v1948_v44, %v1948_v44 }
 0x15d   :  { %v1121_v48 = vadd.f32 %v1120_v46, %v1058_v49  ;;  %v994_v51 = vadd.f32 %v1928_v21, %v993_v42  ;;  %v1063_v21 = vmul.f32 %v1952_v55, %v1952_v55 }
 0x15f   :  { %v995_v43 = vadd.f32 %v994_v51, %v1950_v47  ;;  %v1122_v53 = vadd.f32 %v1121_v48, %v1059_v57  ;;  %v1064_v47 = vmul.f32 %v1974_v18, %v1974_v18 }
 0x161   :  { %v1123_v56 = vadd.f32 %v1122_v53, %v1060_v16  ;;  %v996_v27 = vadd.f32 %v995_v43, %v1956_v60 }
 0x163   :  { %v997_v50 = vadd.f32 %v1948_v44, %v996_v27  ;;  %v1124_v63 = vadd.f32 %v1123_v56, %v1061_v59  ;;  %v1066_v44 = vmul.f32 %v1972_v15, %v1972_v15 }
 0x165   :  { %v1125_v41 = vadd.f32 %v1124_v63, %v1062_v14  ;;  %v998_v1 = vadd.f32 %v1952_v55, %v997_v50  ;;  %v1067_v55 = vmul.f32 %v1976_v26, %v1976_v26 }
 0x167   :  { %v999_v2 = vadd.f32 %v998_v1, %v1974_v18  ;;  %v1126_v45 = vadd.f32 %v1125_v41, %v1063_v21  ;;  %v1068_v18 = vmul.f32 %v1998_v58, %v1998_v58 }
 0x169   :  { %v1127_v4 = vadd.f32 %v1126_v45, %v1064_v47  ;;  %v1000_v60 = vadd.f32 %v999_v2, %v1980_v32 }
 0x16b   :  { %v1001_v0 = vadd.f32 %v1972_v15, %v1000_v60  ;;  %v1128_v7 = vadd.f32 %v1127_v4, %v1065_v6  ;;  %v1070_v15 = vmul.f32 %v1996_v54, %v1996_v54 }
 0x16d   :  { %v1129_v10 = vadd.f32 %v1128_v7, %v1066_v44  ;;  %v1002_v11 = vadd.f32 %v1976_v26, %v1001_v0  ;;  %v1071_v26 = vmul.f32 %v2000_v3, %v2000_v3 }
 0x16f   :  { %v1003_v9 = vadd.f32 %v1002_v11, %v1998_v58  ;;  %v1130_v12 = vadd.f32 %v1129_v10, %v1067_v55 }
 0x171   :  { %v1131_v62 = vadd.f32 %v1130_v12, %v1068_v18  ;;  %v1004_v32 = vadd.f32 %v1003_v9, %v2004_v8 }
 0x173   :  { %v1005_v17 = vadd.f32 %v1996_v54, %v1004_v32  ;;  %v1132_v5 = vadd.f32 %v1131_v62, %v1069_v13 }
 0x175   :  { %v1006_v19 = vadd.f32 %v2000_v3, %v1005_v17  ;;  %v1133_v20 = vadd.f32 %v1132_v5, %v1070_v15 }
 0x177   :  { %1007 = vst [vmem:[%s2125_s3] sm:$0xff] %v1006_v19  ;;  %v1134_v58 = vadd.f32 %v1133_v20, %v1071_v26 }
 0x179   :  { %1135 = vst [vmem:[%s2126_s4] sm:$0xff] %v1134_v58 }

// kernel: bottleneck_block.7
= control target key start
LH: loop header
LB: loop body
LE: loop exit
PB: predicated region body
PF: predicated region fallthrough
CT: control target
= control target key end

     0   :  { %s1478_s0 = inlined_call_operand.vmem [shape: bf16[512,128], index: 0, kind: input, shape index: {}]   ;;  %s1479_s1 = inlined_call_operand.vmem [shape: bf16[512,128], index: 1, kind: input, shape index: {}]   ;;  %s1480_s2 = inlined_call_operand.vmem [shape: f32[1,128], index: 2, kind: input, shape index: {}]   ;;  %s1481_s3 = inlined_call_operand.vmem [shape: f32[1,128], index: 3, kind: input, shape index: {}]   ;;  %s1482_s4 = inlined_call_operand.vmem [shape: f32[512,128], index: 4, kind: output, shape index: {}]  }
   0x1   :  { %v614_v0 = vld [vmem:[%s1478_s0] sm:$0xff]   ;;  %v869_v5 = vld [vmem:[%s1478_s0 + $0x8] sm:$0xff]   ;;  %v870_v12 = vld [vmem:[%s1478_s0 + $0x10] sm:$0xff]  }
   0x2   :  { %v962_v1 = vld [vmem:[%s1480_s2] ss:$0 sm:$0xff]  ;;  %v615_v2 = vunpack.c.l.bf16 %v614_v0  ;;  %v616_v4 = vunpack.c.h.bf16 %v614_v0  ;;  %v900_v6 = vld [vmem:[%s1479_s1 + $0x8] sm:$0xff]   ;;  %v619_v10 = vunpack.c.l.bf16 %v869_v5  ;;  %v901_v13 = vld [vmem:[%s1479_s1 + $0x10] sm:$0xff]   ;;  %v620_v16 = vunpack.c.h.bf16 %v869_v5 }
   0x3   :  { %v742_v3 = vld [vmem:[%s1479_s1] sm:$0xff]   ;;  %v747_v11 = vunpack.c.l.bf16 %v900_v6  ;;  %v748_v17 = vunpack.c.h.bf16 %v900_v6  ;;  %v871_v18 = vld [vmem:[%s1478_s0 + $0x18] sm:$0xff]   ;;  %v623_v20 = vunpack.c.l.bf16 %v870_v12  ;;  %v751_v21 = vunpack.c.l.bf16 %v901_v13  ;;  %v873_v54 = vld [vmem:[%s1478_s0 + $0x28] sm:$0xff]  }
   0x4   :  { %v976_v7 = vld [vmem:[%s1481_s3] ss:$0 sm:$0xff]  ;;  %v743_v8 = vunpack.c.l.bf16 %v742_v3  ;;  %v744_v9 = vunpack.c.h.bf16 %v742_v3  ;;  %v152_v14 = vmul.f32 %v615_v2, %v962_v1  ;;  %v153_v15 = vmul.f32 %v616_v4, %v962_v1  ;;  %v902_v23 = vld [vmem:[%s1479_s1 + $0x18] sm:$0xff]   ;;  %v904_v55 = vld [vmem:[%s1479_s1 + $0x28] sm:$0xff]  }
   0x5   :  { %v154_v19 = vmul.f32 %v619_v10, %v962_v1  ;;  %v624_v22 = vunpack.c.h.bf16 %v870_v12  ;;  %v155_v26 = vmul.f32 %v620_v16, %v962_v1  ;;  %v752_v27 = vunpack.c.h.bf16 %v901_v13  ;;  %v872_v40 = vld [vmem:[%s1478_s0 + $0x20] sm:$0xff]   ;;  %v874_v0 = vld [vmem:[%s1478_s0 + $0x30] sm:$0xff]   ;;  %v875_v16 = vld [vmem:[%s1478_s0 + $0x38] sm:$0xff]  }
   0x6   :  { %v223_v24 = vadd.f32 %v976_v7, %v152_v14  ;;  %v224_v25 = vadd.f32 %v976_v7, %v153_v15  ;;  %v156_v29 = vmul.f32 %v623_v20, %v962_v1  ;;  %v627_v31 = vunpack.c.l.bf16 %v871_v18  ;;  %v903_v45 = vld [vmem:[%s1479_s1 + $0x20] sm:$0xff]   ;;  %v905_v2 = vld [vmem:[%s1479_s1 + $0x30] sm:$0xff]  }
   0x7   :  { %v225_v28 = vadd.f32 %v976_v7, %v154_v19  ;;  %v157_v30 = vmul.f32 %v624_v22, %v962_v1  ;;  %v226_v34 = vadd.f32 %v976_v7, %v155_v26  ;;  %v755_v35 = vunpack.c.l.bf16 %v902_v23 }
   0x8   :  { %v415_v32 = vadd.f32 %v743_v8, %v223_v24  ;;  %v416_v33 = vadd.f32 %v744_v9, %v224_v25  ;;  %v227_v37 = vadd.f32 %v976_v7, %v156_v29  ;;  %v158_v39 = vmul.f32 %v627_v31, %v962_v1 }
   0x9   :  { %v417_v36 = vadd.f32 %v747_v11, %v225_v28  ;;  %v228_v38 = vadd.f32 %v976_v7, %v157_v30  ;;  %v418_v43 = vadd.f32 %v748_v17, %v226_v34  ;;  %v628_v44 = vunpack.c.h.bf16 %v871_v18  ;;  %v876_v34 = vld [vmem:[%s1478_s0 + $0x40] sm:$0xff]  }
   0xa   :  { %v479_v41 = vmax.f32 %v415_v32, 0.0  ;;  %v480_v42 = vmax.f32 %v416_v33, 0.0  ;;  %v419_v47 = vadd.f32 %v751_v21, %v227_v37  ;;  %v229_v49 = vadd.f32 %v976_v7, %v158_v39  ;;  %v906_v21 = vld [vmem:[%s1479_s1 + $0x38] sm:$0xff]   ;;  %v907_v39 = vld [vmem:[%s1479_s1 + $0x40] sm:$0xff]  }
   0xb   :  { %v481_v46 = vmax.f32 %v417_v36, 0.0  ;;  %v420_v48 = vadd.f32 %v752_v27, %v228_v38  ;;  %v482_v50 = vmax.f32 %v418_v43, 0.0  ;;  %v159_v51 = vmul.f32 %v628_v44, %v962_v1 }
   0xc   :  { %543 = vst [vmem:[%s1482_s4] sm:$0xff] %v479_v41  ;;  %544 = vst [vmem:[%s1482_s4 + $0x8] sm:$0xff] %v480_v42  ;;  %v756_v52 = vunpack.c.h.bf16 %v902_v23  ;;  %v631_v53 = vunpack.c.l.bf16 %v872_v40  ;;  %v483_v56 = vmax.f32 %v419_v47, 0.0  ;;  %v421_v58 = vadd.f32 %v755_v35, %v229_v49  ;;  %v908_v49 = vld [vmem:[%s1479_s1 + $0x48] sm:$0xff]  }
   0xd   :  { %545 = vst [vmem:[%s1482_s4 + $0x10] sm:$0xff] %v481_v46  ;;  %v484_v57 = vmax.f32 %v420_v48, 0.0  ;;  %v759_v59 = vunpack.c.l.bf16 %v903_v45  ;;  %546 = vst [vmem:[%s1482_s4 + $0x18] sm:$0xff] %v482_v50  ;;  %v230_v60 = vadd.f32 %v976_v7, %v159_v51  ;;  %v632_v62 = vunpack.c.h.bf16 %v872_v40  ;;  %v877_v48 = vld [vmem:[%s1478_s0 + $0x48] sm:$0xff]  }
   0xe   :  { %v160_v61 = vmul.f32 %v631_v53, %v962_v1  ;;  %v760_v63 = vunpack.c.h.bf16 %v903_v45  ;;  %547 = vst [vmem:[%s1482_s4 + $0x20] sm:$0xff] %v483_v56  ;;  %v485_v3 = vmax.f32 %v421_v58, 0.0  ;;  %v635_v4 = vunpack.c.l.bf16 %v873_v54  ;;  %v878_v58 = vld [vmem:[%s1478_s0 + $0x50] sm:$0xff]  }
   0xf   :  { %548 = vst [vmem:[%s1482_s4 + $0x28] sm:$0xff] %v484_v57  ;;  %v763_v5 = vunpack.c.l.bf16 %v904_v55  ;;  %v636_v6 = vunpack.c.h.bf16 %v873_v54  ;;  %v422_v8 = vadd.f32 %v756_v52, %v230_v60  ;;  %v161_v10 = vmul.f32 %v632_v62, %v962_v1 }
  0x10   :  { %v231_v9 = vadd.f32 %v976_v7, %v160_v61  ;;  %v764_v11 = vunpack.c.h.bf16 %v904_v55  ;;  %549 = vst [vmem:[%s1482_s4 + $0x30] sm:$0xff] %v485_v3  ;;  %v162_v12 = vmul.f32 %v635_v4, %v962_v1  ;;  %v639_v14 = vunpack.c.l.bf16 %v874_v0 }
  0x11   :  { %v163_v13 = vmul.f32 %v636_v6, %v962_v1  ;;  %v767_v15 = vunpack.c.l.bf16 %v905_v2  ;;  %v486_v17 = vmax.f32 %v422_v8, 0.0  ;;  %v232_v19 = vadd.f32 %v976_v7, %v161_v10  ;;  %v879_v10 = vld [vmem:[%s1478_s0 + $0x58] sm:$0xff]  }
  0x12   :  { %v423_v18 = vadd.f32 %v759_v59, %v231_v9  ;;  %v640_v20 = vunpack.c.h.bf16 %v874_v0  ;;  %v233_v22 = vadd.f32 %v976_v7, %v162_v12  ;;  %v164_v24 = vmul.f32 %v639_v14, %v962_v1 }
  0x13   :  { %v234_v23 = vadd.f32 %v976_v7, %v163_v13  ;;  %v768_v25 = vunpack.c.h.bf16 %v905_v2  ;;  %550 = vst [vmem:[%s1482_s4 + $0x38] sm:$0xff] %v486_v17  ;;  %v424_v27 = vadd.f32 %v760_v63, %v232_v19  ;;  %v643_v29 = vunpack.c.l.bf16 %v875_v16  ;;  %v909_v63 = vld [vmem:[%s1479_s1 + $0x50] sm:$0xff]   ;;  %v910_v19 = vld [vmem:[%s1479_s1 + $0x58] sm:$0xff]  }
  0x14   :  { %v487_v26 = vmax.f32 %v423_v18, 0.0  ;;  %v165_v28 = vmul.f32 %v640_v20, %v962_v1  ;;  %v425_v30 = vadd.f32 %v763_v5, %v233_v22  ;;  %v235_v32 = vadd.f32 %v976_v7, %v164_v24 }
  0x15   :  { %v426_v31 = vadd.f32 %v764_v11, %v234_v23  ;;  %v771_v33 = vunpack.c.l.bf16 %v906_v21  ;;  %v488_v35 = vmax.f32 %v424_v27, 0.0  ;;  %v166_v37 = vmul.f32 %v643_v29, %v962_v1 }
  0x16   :  { %551 = vst [vmem:[%s1482_s4 + $0x40] sm:$0xff] %v487_v26  ;;  %v236_v36 = vadd.f32 %v976_v7, %v165_v28  ;;  %v644_v38 = vunpack.c.h.bf16 %v875_v16  ;;  %v489_v40 = vmax.f32 %v425_v30, 0.0  ;;  %v427_v42 = vadd.f32 %v767_v15, %v235_v32  ;;  %v880_v28 = vld [vmem:[%s1478_s0 + $0x60] sm:$0xff]  }
  0x17   :  { %v490_v41 = vmax.f32 %v426_v31, 0.0  ;;  %v772_v43 = vunpack.c.h.bf16 %v906_v21  ;;  %552 = vst [vmem:[%s1482_s4 + $0x48] sm:$0xff] %v488_v35  ;;  %v237_v45 = vadd.f32 %v976_v7, %v166_v37  ;;  %v647_v47 = vunpack.c.l.bf16 %v876_v34 }
  0x18   :  { %v428_v44 = vadd.f32 %v768_v25, %v236_v36  ;;  %v167_v46 = vmul.f32 %v644_v38, %v962_v1  ;;  %553 = vst [vmem:[%s1482_s4 + $0x50] sm:$0xff] %v489_v40  ;;  %v491_v50 = vmax.f32 %v427_v42, 0.0  ;;  %v775_v51 = vunpack.c.l.bf16 %v907_v39  ;;  %v881_v42 = vld [vmem:[%s1478_s0 + $0x68] sm:$0xff]  }
  0x19   :  { %554 = vst [vmem:[%s1482_s4 + $0x58] sm:$0xff] %v490_v41  ;;  %v648_v52 = vunpack.c.h.bf16 %v876_v34  ;;  %v776_v53 = vunpack.c.h.bf16 %v907_v39  ;;  %v429_v55 = vadd.f32 %v771_v33, %v237_v45  ;;  %v168_v57 = vmul.f32 %v647_v47, %v962_v1  ;;  %v911_v33 = vld [vmem:[%s1479_s1 + $0x60] sm:$0xff]  }
  0x1a   :  { %v492_v54 = vmax.f32 %v428_v44, 0.0  ;;  %v238_v56 = vadd.f32 %v976_v7, %v167_v46  ;;  %555 = vst [vmem:[%s1482_s4 + $0x60] sm:$0xff] %v491_v50  ;;  %v651_v60 = vunpack.c.l.bf16 %v877_v48  ;;  %v779_v61 = vunpack.c.l.bf16 %v908_v49 }
  0x1b   :  { %v169_v59 = vmul.f32 %v648_v52, %v962_v1  ;;  %v652_v62 = vunpack.c.h.bf16 %v877_v48  ;;  %v493_v0 = vmax.f32 %v429_v55, 0.0  ;;  %v239_v3 = vadd.f32 %v976_v7, %v168_v57  ;;  %v882_v52 = vld [vmem:[%s1478_s0 + $0x70] sm:$0xff]  }
  0x1c   :  { %556 = vst [vmem:[%s1482_s4 + $0x68] sm:$0xff] %v492_v54  ;;  %v430_v2 = vadd.f32 %v772_v43, %v238_v56  ;;  %v780_v4 = vunpack.c.h.bf16 %v908_v49  ;;  %v170_v6 = vmul.f32 %v651_v60, %v962_v1  ;;  %v655_v9 = vunpack.c.l.bf16 %v878_v58  ;;  %v912_v43 = vld [vmem:[%s1479_s1 + $0x68] sm:$0xff]   ;;  %v913_v57 = vld [vmem:[%s1479_s1 + $0x70] sm:$0xff]  }
  0x1d   :  { %v240_v5 = vadd.f32 %v976_v7, %v169_v59  ;;  %v171_v8 = vmul.f32 %v652_v62, %v962_v1  ;;  %557 = vst [vmem:[%s1482_s4 + $0x70] sm:$0xff] %v493_v0  ;;  %v431_v12 = vadd.f32 %v775_v51, %v239_v3  ;;  %v783_v13 = vunpack.c.l.bf16 %v909_v63  ;;  %v883_v3 = vld [vmem:[%s1478_s0 + $0x78] sm:$0xff]  }
  0x1e   :  { %v494_v11 = vmax.f32 %v430_v2, 0.0  ;;  %v656_v14 = vunpack.c.h.bf16 %v878_v58  ;;  %v241_v16 = vadd.f32 %v976_v7, %v170_v6  ;;  %v172_v18 = vmul.f32 %v655_v9, %v962_v1 }
  0x1f   :  { %v432_v15 = vadd.f32 %v776_v53, %v240_v5  ;;  %v242_v17 = vadd.f32 %v976_v7, %v171_v8  ;;  %v495_v20 = vmax.f32 %v431_v12, 0.0  ;;  %v784_v22 = vunpack.c.h.bf16 %v909_v63 }
  0x20   :  { %558 = vst [vmem:[%s1482_s4 + $0x78] sm:$0xff] %v494_v11  ;;  %v173_v21 = vmul.f32 %v656_v14, %v962_v1  ;;  %v659_v23 = vunpack.c.l.bf16 %v879_v10  ;;  %v433_v25 = vadd.f32 %v779_v61, %v241_v16  ;;  %v243_v27 = vadd.f32 %v976_v7, %v172_v18 }
  0x21   :  { %v496_v24 = vmax.f32 %v432_v15, 0.0  ;;  %v434_v26 = vadd.f32 %v780_v4, %v242_v17  ;;  %559 = vst [vmem:[%s1482_s4 + $0x80] sm:$0xff] %v495_v20  ;;  %v787_v31 = vunpack.c.l.bf16 %v910_v19  ;;  %v660_v32 = vunpack.c.h.bf16 %v879_v10 }
  0x22   :  { %v244_v29 = vadd.f32 %v976_v7, %v173_v21  ;;  %v174_v30 = vmul.f32 %v659_v23, %v962_v1  ;;  %v497_v34 = vmax.f32 %v433_v25, 0.0  ;;  %v435_v36 = vadd.f32 %v783_v13, %v243_v27  ;;  %v914_v13 = vld [vmem:[%s1479_s1 + $0x78] sm:$0xff]   ;;  %v915_v27 = vld [vmem:[%s1479_s1 + $0x80] sm:$0xff]  }
  0x23   :  { %560 = vst [vmem:[%s1482_s4 + $0x88] sm:$0xff] %v496_v24  ;;  %v498_v35 = vmax.f32 %v434_v26, 0.0  ;;  %v788_v37 = vunpack.c.h.bf16 %v910_v19  ;;  %v175_v40 = vmul.f32 %v660_v32, %v962_v1  ;;  %v663_v41 = vunpack.c.l.bf16 %v880_v28 }
  0x24   :  { %v436_v38 = vadd.f32 %v784_v22, %v244_v29  ;;  %v245_v39 = vadd.f32 %v976_v7, %v174_v30  ;;  %561 = vst [vmem:[%s1482_s4 + $0x90] sm:$0xff] %v497_v34  ;;  %v499_v44 = vmax.f32 %v435_v36, 0.0  ;;  %v791_v45 = vunpack.c.l.bf16 %v911_v33  ;;  %v884_v22 = vld [vmem:[%s1478_s0 + $0x80] sm:$0xff]   ;;  %v885_v36 = vld [vmem:[%s1478_s0 + $0x88] sm:$0xff]  }
  0x25   :  { %562 = vst [vmem:[%s1482_s4 + $0x98] sm:$0xff] %v498_v35  ;;  %v664_v46 = vunpack.c.h.bf16 %v880_v28  ;;  %v792_v47 = vunpack.c.h.bf16 %v911_v33  ;;  %v246_v50 = vadd.f32 %v976_v7, %v175_v40  ;;  %v176_v51 = vmul.f32 %v663_v41, %v962_v1 }
  0x26   :  { %v500_v48 = vmax.f32 %v436_v38, 0.0  ;;  %v437_v49 = vadd.f32 %v787_v31, %v245_v39  ;;  %563 = vst [vmem:[%s1482_s4 + $0xa0] sm:$0xff] %v499_v44  ;;  %v667_v54 = vunpack.c.l.bf16 %v881_v42  ;;  %v795_v55 = vunpack.c.l.bf16 %v912_v43 }
  0x27   :  { %v177_v53 = vmul.f32 %v664_v46, %v962_v1  ;;  %v668_v56 = vunpack.c.h.bf16 %v881_v42  ;;  %v438_v59 = vadd.f32 %v788_v37, %v246_v50  ;;  %v247_v60 = vadd.f32 %v976_v7, %v176_v51  ;;  %v916_v37 = vld [vmem:[%s1479_s1 + $0x88] sm:$0xff]   ;;  %v886_v46 = vld [vmem:[%s1478_s0 + $0x90] sm:$0xff]  }
  0x28   :  { %564 = vst [vmem:[%s1482_s4 + $0xa8] sm:$0xff] %v500_v48  ;;  %v501_v58 = vmax.f32 %v437_v49, 0.0  ;;  %v796_v61 = vunpack.c.h.bf16 %v912_v43  ;;  %v178_v63 = vmul.f32 %v667_v54, %v962_v1  ;;  %v671_v2 = vunpack.c.l.bf16 %v882_v52  ;;  %v917_v51 = vld [vmem:[%s1479_s1 + $0x90] sm:$0xff]  }
  0x29   :  { %v248_v62 = vadd.f32 %v976_v7, %v177_v53  ;;  %v179_v0 = vmul.f32 %v668_v56, %v962_v1  ;;  %v502_v4 = vmax.f32 %v438_v59, 0.0  ;;  %v439_v5 = vadd.f32 %v791_v45, %v247_v60  ;;  %v887_v60 = vld [vmem:[%s1478_s0 + $0x98] sm:$0xff]  }
  0x2a   :  { %565 = vst [vmem:[%s1482_s4 + $0xb0] sm:$0xff] %v501_v58  ;;  %v799_v6 = vunpack.c.l.bf16 %v913_v57  ;;  %v672_v8 = vunpack.c.h.bf16 %v882_v52  ;;  %v249_v10 = vadd.f32 %v976_v7, %v178_v63  ;;  %v180_v12 = vmul.f32 %v671_v2, %v962_v1 }
  0x2b   :  { %v440_v9 = vadd.f32 %v792_v47, %v248_v62  ;;  %v250_v11 = vadd.f32 %v976_v7, %v179_v0  ;;  %566 = vst [vmem:[%s1482_s4 + $0xb8] sm:$0xff] %v502_v4  ;;  %v503_v14 = vmax.f32 %v439_v5, 0.0  ;;  %v800_v16 = vunpack.c.h.bf16 %v913_v57 }
  0x2c   :  { %v181_v15 = vmul.f32 %v672_v8, %v962_v1  ;;  %v675_v17 = vunpack.c.l.bf16 %v883_v3  ;;  %v441_v19 = vadd.f32 %v795_v55, %v249_v10  ;;  %v251_v21 = vadd.f32 %v976_v7, %v180_v12 }
  0x2d   :  { %v504_v18 = vmax.f32 %v440_v9, 0.0  ;;  %v442_v20 = vadd.f32 %v796_v61, %v250_v11  ;;  %567 = vst [vmem:[%s1482_s4 + $0xc0] sm:$0xff] %v503_v14  ;;  %v803_v25 = vunpack.c.l.bf16 %v914_v13  ;;  %v676_v26 = vunpack.c.h.bf16 %v883_v3 }
  0x2e   :  { %v252_v23 = vadd.f32 %v976_v7, %v181_v15  ;;  %v182_v24 = vmul.f32 %v675_v17, %v962_v1  ;;  %v505_v28 = vmax.f32 %v441_v19, 0.0  ;;  %v443_v30 = vadd.f32 %v799_v6, %v251_v21  ;;  %v918_v6 = vld [vmem:[%s1479_s1 + $0x98] sm:$0xff]   ;;  %v919_v21 = vld [vmem:[%s1479_s1 + $0xa0] sm:$0xff]  }
  0x2f   :  { %568 = vst [vmem:[%s1482_s4 + $0xc8] sm:$0xff] %v504_v18  ;;  %v506_v29 = vmax.f32 %v442_v20, 0.0  ;;  %v804_v31 = vunpack.c.h.bf16 %v914_v13  ;;  %v183_v34 = vmul.f32 %v676_v26, %v962_v1  ;;  %v679_v35 = vunpack.c.l.bf16 %v884_v22 }
  0x30   :  { %v444_v32 = vadd.f32 %v800_v16, %v252_v23  ;;  %v253_v33 = vadd.f32 %v976_v7, %v182_v24  ;;  %569 = vst [vmem:[%s1482_s4 + $0xd0] sm:$0xff] %v505_v28  ;;  %v507_v38 = vmax.f32 %v443_v30, 0.0  ;;  %v807_v39 = vunpack.c.l.bf16 %v915_v27  ;;  %v888_v16 = vld [vmem:[%s1478_s0 + $0xa0] sm:$0xff]   ;;  %v889_v30 = vld [vmem:[%s1478_s0 + $0xa8] sm:$0xff]  }
  0x31   :  { %570 = vst [vmem:[%s1482_s4 + $0xd8] sm:$0xff] %v506_v29  ;;  %v680_v40 = vunpack.c.h.bf16 %v884_v22  ;;  %v808_v41 = vunpack.c.h.bf16 %v915_v27  ;;  %v254_v44 = vadd.f32 %v976_v7, %v183_v34  ;;  %v184_v45 = vmul.f32 %v679_v35, %v962_v1 }
  0x32   :  { %v508_v42 = vmax.f32 %v444_v32, 0.0  ;;  %v445_v43 = vadd.f32 %v803_v25, %v253_v33  ;;  %571 = vst [vmem:[%s1482_s4 + $0xe0] sm:$0xff] %v507_v38  ;;  %v683_v48 = vunpack.c.l.bf16 %v885_v36  ;;  %v811_v49 = vunpack.c.l.bf16 %v916_v37 }
  0x33   :  { %v185_v47 = vmul.f32 %v680_v40, %v962_v1  ;;  %v684_v50 = vunpack.c.h.bf16 %v885_v36  ;;  %v446_v53 = vadd.f32 %v804_v31, %v254_v44  ;;  %v255_v54 = vadd.f32 %v976_v7, %v184_v45  ;;  %v920_v31 = vld [vmem:[%s1479_s1 + $0xa8] sm:$0xff]   ;;  %v890_v40 = vld [vmem:[%s1478_s0 + $0xb0] sm:$0xff]  }
  0x34   :  { %572 = vst [vmem:[%s1482_s4 + $0xe8] sm:$0xff] %v508_v42  ;;  %v509_v52 = vmax.f32 %v445_v43, 0.0  ;;  %v812_v55 = vunpack.c.h.bf16 %v916_v37  ;;  %v186_v57 = vmul.f32 %v683_v48, %v962_v1  ;;  %v687_v59 = vunpack.c.l.bf16 %v886_v46  ;;  %v921_v45 = vld [vmem:[%s1479_s1 + $0xb0] sm:$0xff]  }
  0x35   :  { %v256_v56 = vadd.f32 %v976_v7, %v185_v47  ;;  %v187_v58 = vmul.f32 %v684_v50, %v962_v1  ;;  %v510_v61 = vmax.f32 %v446_v53, 0.0  ;;  %v447_v62 = vadd.f32 %v807_v39, %v255_v54  ;;  %v891_v54 = vld [vmem:[%s1478_s0 + $0xb8] sm:$0xff]  }
  0x36   :  { %573 = vst [vmem:[%s1482_s4 + $0xf0] sm:$0xff] %v509_v52  ;;  %v815_v63 = vunpack.c.l.bf16 %v917_v51  ;;  %v688_v0 = vunpack.c.h.bf16 %v886_v46  ;;  %v257_v3 = vadd.f32 %v976_v7, %v186_v57  ;;  %v188_v5 = vmul.f32 %v687_v59, %v962_v1 }
  0x37   :  { %v448_v2 = vadd.f32 %v808_v41, %v256_v56  ;;  %v258_v4 = vadd.f32 %v976_v7, %v187_v58  ;;  %574 = vst [vmem:[%s1482_s4 + $0xf8] sm:$0xff] %v510_v61  ;;  %v511_v8 = vmax.f32 %v447_v62, 0.0  ;;  %v816_v10 = vunpack.c.h.bf16 %v917_v51 }
  0x38   :  { %v189_v9 = vmul.f32 %v688_v0, %v962_v1  ;;  %v691_v11 = vunpack.c.l.bf16 %v887_v60  ;;  %v449_v13 = vadd.f32 %v811_v49, %v257_v3  ;;  %v259_v15 = vadd.f32 %v976_v7, %v188_v5 }
  0x39   :  { %v512_v12 = vmax.f32 %v448_v2, 0.0  ;;  %v450_v14 = vadd.f32 %v812_v55, %v258_v4  ;;  %575 = vst [vmem:[%s1482_s4 + $0x100] sm:$0xff] %v511_v8  ;;  %v819_v19 = vunpack.c.l.bf16 %v918_v6  ;;  %v692_v20 = vunpack.c.h.bf16 %v887_v60 }
  0x3a   :  { %v260_v17 = vadd.f32 %v976_v7, %v189_v9  ;;  %v190_v18 = vmul.f32 %v691_v11, %v962_v1  ;;  %v513_v22 = vmax.f32 %v449_v13, 0.0  ;;  %v451_v24 = vadd.f32 %v815_v63, %v259_v15  ;;  %v922_v63 = vld [vmem:[%s1479_s1 + $0xb8] sm:$0xff]   ;;  %v923_v15 = vld [vmem:[%s1479_s1 + $0xc0] sm:$0xff]  }
  0x3b   :  { %576 = vst [vmem:[%s1482_s4 + $0x108] sm:$0xff] %v512_v12  ;;  %v514_v23 = vmax.f32 %v450_v14, 0.0  ;;  %v820_v25 = vunpack.c.h.bf16 %v918_v6  ;;  %v191_v28 = vmul.f32 %v692_v20, %v962_v1  ;;  %v695_v29 = vunpack.c.l.bf16 %v888_v16 }
  0x3c   :  { %v452_v26 = vadd.f32 %v816_v10, %v260_v17  ;;  %v261_v27 = vadd.f32 %v976_v7, %v190_v18  ;;  %577 = vst [vmem:[%s1482_s4 + $0x110] sm:$0xff] %v513_v22  ;;  %v515_v32 = vmax.f32 %v451_v24, 0.0  ;;  %v823_v33 = vunpack.c.l.bf16 %v919_v21  ;;  %v892_v10 = vld [vmem:[%s1478_s0 + $0xc0] sm:$0xff]   ;;  %v893_v24 = vld [vmem:[%s1478_s0 + $0xc8] sm:$0xff]  }
  0x3d   :  { %578 = vst [vmem:[%s1482_s4 + $0x118] sm:$0xff] %v514_v23  ;;  %v696_v34 = vunpack.c.h.bf16 %v888_v16  ;;  %v824_v35 = vunpack.c.h.bf16 %v919_v21  ;;  %v262_v38 = vadd.f32 %v976_v7, %v191_v28  ;;  %v192_v39 = vmul.f32 %v695_v29, %v962_v1 }
  0x3e   :  { %v516_v36 = vmax.f32 %v452_v26, 0.0  ;;  %v453_v37 = vadd.f32 %v819_v19, %v261_v27  ;;  %579 = vst [vmem:[%s1482_s4 + $0x120] sm:$0xff] %v515_v32  ;;  %v699_v42 = vunpack.c.l.bf16 %v889_v30  ;;  %v827_v43 = vunpack.c.l.bf16 %v920_v31 }
  0x3f   :  { %v193_v41 = vmul.f32 %v696_v34, %v962_v1  ;;  %v700_v44 = vunpack.c.h.bf16 %v889_v30  ;;  %v454_v47 = vadd.f32 %v820_v25, %v262_v38  ;;  %v263_v48 = vadd.f32 %v976_v7, %v192_v39  ;;  %v924_v25 = vld [vmem:[%s1479_s1 + $0xc8] sm:$0xff]   ;;  %v894_v34 = vld [vmem:[%s1478_s0 + $0xd0] sm:$0xff]  }
  0x40   :  { %580 = vst [vmem:[%s1482_s4 + $0x128] sm:$0xff] %v516_v36  ;;  %v517_v46 = vmax.f32 %v453_v37, 0.0  ;;  %v828_v49 = vunpack.c.h.bf16 %v920_v31  ;;  %v194_v51 = vmul.f32 %v699_v42, %v962_v1  ;;  %v703_v53 = vunpack.c.l.bf16 %v890_v40  ;;  %v925_v39 = vld [vmem:[%s1479_s1 + $0xd0] sm:$0xff]  }
  0x41   :  { %v264_v50 = vadd.f32 %v976_v7, %v193_v41  ;;  %v195_v52 = vmul.f32 %v700_v44, %v962_v1  ;;  %v518_v55 = vmax.f32 %v454_v47, 0.0  ;;  %v455_v56 = vadd.f32 %v823_v33, %v263_v48  ;;  %v895_v48 = vld [vmem:[%s1478_s0 + $0xd8] sm:$0xff]  }
  0x42   :  { %581 = vst [vmem:[%s1482_s4 + $0x130] sm:$0xff] %v517_v46  ;;  %v831_v57 = vunpack.c.l.bf16 %v921_v45  ;;  %v704_v58 = vunpack.c.h.bf16 %v890_v40  ;;  %v265_v60 = vadd.f32 %v976_v7, %v194_v51  ;;  %v196_v62 = vmul.f32 %v703_v53, %v962_v1 }
  0x43   :  { %v456_v59 = vadd.f32 %v824_v35, %v264_v50  ;;  %v266_v61 = vadd.f32 %v976_v7, %v195_v52  ;;  %582 = vst [vmem:[%s1482_s4 + $0x138] sm:$0xff] %v518_v55  ;;  %v519_v0 = vmax.f32 %v455_v56, 0.0  ;;  %v832_v3 = vunpack.c.h.bf16 %v921_v45 }
  0x44   :  { %v197_v2 = vmul.f32 %v704_v58, %v962_v1  ;;  %v707_v4 = vunpack.c.l.bf16 %v891_v54  ;;  %v457_v6 = vadd.f32 %v827_v43, %v265_v60  ;;  %v267_v9 = vadd.f32 %v976_v7, %v196_v62 }
  0x45   :  { %v520_v5 = vmax.f32 %v456_v59, 0.0  ;;  %v458_v8 = vadd.f32 %v828_v49, %v266_v61  ;;  %583 = vst [vmem:[%s1482_s4 + $0x140] sm:$0xff] %v519_v0  ;;  %v835_v13 = vunpack.c.l.bf16 %v922_v63  ;;  %v708_v14 = vunpack.c.h.bf16 %v891_v54 }
  0x46   :  { %v268_v11 = vadd.f32 %v976_v7, %v197_v2  ;;  %v198_v12 = vmul.f32 %v707_v4, %v962_v1  ;;  %v521_v16 = vmax.f32 %v457_v6, 0.0  ;;  %v459_v18 = vadd.f32 %v831_v57, %v267_v9  ;;  %v926_v57 = vld [vmem:[%s1479_s1 + $0xd8] sm:$0xff]   ;;  %v927_v9 = vld [vmem:[%s1479_s1 + $0xe0] sm:$0xff]  }
  0x47   :  { %584 = vst [vmem:[%s1482_s4 + $0x148] sm:$0xff] %v520_v5  ;;  %v522_v17 = vmax.f32 %v458_v8, 0.0  ;;  %v836_v19 = vunpack.c.h.bf16 %v922_v63  ;;  %v199_v22 = vmul.f32 %v708_v14, %v962_v1  ;;  %v711_v23 = vunpack.c.l.bf16 %v892_v10 }
  0x48   :  { %v460_v20 = vadd.f32 %v832_v3, %v268_v11  ;;  %v269_v21 = vadd.f32 %v976_v7, %v198_v12  ;;  %585 = vst [vmem:[%s1482_s4 + $0x150] sm:$0xff] %v521_v16  ;;  %v523_v26 = vmax.f32 %v459_v18, 0.0  ;;  %v839_v27 = vunpack.c.l.bf16 %v923_v15  ;;  %v896_v3 = vld [vmem:[%s1478_s0 + $0xe0] sm:$0xff]   ;;  %v897_v18 = vld [vmem:[%s1478_s0 + $0xe8] sm:$0xff]  }
  0x49   :  { %586 = vst [vmem:[%s1482_s4 + $0x158] sm:$0xff] %v522_v17  ;;  %v712_v28 = vunpack.c.h.bf16 %v892_v10  ;;  %v840_v29 = vunpack.c.h.bf16 %v923_v15  ;;  %v270_v32 = vadd.f32 %v976_v7, %v199_v22  ;;  %v200_v33 = vmul.f32 %v711_v23, %v962_v1 }
  0x4a   :  { %v524_v30 = vmax.f32 %v460_v20, 0.0  ;;  %v461_v31 = vadd.f32 %v835_v13, %v269_v21  ;;  %587 = vst [vmem:[%s1482_s4 + $0x160] sm:$0xff] %v523_v26  ;;  %v715_v36 = vunpack.c.l.bf16 %v893_v24  ;;  %v843_v37 = vunpack.c.l.bf16 %v924_v25 }
  0x4b   :  { %v201_v35 = vmul.f32 %v712_v28, %v962_v1  ;;  %v716_v38 = vunpack.c.h.bf16 %v893_v24  ;;  %v462_v41 = vadd.f32 %v836_v19, %v270_v32  ;;  %v271_v42 = vadd.f32 %v976_v7, %v200_v33  ;;  %v928_v19 = vld [vmem:[%s1479_s1 + $0xe8] sm:$0xff]   ;;  %v898_v28 = vld [vmem:[%s1478_s0 + $0xf0] sm:$0xff]  }
  0x4c   :  { %588 = vst [vmem:[%s1482_s4 + $0x168] sm:$0xff] %v524_v30  ;;  %v525_v40 = vmax.f32 %v461_v31, 0.0  ;;  %v844_v43 = vunpack.c.h.bf16 %v924_v25  ;;  %v202_v45 = vmul.f32 %v715_v36, %v962_v1  ;;  %v719_v47 = vunpack.c.l.bf16 %v894_v34  ;;  %v929_v33 = vld [vmem:[%s1479_s1 + $0xf0] sm:$0xff]  }
  0x4d   :  { %v272_v44 = vadd.f32 %v976_v7, %v201_v35  ;;  %v203_v46 = vmul.f32 %v716_v38, %v962_v1  ;;  %v526_v49 = vmax.f32 %v462_v41, 0.0  ;;  %v463_v50 = vadd.f32 %v839_v27, %v271_v42  ;;  %v899_v42 = vld [vmem:[%s1478_s0 + $0xf8] sm:$0xff]  }
  0x4e   :  { %589 = vst [vmem:[%s1482_s4 + $0x170] sm:$0xff] %v525_v40  ;;  %v847_v51 = vunpack.c.l.bf16 %v925_v39  ;;  %v720_v52 = vunpack.c.h.bf16 %v894_v34  ;;  %v273_v54 = vadd.f32 %v976_v7, %v202_v45  ;;  %v204_v56 = vmul.f32 %v719_v47, %v962_v1 }
  0x4f   :  { %v464_v53 = vadd.f32 %v840_v29, %v272_v44  ;;  %v274_v55 = vadd.f32 %v976_v7, %v203_v46  ;;  %590 = vst [vmem:[%s1482_s4 + $0x178] sm:$0xff] %v526_v49  ;;  %v527_v58 = vmax.f32 %v463_v50, 0.0  ;;  %v848_v60 = vunpack.c.h.bf16 %v925_v39 }
  0x50   :  { %v205_v59 = vmul.f32 %v720_v52, %v962_v1  ;;  %v723_v61 = vunpack.c.l.bf16 %v895_v48  ;;  %v465_v63 = vadd.f32 %v843_v37, %v273_v54  ;;  %v275_v2 = vadd.f32 %v976_v7, %v204_v56 }
  0x51   :  { %v528_v62 = vmax.f32 %v464_v53, 0.0  ;;  %v466_v0 = vadd.f32 %v844_v43, %v274_v55  ;;  %591 = vst [vmem:[%s1482_s4 + $0x180] sm:$0xff] %v527_v58  ;;  %v851_v6 = vunpack.c.l.bf16 %v926_v57  ;;  %v724_v8 = vunpack.c.h.bf16 %v895_v48 }
  0x52   :  { %v276_v4 = vadd.f32 %v976_v7, %v205_v59  ;;  %v206_v5 = vmul.f32 %v723_v61, %v962_v1  ;;  %v529_v10 = vmax.f32 %v465_v63, 0.0  ;;  %v467_v12 = vadd.f32 %v847_v51, %v275_v2  ;;  %v930_v51 = vld [vmem:[%s1479_s1 + $0xf8] sm:$0xff]  }
  0x53   :  { %592 = vst [vmem:[%s1482_s4 + $0x188] sm:$0xff] %v528_v62  ;;  %v530_v11 = vmax.f32 %v466_v0, 0.0  ;;  %v852_v13 = vunpack.c.h.bf16 %v926_v57  ;;  %v207_v16 = vmul.f32 %v724_v8, %v962_v1  ;;  %v727_v17 = vunpack.c.l.bf16 %v896_v3 }
  0x54   :  { %v468_v14 = vadd.f32 %v848_v60, %v276_v4  ;;  %v277_v15 = vadd.f32 %v976_v7, %v206_v5  ;;  %593 = vst [vmem:[%s1482_s4 + $0x190] sm:$0xff] %v529_v10  ;;  %v531_v20 = vmax.f32 %v467_v12, 0.0  ;;  %v855_v21 = vunpack.c.l.bf16 %v927_v9 }
  0x55   :  { %594 = vst [vmem:[%s1482_s4 + $0x198] sm:$0xff] %v530_v11  ;;  %v728_v22 = vunpack.c.h.bf16 %v896_v3  ;;  %v856_v23 = vunpack.c.h.bf16 %v927_v9  ;;  %v278_v26 = vadd.f32 %v976_v7, %v207_v16  ;;  %v208_v27 = vmul.f32 %v727_v17, %v962_v1 }
  0x56   :  { %v532_v24 = vmax.f32 %v468_v14, 0.0  ;;  %v469_v25 = vadd.f32 %v851_v6, %v277_v15  ;;  %595 = vst [vmem:[%s1482_s4 + $0x1a0] sm:$0xff] %v531_v20  ;;  %v731_v30 = vunpack.c.l.bf16 %v897_v18  ;;  %v859_v31 = vunpack.c.l.bf16 %v928_v19 }
  0x57   :  { %v209_v29 = vmul.f32 %v728_v22, %v962_v1  ;;  %v732_v32 = vunpack.c.h.bf16 %v897_v18  ;;  %v470_v35 = vadd.f32 %v852_v13, %v278_v26  ;;  %v279_v36 = vadd.f32 %v976_v7, %v208_v27 }
  0x58   :  { %596 = vst [vmem:[%s1482_s4 + $0x1a8] sm:$0xff] %v532_v24  ;;  %v533_v34 = vmax.f32 %v469_v25, 0.0  ;;  %v860_v37 = vunpack.c.h.bf16 %v928_v19  ;;  %v210_v39 = vmul.f32 %v731_v30, %v962_v1  ;;  %v735_v41 = vunpack.c.l.bf16 %v898_v28 }
  0x59   :  { %v280_v38 = vadd.f32 %v976_v7, %v209_v29  ;;  %v211_v40 = vmul.f32 %v732_v32, %v962_v1  ;;  %v534_v43 = vmax.f32 %v470_v35, 0.0  ;;  %v471_v44 = vadd.f32 %v855_v21, %v279_v36 }
  0x5a   :  { %597 = vst [vmem:[%s1482_s4 + $0x1b0] sm:$0xff] %v533_v34  ;;  %v863_v45 = vunpack.c.l.bf16 %v929_v33  ;;  %v736_v46 = vunpack.c.h.bf16 %v898_v28  ;;  %v281_v48 = vadd.f32 %v976_v7, %v210_v39  ;;  %v212_v50 = vmul.f32 %v735_v41, %v962_v1 }
  0x5b   :  { %v472_v47 = vadd.f32 %v856_v23, %v280_v38  ;;  %v282_v49 = vadd.f32 %v976_v7, %v211_v40  ;;  %598 = vst [vmem:[%s1482_s4 + $0x1b8] sm:$0xff] %v534_v43  ;;  %v535_v52 = vmax.f32 %v471_v44, 0.0  ;;  %v864_v54 = vunpack.c.h.bf16 %v929_v33 }
  0x5c   :  { %v213_v53 = vmul.f32 %v736_v46, %v962_v1  ;;  %v739_v55 = vunpack.c.l.bf16 %v899_v42  ;;  %v473_v57 = vadd.f32 %v859_v31, %v281_v48  ;;  %v283_v59 = vadd.f32 %v976_v7, %v212_v50 }
  0x5d   :  { %v536_v56 = vmax.f32 %v472_v47, 0.0  ;;  %v474_v58 = vadd.f32 %v860_v37, %v282_v49  ;;  %599 = vst [vmem:[%s1482_s4 + $0x1c0] sm:$0xff] %v535_v52  ;;  %v867_v62 = vunpack.c.l.bf16 %v930_v51  ;;  %v740_v63 = vunpack.c.h.bf16 %v899_v42 }
  0x5e   :  { %v284_v60 = vadd.f32 %v976_v7, %v213_v53  ;;  %v214_v61 = vmul.f32 %v739_v55, %v962_v1  ;;  %v537_v0 = vmax.f32 %v473_v57, 0.0  ;;  %v475_v3 = vadd.f32 %v863_v45, %v283_v59 }
  0x5f   :  { %600 = vst [vmem:[%s1482_s4 + $0x1c8] sm:$0xff] %v536_v56  ;;  %v538_v2 = vmax.f32 %v474_v58, 0.0  ;;  %v215_v6 = vmul.f32 %v740_v63, %v962_v1  ;;  %v868_v8 = vunpack.c.h.bf16 %v930_v51 }
  0x60   :  { %v476_v4 = vadd.f32 %v864_v54, %v284_v60  ;;  %v285_v5 = vadd.f32 %v976_v7, %v214_v61  ;;  %601 = vst [vmem:[%s1482_s4 + $0x1d0] sm:$0xff] %v537_v0  ;;  %v539_v9 = vmax.f32 %v475_v3, 0.0 }
  0x61   :  { %602 = vst [vmem:[%s1482_s4 + $0x1d8] sm:$0xff] %v538_v2  ;;  %v286_v12 = vadd.f32 %v976_v7, %v215_v6 }
  0x62   :  { %v540_v10 = vmax.f32 %v476_v4, 0.0  ;;  %v477_v11 = vadd.f32 %v867_v62, %v285_v5  ;;  %603 = vst [vmem:[%s1482_s4 + $0x1e0] sm:$0xff] %v539_v9 }
  0x63   :  { %v478_v13 = vadd.f32 %v868_v8, %v286_v12 }
  0x64   :  { %604 = vst [vmem:[%s1482_s4 + $0x1e8] sm:$0xff] %v540_v10  ;;  %v541_v1 = vmax.f32 %v477_v11, 0.0 }
  0x65   :  { %v542_v14 = vmax.f32 %v478_v13, 0.0 }
  0x66   :  { %605 = vst [vmem:[%s1482_s4 + $0x1f0] sm:$0xff] %v541_v1 }
  0x67   :  { %606 = vst [vmem:[%s1482_s4 + $0x1f8] sm:$0xff] %v542_v14 }

// kernel: bottleneck_block.6
= control target key start
LH: loop header
LB: loop body
LE: loop exit
PB: predicated region body
PF: predicated region fallthrough
CT: control target
= control target key end

     0   :  { %s2517_s3 = inlined_call_operand.vmem [shape: bf16[128,128], index: 3, kind: input, shape index: {}]   ;;  %s2518_s0 = inlined_call_operand.vmem [shape: bf16[512,128], index: 0, kind: input, shape index: {}]   ;;  %s2519_s1 = inlined_call_operand.vmem [shape: f32[1,128], index: 1, kind: input, shape index: {}]   ;;  %s2520_s2 = inlined_call_operand.vmem [shape: f32[1,128], index: 2, kind: input, shape index: {}]   ;;  %s2521_s4 = inlined_call_operand.vmem [shape: bf16[512,128], index: 4, kind: output, shape index: {0}]   ;;  %s2522_s5 = inlined_call_operand.vmem [shape: f32[8,128], index: 5, kind: output, shape index: {1}]   ;;  %s2523_s6 = inlined_call_operand.vmem [shape: f32[8,128], index: 6, kind: output, shape index: {2}]  }
   0x1   :  { %v1888_v0 = vld [vmem:[%s2517_s3] sm:$0xff]   ;;  %v1889_v1 = vld [vmem:[%s2517_s3 + $0x8] sm:$0xff]   ;;  %v1890_v2 = vld [vmem:[%s2517_s3 + $0x10] sm:$0xff]  }
   0x2   :  { %1792 = vmatprep.subr.bf16.mxu0 %v1888_v0  ;;  %1872 = vmatprep.subr.bf16.mxu1 %v1888_v0  ;;  %v1891_v3 = vld [vmem:[%s2517_s3 + $0x18] sm:$0xff]   ;;  %v1403_v4 = vld [vmem:[%s2518_s0] sm:$0xff]   ;;  %v1690_v8 = vld [vmem:[%s2518_s0 + $0x8] sm:$0xff]  }
   0x3   :  { %1793 = vmatpush3.bf16.msra.mxu0 %v1888_v0  ;;  %1880 = vmatpush3.bf16.msra.mxu1 %v1888_v0  ;;  %v1949_v5 = vld [vmem:[%s2519_s1] ss:$0 sm:$0xff]  ;;  %v1404_v6 = vunpack.c.l.bf16 %v1403_v4  ;;  %v1405_v7 = vunpack.c.h.bf16 %v1403_v4  ;;  %v1691_v9 = vld [vmem:[%s2518_s0 + $0x10] sm:$0xff]   ;;  %v1408_v14 = vunpack.c.l.bf16 %v1690_v8  ;;  %v1409_v15 = vunpack.c.h.bf16 %v1690_v8  ;;  %v1893_v22 = vld [vmem:[%s2517_s3 + $0x28] sm:$0xff]  }
   0x4   :  { %1794 = vmatprep.subr.bf16.mxu0 %v1889_v1  ;;  %1873 = vmatprep.subr.bf16.mxu1 %v1889_v1  ;;  %v1960_v10 = vld [vmem:[%s2520_s2] ss:$0 sm:$0xff]  ;;  %v1412_v16 = vunpack.c.l.bf16 %v1691_v9  ;;  %v1413_v19 = vunpack.c.h.bf16 %v1691_v9  ;;  %v1692_v26 = vld [vmem:[%s2518_s0 + $0x18] sm:$0xff]   ;;  %v1894_v31 = vld [vmem:[%s2517_s3 + $0x30] sm:$0xff]  }
   0x5   :  { %v156_v11 = vmul.f32 %v1404_v6, %v1949_v5  ;;  %v157_v12 = vmul.f32 %v1405_v7, %v1949_v5  ;;  %v1892_v13 = vld [vmem:[%s2517_s3 + $0x20] sm:$0xff]   ;;  %v158_v23 = vmul.f32 %v1408_v14, %v1949_v5  ;;  %v159_v24 = vmul.f32 %v1409_v15, %v1949_v5  ;;  %v1694_v38 = vld [vmem:[%s2518_s0 + $0x28] sm:$0xff]   ;;  %v1695_v41 = vld [vmem:[%s2518_s0 + $0x30] sm:$0xff]  }
   0x6   :  { %v160_v25 = vmul.f32 %v1412_v16, %v1949_v5  ;;  %v161_v28 = vmul.f32 %v1413_v19, %v1949_v5  ;;  %v1693_v29 = vld [vmem:[%s2518_s0 + $0x20] sm:$0xff]   ;;  %v1416_v30 = vunpack.c.l.bf16 %v1692_v26  ;;  %v1417_v35 = vunpack.c.h.bf16 %v1692_v26  ;;  %v1696_v42 = vld [vmem:[%s2518_s0 + $0x38] sm:$0xff]   ;;  %v1698_v63 = vld [vmem:[%s2518_s0 + $0x48] sm:$0xff]  }
   0x7   :  { %1795 = vmatpush3.bf16.msra.mxu0 %v1889_v1  ;;  %1881 = vmatpush3.bf16.msra.mxu1 %v1889_v1  ;;  %v227_v17 = vadd.f32 %v1960_v10, %v156_v11  ;;  %v228_v18 = vadd.f32 %v1960_v10, %v157_v12  ;;  %v229_v32 = vadd.f32 %v1960_v10, %v158_v23  ;;  %v1420_v37 = vunpack.c.l.bf16 %v1693_v29  ;;  %v1895_v43 = vld [vmem:[%s2517_s3 + $0x38] sm:$0xff]   ;;  %v1697_v48 = vld [vmem:[%s2518_s0 + $0x40] sm:$0xff]   ;;  %v1699_v4 = vld [vmem:[%s2518_s0 + $0x50] sm:$0xff]  }
   0x8   :  { %1796 = vmatprep.subr.bf16.mxu0 %v1890_v2  ;;  %1874 = vmatprep.subr.bf16.mxu1 %v1890_v2  ;;  %v230_v33 = vadd.f32 %v1960_v10, %v159_v24  ;;  %v231_v34 = vadd.f32 %v1960_v10, %v160_v25  ;;  %v232_v36 = vadd.f32 %v1960_v10, %v161_v28  ;;  %v1421_v40 = vunpack.c.h.bf16 %v1693_v29  ;;  %v1700_v23 = vld [vmem:[%s2518_s0 + $0x58] sm:$0xff]  }
   0x9   :  { %v291_v20 = vmax.f32 %v227_v17, 0.0  ;;  %v292_v21 = vmax.f32 %v228_v18, 0.0  ;;  %v162_v39 = vmul.f32 %v1416_v30, %v1949_v5  ;;  %v293_v44 = vmax.f32 %v229_v32, 0.0 }
   0xa   :  { %v294_v45 = vmax.f32 %v230_v33, 0.0  ;;  %v295_v46 = vmax.f32 %v231_v34, 0.0  ;;  %v163_v47 = vmul.f32 %v1417_v35, %v1949_v5  ;;  %v296_v49 = vmax.f32 %v232_v36, 0.0 }
   0xb   :  { %1797 = vmatpush3.bf16.msra.mxu0 %v1890_v2  ;;  %1882 = vmatpush3.bf16.msra.mxu1 %v1890_v2  ;;  %v355_v27 = vpack.c.bf16 %v292_v21, %v291_v20  ;;  %v164_v50 = vmul.f32 %v1420_v37, %v1949_v5  ;;  %v1424_v51 = vunpack.c.l.bf16 %v1694_v38  ;;  %v1425_v52 = vunpack.c.h.bf16 %v1694_v38 }
   0xc   :  { %1798 = vmatprep.subr.bf16.mxu0 %v1891_v3  ;;  %1875 = vmatprep.subr.bf16.mxu1 %v1891_v3  ;;  %v1428_v53 = vunpack.c.l.bf16 %v1695_v41  ;;  %v1429_v54 = vunpack.c.h.bf16 %v1695_v41  ;;  %v1432_v55 = vunpack.c.l.bf16 %v1696_v42  ;;  %v1433_v56 = vunpack.c.h.bf16 %v1696_v42 }
   0xd   :  { %1808 = vmatprep.mubr.bf16.mxu0 %v355_v27  ;;  %v165_v57 = vmul.f32 %v1421_v40, %v1949_v5  ;;  %v1436_v58 = vunpack.c.l.bf16 %v1697_v48  ;;  %v1437_v59 = vunpack.c.h.bf16 %v1697_v48  ;;  %v356_v60 = vpack.c.bf16 %v294_v45, %v293_v44  ;;  %v1705_v44 = vld [vmem:[%s2518_s0 + $0x80] sm:$0xff]  }
   0xe   :  { %v233_v61 = vadd.f32 %v1960_v10, %v162_v39  ;;  %v234_v62 = vadd.f32 %v1960_v10, %v163_v47  ;;  %v357_v0 = vpack.c.bf16 %v296_v49, %v295_v46  ;;  %v235_v1 = vadd.f32 %v1960_v10, %v164_v50 }
   0xf   :  { %1799 = vmatpush3.bf16.msra.mxu0 %v1891_v3  ;;  %1883 = vmatpush3.bf16.msra.mxu1 %v1891_v3  ;;  %v166_v2 = vmul.f32 %v1424_v51, %v1949_v5  ;;  %v167_v3 = vmul.f32 %v1425_v52, %v1949_v5  ;;  %v168_v6 = vmul.f32 %v1428_v53, %v1949_v5  ;;  %v1440_v14 = vunpack.c.l.bf16 %v1698_v63  ;;  %v2053_v52 = vld [vmem:[%s2518_s0 + $0x60] sm:$0xff]  }
  0x10   :  { %1800 = vmatprep.subr.bf16.mxu0 %v1892_v13  ;;  %1876 = vmatprep.subr.bf16.mxu1 %v1892_v13  ;;  %v169_v7 = vmul.f32 %v1429_v54, %v1949_v5  ;;  %v170_v8 = vmul.f32 %v1432_v55, %v1949_v5  ;;  %v171_v9 = vmul.f32 %v1433_v56, %v1949_v5  ;;  %v297_v15 = vmax.f32 %v233_v61, 0.0 }
  0x11   :  { %v236_v11 = vadd.f32 %v1960_v10, %v165_v57  ;;  %v172_v12 = vmul.f32 %v1436_v58, %v1949_v5  ;;  %v298_v16 = vmax.f32 %v234_v62, 0.0  ;;  %v1441_v17 = vunpack.c.h.bf16 %v1698_v63 }
  0x12   :  { %v1444_v18 = vunpack.c.l.bf16 %v1699_v4  ;;  %v299_v19 = vmax.f32 %v235_v1, 0.0  ;;  %v237_v20 = vadd.f32 %v1960_v10, %v166_v2  ;;  %v238_v21 = vadd.f32 %v1960_v10, %v167_v3 }
  0x13   :  { %1801 = vmatpush3.bf16.msra.mxu0 %v1892_v13  ;;  %1884 = vmatpush3.bf16.msra.mxu1 %v1892_v13  ;;  %v173_v13 = vmul.f32 %v1437_v59, %v1949_v5  ;;  %v239_v24 = vadd.f32 %v1960_v10, %v168_v6  ;;  %v240_v25 = vadd.f32 %v1960_v10, %v169_v7  ;;  %v300_v28 = vmax.f32 %v236_v11, 0.0  ;;  %v1706_v59 = vld [vmem:[%s2518_s0 + $0x88] sm:$0xff]   ;;  %v1708_v11 = vld [vmem:[%s2518_s0 + $0x98] sm:$0xff]  }
  0x14   :  { %1802 = vmatprep.subr.bf16.mxu0 %v1893_v22  ;;  %1877 = vmatprep.subr.bf16.mxu1 %v1893_v22  ;;  %v241_v26 = vadd.f32 %v1960_v10, %v170_v8  ;;  %v242_v27 = vadd.f32 %v1960_v10, %v171_v9  ;;  %v243_v29 = vadd.f32 %v1960_v10, %v172_v12  ;;  %v1448_v35 = vunpack.c.l.bf16 %v1700_v23 }
  0x15   :  { %v244_v30 = vadd.f32 %v1960_v10, %v173_v13  ;;  %v358_v32 = vpack.c.bf16 %v298_v16, %v297_v15  ;;  %v175_v33 = vmul.f32 %v1441_v17, %v1949_v5  ;;  %v176_v34 = vmul.f32 %v1444_v18, %v1949_v5 }
  0x16   :  { %v301_v36 = vmax.f32 %v237_v20, 0.0  ;;  %v302_v37 = vmax.f32 %v238_v21, 0.0  ;;  %v1449_v39 = vunpack.c.h.bf16 %v1700_v23  ;;  %v303_v40 = vmax.f32 %v239_v24, 0.0  ;;  %v1709_v24 = vld [vmem:[%s2518_s0 + $0xa0] sm:$0xff]  }
  0x17   :  { %1803 = vmatpush3.bf16.msra.mxu0 %v1893_v22  ;;  %1885 = vmatpush3.bf16.msra.mxu1 %v1893_v22  ;;  %v1445_v22 = vunpack.c.h.bf16 %v1699_v4  ;;  %v304_v41 = vmax.f32 %v240_v25, 0.0  ;;  %v305_v42 = vmax.f32 %v241_v26, 0.0  ;;  %v359_v45 = vpack.c.bf16 %v300_v28, %v299_v19 }
  0x18   :  { %1804 = vmatprep.subr.bf16.mxu0 %v1894_v31  ;;  %1878 = vmatprep.subr.bf16.mxu1 %v1894_v31  ;;  %v307_v46 = vmax.f32 %v243_v29, 0.0  ;;  %v308_v47 = vmax.f32 %v244_v30, 0.0  ;;  %v246_v49 = vadd.f32 %v1960_v10, %v175_v33  ;;  %v2047_v50 = vadd.f32 %v1960_v10, %v176_v34  ;;  %v1710_v33 = vld [vmem:[%s2518_s0 + $0xa8] sm:$0xff]  }
  0x19   :  { %v177_v38 = vmul.f32 %v1445_v22, %v1949_v5  ;;  %v178_v51 = vmul.f32 %v1448_v35, %v1949_v5  ;;  %v179_v54 = vmul.f32 %v1449_v39, %v1949_v5  ;;  %v1468_v55 = vunpack.c.l.bf16 %v1705_v44 }
  0x1a   :  { %v360_v56 = vpack.c.bf16 %v302_v37, %v301_v36  ;;  %v361_v57 = vpack.c.bf16 %v304_v41, %v303_v40  ;;  %v1452_v62 = vunpack.c.l.bf16 %v2053_v52  ;;  %v1469_v63 = vunpack.c.h.bf16 %v1705_v44 }
  0x1b   :  { %1805 = vmatpush3.bf16.msra.mxu0 %v1894_v31  ;;  %1886 = vmatpush3.bf16.msra.mxu1 %v1894_v31  ;;  %v174_v31 = vmul.f32 %v1440_v14, %v1949_v5  ;;  %v2056_v53 = vadd.f32 %v1960_v10, %v177_v38  ;;  %v310_v1 = vmax.f32 %v246_v49, 0.0  ;;  %v311_v2 = vmax.f32 %v2047_v50, 0.0 }
  0x1c   :  { %1806 = vmatprep.subr.bf16.mxu0 %v1895_v43  ;;  %1879 = vmatprep.subr.bf16.mxu1 %v1895_v43  ;;  %v2072_v3 = vadd.f32 %v1960_v10, %v178_v51  ;;  %v188_v4 = vmul.f32 %v1468_v55, %v1949_v5  ;;  %v2077_v7 = vadd.f32 %v1960_v10, %v179_v54  ;;  %v1472_v9 = vunpack.c.l.bf16 %v1706_v59 }
  0x1d   :  { %v245_v48 = vadd.f32 %v1960_v10, %v174_v31  ;;  %v312_v6 = vmax.f32 %v2056_v53, 0.0  ;;  %v189_v8 = vmul.f32 %v1469_v63, %v1949_v5  ;;  %v1453_v12 = vunpack.c.h.bf16 %v2053_v52 }
  0x1e   :  { %v259_v13 = vadd.f32 %v1960_v10, %v188_v4  ;;  %v1473_v14 = vunpack.c.h.bf16 %v1706_v59  ;;  %v2086_v16 = vmul.f32 %v1452_v62, %v1949_v5  ;;  %v190_v18 = vmul.f32 %v1472_v9, %v1949_v5 }
  0x1f   :  { %1807 = vmatpush3.bf16.msra.mxu0 %v1895_v43  ;;  %1887 = vmatpush3.bf16.msra.mxu1 %v1895_v43  ;;  %v306_v43 = vmax.f32 %v242_v27, 0.0  ;;  %v309_v61 = vmax.f32 %v245_v48, 0.0  ;;  %v260_v17 = vadd.f32 %v1960_v10, %v189_v8  ;;  %v1480_v23 = vunpack.c.l.bf16 %v1708_v11 }
  0x20   :  { %v323_v20 = vmax.f32 %v259_v13, 0.0  ;;  %v191_v21 = vmul.f32 %v1473_v14, %v1949_v5  ;;  %v261_v27 = vadd.f32 %v1960_v10, %v190_v18  ;;  %v1481_v31 = vunpack.c.h.bf16 %v1708_v11  ;;  %v1713_v18 = vld [vmem:[%s2518_s0 + $0xc0] sm:$0xff]  }
  0x21   :  { %v2059_v58 = vpack.c.bf16 %v306_v43, %v305_v42  ;;  %v2095_v25 = vpack.c.bf16 %v310_v1, %v309_v61  ;;  %v324_v26 = vmax.f32 %v260_v17, 0.0  ;;  %v1484_v37 = vunpack.c.l.bf16 %v1709_v24  ;;  %v1712_v1 = vld [vmem:[%s2518_s0 + $0xb8] sm:$0xff]  }
  0x22   :  { %1809 = vmatmul.mubr.bf16.vlgmr.msra.gmra.mrb[0].mxu0 %v356_v60  ;;  %v2064_v60 = vpack.c.bf16 %v308_v47, %v307_v46  ;;  %v262_v29 = vadd.f32 %v1960_v10, %v191_v21  ;;  %v325_v35 = vmax.f32 %v261_v27, 0.0  ;;  %v195_v40 = vmul.f32 %v1481_v31, %v1949_v5  ;;  %v1711_v46 = vld [vmem:[%s2518_s0 + $0xb0] sm:$0xff]   ;;  %v1702_v47 = vld [vmem:[%s2518_s0 + $0x68] sm:$0xff]  }
  0x23   :  { %1812 = vmatprep.mubr.bf16.mxu0 %v357_v0  ;;  %v1707_v0 = vld [vmem:[%s2518_s0 + $0x90] sm:$0xff]   ;;  %v371_v34 = vpack.c.bf16 %v324_v26, %v323_v20  ;;  %v1485_v43 = vunpack.c.h.bf16 %v1709_v24  ;;  %v196_v44 = vmul.f32 %v1484_v37, %v1949_v5  ;;  %v1489_v54 = vunpack.c.h.bf16 %v1710_v33 }
  0x24   :  { %v1476_v15 = vunpack.c.l.bf16 %v1707_v0  ;;  %v1477_v19 = vunpack.c.h.bf16 %v1707_v0  ;;  %v326_v38 = vmax.f32 %v262_v29, 0.0  ;;  %v266_v49 = vadd.f32 %v1960_v10, %v195_v40  ;;  %v1715_v40 = vld [vmem:[%s2518_s0 + $0xd0] sm:$0xff]  }
  0x25   :  { %1840 = vmatprep.mubr.bf16.mxu1 %v371_v34  ;;  %v199_v62 = vmul.f32 %v1489_v54, %v1949_v5  ;;  %v1492_v63 = vunpack.c.l.bf16 %v1711_v46  ;;  %v1493_v0 = vunpack.c.h.bf16 %v1711_v46  ;;  %v313_v4 = vmax.f32 %v2072_v3, 0.0 }
  0x26   :  { %v192_v22 = vmul.f32 %v1476_v15, %v1949_v5  ;;  %v193_v28 = vmul.f32 %v1477_v19, %v1949_v5  ;;  %v372_v48 = vpack.c.bf16 %v326_v38, %v325_v35  ;;  %v330_v61 = vmax.f32 %v266_v49, 0.0 }
  0x27   :  { %v1456_v8 = vunpack.c.l.bf16 %v1702_v47  ;;  %v314_v13 = vmax.f32 %v2077_v7, 0.0  ;;  %v1457_v14 = vunpack.c.h.bf16 %v1702_v47  ;;  %v200_v15 = vmul.f32 %v1492_v63, %v1949_v5 }
  0x28   :  { %v263_v30 = vadd.f32 %v1960_v10, %v192_v22  ;;  %v264_v36 = vadd.f32 %v1960_v10, %v193_v28  ;;  %1841 = vmatmul.mubr.bf16.vlgmr.msra.gmra.mrb[0].mxu1 %v372_v48  ;;  %v201_v17 = vmul.f32 %v1493_v0, %v1949_v5  ;;  %v181_v3 = vmul.f32 %v1453_v12, %v1949_v5 }
  0x29   :  { %v1496_v19 = vunpack.c.l.bf16 %v1712_v1  ;;  %v1497_v20 = vunpack.c.h.bf16 %v1712_v1  ;;  %v271_v24 = vadd.f32 %v1960_v10, %v200_v15  ;;  %v1500_v27 = vunpack.c.l.bf16 %v1713_v18  ;;  %v1716_v15 = vld [vmem:[%s2518_s0 + $0xd8] sm:$0xff]  }
  0x2a   :  { %1813 = vmatmul.mubr.bf16.gmra.mrb[4].mxu0 %v358_v32  ;;  %v194_v32 = vmul.f32 %v1480_v23, %v1949_v5  ;;  %v327_v39 = vmax.f32 %v263_v30, 0.0  ;;  %v328_v42 = vmax.f32 %v264_v36, 0.0  ;;  %v270_v23 = vadd.f32 %v1960_v10, %v199_v62 }
  0x2b   :  { %1816 = vmatprep.mubr.bf16.mxu0 %v359_v45  ;;  %v1488_v45 = vunpack.c.l.bf16 %v1710_v33  ;;  %v1501_v52 = vunpack.c.h.bf16 %v1713_v18  ;;  %v365_v12 = vpack.c.bf16 %v312_v6, %v311_v2  ;;  %v251_v28 = vadd.f32 %v1960_v10, %v2086_v16  ;;  %v1704_v33 = vld [vmem:[%s2518_s0 + $0x78] sm:$0xff]   ;;  %v1714_v16 = vld [vmem:[%s2518_s0 + $0xc8] sm:$0xff]  }
  0x2c   :  { %v265_v41 = vadd.f32 %v1960_v10, %v194_v32  ;;  %v373_v55 = vpack.c.bf16 %v328_v42, %v327_v39  ;;  %v252_v31 = vadd.f32 %v1960_v10, %v181_v3  ;;  %v182_v32 = vmul.f32 %v1456_v8, %v1949_v5 }
  0x2d   :  { %v198_v59 = vmul.f32 %v1488_v45, %v1949_v5  ;;  %v202_v34 = vmul.f32 %v1496_v19, %v1949_v5  ;;  %v203_v50 = vmul.f32 %v1497_v20, %v1949_v5  ;;  %v366_v35 = vpack.c.bf16 %v314_v13, %v313_v4 }
  0x2e   :  { %v329_v51 = vmax.f32 %v265_v41, 0.0  ;;  %1844 = vmatprep.mubr.bf16.mxu1 %v373_v55  ;;  %v183_v53 = vmul.f32 %v1457_v14, %v1949_v5  ;;  %v334_v6 = vmax.f32 %v270_v23, 0.0  ;;  %v335_v36 = vmax.f32 %v271_v24, 0.0 }
  0x2f   :  { %v269_v22 = vadd.f32 %v1960_v10, %v198_v59  ;;  %v204_v38 = vmul.f32 %v1500_v27, %v1949_v5  ;;  %v205_v39 = vmul.f32 %v1501_v52, %v1949_v5  ;;  %v315_v41 = vmax.f32 %v251_v28, 0.0 }
  0x30   :  { %v374_v21 = vpack.c.bf16 %v330_v61, %v329_v51  ;;  %v316_v45 = vmax.f32 %v252_v31, 0.0  ;;  %v273_v46 = vadd.f32 %v1960_v10, %v202_v34  ;;  %v274_v47 = vadd.f32 %v1960_v10, %v203_v50 }
  0x31   :  { %v333_v2 = vmax.f32 %v269_v22, 0.0  ;;  %v1504_v48 = vunpack.c.l.bf16 %v1714_v16  ;;  %v1505_v51 = vunpack.c.h.bf16 %v1714_v16  ;;  %v1508_v54 = vunpack.c.l.bf16 %v1715_v40 }
  0x32   :  { %1817 = vmatmul.mubr.bf16.gmra.mrb[8].mxu0 %v360_v56  ;;  %v197_v56 = vmul.f32 %v1485_v43, %v1949_v5  ;;  %1845 = vmatmul.mubr.bf16.gmra.mrb[4].mxu1 %v374_v21  ;;  %v1509_v55 = vunpack.c.h.bf16 %v1715_v40  ;;  %v276_v59 = vadd.f32 %v1960_v10, %v205_v39  ;;  %v254_v61 = vadd.f32 %v1960_v10, %v183_v53  ;;  %v1717_v21 = vld [vmem:[%s2518_s0 + $0xe0] sm:$0xff]  }
  0x33   :  { %1820 = vmatprep.mubr.bf16.mxu0 %v361_v57  ;;  %v267_v57 = vadd.f32 %v1960_v10, %v196_v44  ;;  %v1464_v44 = vunpack.c.l.bf16 %v1704_v33  ;;  %v376_v49 = vpack.c.bf16 %v334_v6, %v333_v2  ;;  %v1465_v0 = vunpack.c.h.bf16 %v1704_v33 }
  0x34   :  { %v268_v9 = vadd.f32 %v1960_v10, %v197_v56  ;;  %v253_v56 = vadd.f32 %v1960_v10, %v182_v32  ;;  %v367_v1 = vpack.c.bf16 %v316_v45, %v315_v41  ;;  %v337_v4 = vmax.f32 %v273_v46, 0.0  ;;  %v1719_v41 = vld [vmem:[%s2518_s0 + $0xf0] sm:$0xff]  }
  0x35   :  { %v331_v11 = vmax.f32 %v267_v57, 0.0  ;;  %v275_v57 = vadd.f32 %v1960_v10, %v204_v38  ;;  %v338_v8 = vmax.f32 %v274_v47, 0.0  ;;  %v208_v13 = vmul.f32 %v1508_v54, %v1949_v5 }
  0x36   :  { %v332_v7 = vmax.f32 %v268_v9, 0.0  ;;  %v206_v9 = vmul.f32 %v1504_v48, %v1949_v5  ;;  %v209_v14 = vmul.f32 %v1509_v55, %v1949_v5  ;;  %v340_v3 = vmax.f32 %v276_v59, 0.0 }
  0x37   :  { %v339_v18 = vmax.f32 %v275_v57, 0.0  ;;  %v187_v20 = vmul.f32 %v1465_v0, %v1949_v5  ;;  %v378_v23 = vpack.c.bf16 %v338_v8, %v337_v4  ;;  %v279_v27 = vadd.f32 %v1960_v10, %v208_v13 }
  0x38   :  { %v375_v26 = vpack.c.bf16 %v332_v7, %v331_v11  ;;  %v207_v11 = vmul.f32 %v1505_v51, %v1949_v5  ;;  %v318_v7 = vmax.f32 %v254_v61, 0.0  ;;  %v277_v24 = vadd.f32 %v1960_v10, %v206_v9 }
  0x39   :  { %v280_v52 = vadd.f32 %v1960_v10, %v209_v14  ;;  %v379_v28 = vpack.c.bf16 %v340_v3, %v339_v18  ;;  %v258_v33 = vadd.f32 %v1960_v10, %v187_v20  ;;  %v343_v2 = vmax.f32 %v279_v27, 0.0 }
  0x3a   :  { %1821 = vmatmul.mubr.bf16.gmra.mrb[12].mxu0 %v2059_v58  ;;  %v1703_v58 = vld [vmem:[%s2518_s0 + $0x70] sm:$0xff]   ;;  %1848 = vmatprep.mubr.bf16.mxu1 %v375_v26  ;;  %v1512_v26 = vunpack.c.l.bf16 %v1716_v15  ;;  %v341_v50 = vmax.f32 %v277_v24, 0.0  ;;  %v1524_v51 = vunpack.c.l.bf16 %v1719_v41  ;;  %v1525_v54 = vunpack.c.h.bf16 %v1719_v41 }
  0x3b   :  { %1824 = vmatprep.mubr.bf16.mxu0 %v2064_v60  ;;  %v272_v60 = vadd.f32 %v1960_v10, %v201_v17  ;;  %v1460_v29 = vunpack.c.l.bf16 %v1703_v58  ;;  %v1461_v30 = vunpack.c.h.bf16 %v1703_v58  ;;  %1849 = vmatmul.mubr.bf16.gmra.mrb[8].mxu1 %v376_v49  ;;  %v186_v17 = vmul.f32 %v1464_v44, %v1949_v5 }
  0x3c   :  { %v317_v58 = vmax.f32 %v253_v56, 0.0  ;;  %v344_v6 = vmax.f32 %v280_v52, 0.0  ;;  %v322_v40 = vmax.f32 %v258_v33, 0.0  ;;  %v217_v0 = vmul.f32 %v1525_v54, %v1949_v5 }
  0x3d   :  { %v336_v37 = vmax.f32 %v272_v60, 0.0  ;;  %v184_v42 = vmul.f32 %v1460_v29, %v1949_v5  ;;  %v185_v43 = vmul.f32 %v1461_v30, %v1949_v5  ;;  %v278_v60 = vadd.f32 %v1960_v10, %v207_v11 }
  0x3e   :  { %v1516_v29 = vunpack.c.l.bf16 %v1717_v21  ;;  %v1517_v30 = vunpack.c.h.bf16 %v1717_v21  ;;  %v368_v31 = vpack.c.bf16 %v318_v7, %v317_v58  ;;  %v257_v32 = vadd.f32 %v1960_v10, %v186_v17 }
  0x3f   :  { %v255_v62 = vadd.f32 %v1960_v10, %v184_v42  ;;  %v256_v63 = vadd.f32 %v1960_v10, %v185_v43  ;;  %v342_v53 = vmax.f32 %v278_v60, 0.0  ;;  %v381_v45 = vpack.c.bf16 %v344_v6, %v343_v2 }
  0x40   :  { %v213_v38 = vmul.f32 %v1517_v30, %v1949_v5  ;;  %v321_v39 = vmax.f32 %v257_v32, 0.0  ;;  %v288_v17 = vadd.f32 %v1960_v10, %v217_v0 }
  0x41   :  { %v319_v19 = vmax.f32 %v255_v62, 0.0  ;;  %v320_v22 = vmax.f32 %v256_v63, 0.0  ;;  %v380_v44 = vpack.c.bf16 %v342_v53, %v341_v50  ;;  %v216_v63 = vmul.f32 %v1524_v51, %v1949_v5 }
  0x42   :  { %1825 = vmatmul.mubr.bf16.gmra.mrb[16].mxu0 %v2095_v25  ;;  %v377_v25 = vpack.c.bf16 %v336_v37, %v335_v36  ;;  %v1718_v36 = vld [vmem:[%s2518_s0 + $0xe8] sm:$0xff]   ;;  %v212_v37 = vmul.f32 %v1516_v29, %v1949_v5  ;;  %v284_v49 = vadd.f32 %v1960_v10, %v213_v38  ;;  %v370_v55 = vpack.c.bf16 %v322_v40, %v321_v39 }
  0x43   :  { %1828 = vmatprep.mubr.bf16.mxu0 %v365_v12  ;;  %v1513_v12 = vunpack.c.h.bf16 %v1716_v15  ;;  %v369_v34 = vpack.c.bf16 %v320_v22, %v319_v19  ;;  %v1520_v43 = vunpack.c.l.bf16 %v1718_v36  ;;  %v1521_v47 = vunpack.c.h.bf16 %v1718_v36 }
  0x44   :  { %1852 = vmatprep.mubr.bf16.mxu1 %v377_v25  ;;  %v283_v48 = vadd.f32 %v1960_v10, %v212_v37  ;;  %v348_v62 = vmax.f32 %v284_v49, 0.0  ;;  %v287_v15 = vadd.f32 %v1960_v10, %v216_v63  ;;  %v352_v20 = vmax.f32 %v288_v17, 0.0 }
  0x45   :  { %1853 = vmatmul.mubr.bf16.gmra.mrb[12].mxu1 %v378_v23  ;;  %v211_v16 = vmul.f32 %v1513_v12, %v1949_v5  ;;  %v214_v56 = vmul.f32 %v1520_v43, %v1949_v5  ;;  %v215_v59 = vmul.f32 %v1521_v47, %v1949_v5 }
  0x46   :  { %1856 = vmatprep.mubr.bf16.mxu1 %v379_v28  ;;  %v347_v61 = vmax.f32 %v283_v48, 0.0  ;;  %v351_v19 = vmax.f32 %v287_v15, 0.0 }
  0x47   :  { %v282_v46 = vadd.f32 %v1960_v10, %v211_v16  ;;  %v285_v4 = vadd.f32 %v1960_v10, %v214_v56  ;;  %v286_v9 = vadd.f32 %v1960_v10, %v215_v59 }
  0x48   :  { %v383_v14 = vpack.c.bf16 %v348_v62, %v347_v61  ;;  %v385_v24 = vpack.c.bf16 %v352_v20, %v351_v19 }
  0x49   :  { %v346_v57 = vmax.f32 %v282_v46, 0.0  ;;  %v349_v18 = vmax.f32 %v285_v4, 0.0  ;;  %v350_v3 = vmax.f32 %v286_v9, 0.0 }
  0x4a   :  { %1829 = vmatmul.mubr.bf16.gmra.mrb[20].mxu0 %v366_v35  ;;  %v210_v35 = vmul.f32 %v1512_v26, %v1949_v5 }
  0x4b   :  { %1832 = vmatprep.mubr.bf16.mxu0 %v367_v1  ;;  %v1720_v1 = vld [vmem:[%s2518_s0 + $0xf8] sm:$0xff]   ;;  %v384_v21 = vpack.c.bf16 %v350_v3, %v349_v18 }
  0x4c   :  { %v281_v42 = vadd.f32 %v1960_v10, %v210_v35  ;;  %v1528_v11 = vunpack.c.l.bf16 %v1720_v1  ;;  %v1529_v13 = vunpack.c.h.bf16 %v1720_v1 }
  0x4d   :  { %1857 = vmatmul.mubr.bf16.gmra.mrb[16].mxu1 %v380_v44 }
  0x4e   :  { %v345_v25 = vmax.f32 %v281_v42, 0.0  ;;  %1860 = vmatprep.mubr.bf16.mxu1 %v381_v45  ;;  %v218_v58 = vmul.f32 %v1528_v11, %v1949_v5  ;;  %v219_v7 = vmul.f32 %v1529_v13, %v1949_v5 }
  0x50   :  { %v382_v8 = vpack.c.bf16 %v346_v57, %v345_v25  ;;  %v289_v22 = vadd.f32 %v1960_v10, %v218_v58  ;;  %v290_v23 = vadd.f32 %v1960_v10, %v219_v7 }
  0x52   :  { %1833 = vmatmul.mubr.bf16.gmra.mrb[24].mxu0 %v368_v31  ;;  %v353_v26 = vmax.f32 %v289_v22, 0.0  ;;  %v354_v60 = vmax.f32 %v290_v23, 0.0 }
  0x53   :  { %1836 = vmatprep.mubr.bf16.mxu0 %v369_v34 }
  0x54   :  { %v386_v27 = vpack.c.bf16 %v354_v60, %v353_v26 }
  0x55   :  { %1861 = vmatmul.mubr.bf16.gmra.mrb[20].mxu1 %v382_v8 }
  0x56   :  { %1864 = vmatprep.mubr.bf16.mxu1 %v383_v14 }
  0x5a   :  { %1837 = vmatmul.mubr.bf16.gmra.mrb[28].mxu0 %v370_v55 }
  0x5d   :  { %1865 = vmatmul.mubr.bf16.gmra.mrb[24].mxu1 %v384_v21 }
  0x5e   :  { %1868 = vmatprep.mubr.bf16.mxu1 %v385_v24 }
  0x65   :  { %1869 = vmatmul.mubr.bf16.gmra.mrb[28].mxu1 %v386_v27 }
  0xf5   :  { %v1810_v52 = vpop.f32.mrb[0].mxu0 }
  0xf6   :  { %v485_v12 = vpop.f32.mrb[1].mxu0  ;;  %v1126_v10 = vmul.f32 %v1810_v52, %v1810_v52 }
  0xf7   :  { %v1811_v28 = vpop.f32.mrb[2].mxu0  ;;  %v1124_v30 = vmul.f32 %v485_v12, %v485_v12 }
  0xf8   :  { %v1538_v29 = vpack.c.bf16 %v1811_v28, %v1810_v52  ;;  %v488_v5 = vpop.f32.mrb[3].mxu0  ;;  %v1127_v35 = vmul.f32 %v1811_v28, %v1811_v28 }
  0xf9   :  { %v1533_v31 = vpack.c.bf16 %v488_v5, %v485_v12  ;;  %v1060_v32 = vadd.f32 %v488_v5, %v485_v12  ;;  %v1125_v33 = vmul.f32 %v488_v5, %v488_v5 }
  0xfa   :  { %1721 = vst [vmem:[%s2521_s4 + $0x8] sm:$0xff] %v1538_v29  }
  0xfb   :  { %1534 = vst [vmem:[%s2521_s4] sm:$0xff] %v1533_v31   ;;  %v1061_v34 = vadd.f32 %v1810_v52, %v1060_v32  ;;  %v1188_v50 = vadd.f32 %v1125_v33, %v1124_v30  ;;  %v2241_v14 = vpop.f32.mrb[0].mxu1 }
  0xfc   :  { %v2243_v15 = vpop.f32.mrb[1].mxu1 }
  0xfd   :  { %v1189_v53 = vadd.f32 %v1188_v50, %v1126_v10  ;;  %v1814_v2 = vpop.f32.mrb[4].mxu0  ;;  %v1062_v6 = vadd.f32 %v1811_v28, %v1061_v34  ;;  %v2245_v7 = vpop.f32.mrb[2].mxu1 }
  0xfe   :  { %v501_v16 = vpop.f32.mrb[5].mxu0  ;;  %v1130_v46 = vmul.f32 %v1814_v2, %v1814_v2  ;;  %v1618_v20 = vpack.c.bf16 %v2245_v7, %v2241_v14  ;;  %v2249_v21 = vpop.f32.mrb[3].mxu1 }
  0xff   :  { %v1063_v36 = vadd.f32 %v1062_v6, %v501_v16  ;;  %v1128_v37 = vmul.f32 %v501_v16, %v501_v16  ;;  %v1190_v38 = vadd.f32 %v1189_v53, %v1127_v35  ;;  %v1815_v39 = vpop.f32.mrb[6].mxu0  ;;  %v1613_v60 = vpack.c.bf16 %v2249_v21, %v2243_v15 }
 0x100   :  { %v1548_v40 = vpack.c.bf16 %v1815_v39, %v1814_v2  ;;  %v504_v41 = vpop.f32.mrb[7].mxu0  ;;  %v1131_v49 = vmul.f32 %v1815_v39, %v1815_v39  ;;  %1737 = vst [vmem:[%s2521_s4 + $0x88] sm:$0xff] %v1618_v20  }
 0x101   :  { %v1191_v42 = vadd.f32 %v1190_v38, %v1128_v37  ;;  %v1543_v43 = vpack.c.bf16 %v504_v41, %v501_v16  ;;  %v1064_v44 = vadd.f32 %v1063_v36, %v504_v41  ;;  %v1129_v45 = vmul.f32 %v504_v41, %v504_v41  ;;  %1736 = vst [vmem:[%s2521_s4 + $0x80] sm:$0xff] %v1613_v60  }
 0x102   :  { %1723 = vst [vmem:[%s2521_s4 + $0x18] sm:$0xff] %v1548_v40  }
 0x103   :  { %1722 = vst [vmem:[%s2521_s4 + $0x10] sm:$0xff] %v1543_v43   ;;  %v1065_v47 = vadd.f32 %v1814_v2, %v1064_v44  ;;  %v1192_v48 = vadd.f32 %v1191_v42, %v1129_v45 }
 0x105   :  { %v1193_v51 = vadd.f32 %v1192_v48, %v1130_v46  ;;  %v1818_v54 = vpop.f32.mrb[8].mxu0  ;;  %v1066_v55 = vadd.f32 %v1815_v39, %v1065_v47  ;;  %v2265_v33 = vpop.f32.mrb[4].mxu1 }
 0x106   :  { %v517_v56 = vpop.f32.mrb[9].mxu0  ;;  %v1134_v9 = vmul.f32 %v1818_v54, %v1818_v54  ;;  %v2267_v10 = vpop.f32.mrb[5].mxu1 }
 0x107   :  { %v1067_v25 = vadd.f32 %v1066_v55, %v517_v56  ;;  %v1132_v57 = vmul.f32 %v517_v56, %v517_v56  ;;  %v1194_v59 = vadd.f32 %v1193_v51, %v1131_v49  ;;  %v1819_v61 = vpop.f32.mrb[10].mxu0  ;;  %v2269_v2 = vpop.f32.mrb[6].mxu1 }
 0x108   :  { %v1558_v62 = vpack.c.bf16 %v1819_v61, %v1818_v54  ;;  %v520_v63 = vpop.f32.mrb[11].mxu0  ;;  %v1135_v17 = vmul.f32 %v1819_v61, %v1819_v61  ;;  %v1628_v16 = vpack.c.bf16 %v2269_v2, %v2265_v33  ;;  %v2273_v36 = vpop.f32.mrb[7].mxu1 }
 0x109   :  { %v1195_v0 = vadd.f32 %v1194_v59, %v1132_v57  ;;  %v1553_v1 = vpack.c.bf16 %v520_v63, %v517_v56  ;;  %v1068_v4 = vadd.f32 %v1067_v25, %v520_v63  ;;  %v1133_v8 = vmul.f32 %v520_v63, %v520_v63 }
 0x10a   :  { %1725 = vst [vmem:[%s2521_s4 + $0x28] sm:$0xff] %v1558_v62   ;;  %v1623_v41 = vpack.c.bf16 %v2273_v36, %v2267_v10  ;;  %1739 = vst [vmem:[%s2521_s4 + $0x98] sm:$0xff] %v1628_v16  }
 0x10b   :  { %1724 = vst [vmem:[%s2521_s4 + $0x20] sm:$0xff] %v1553_v1   ;;  %v1069_v11 = vadd.f32 %v1818_v54, %v1068_v4  ;;  %v1196_v13 = vadd.f32 %v1195_v0, %v1133_v8 }
 0x10c   :  { %1738 = vst [vmem:[%s2521_s4 + $0x90] sm:$0xff] %v1623_v41  }
 0x10d   :  { %v1197_v18 = vadd.f32 %v1196_v13, %v1134_v9  ;;  %v1822_v3 = vpop.f32.mrb[12].mxu0  ;;  %v1070_v58 = vadd.f32 %v1819_v61, %v1069_v11 }
 0x10e   :  { %v533_v19 = vpop.f32.mrb[13].mxu0  ;;  %v1138_v30 = vmul.f32 %v1822_v3, %v1822_v3  ;;  %v2289_v54 = vpop.f32.mrb[8].mxu1 }
 0x10f   :  { %v1071_v22 = vadd.f32 %v1070_v58, %v533_v19  ;;  %v1136_v23 = vmul.f32 %v533_v19, %v533_v19  ;;  %v1198_v24 = vadd.f32 %v1197_v18, %v1135_v17  ;;  %v1823_v26 = vpop.f32.mrb[14].mxu0  ;;  %v2291_v55 = vpop.f32.mrb[9].mxu1 }
 0x110   :  { %v1568_v27 = vpack.c.bf16 %v1823_v26, %v1822_v3  ;;  %v536_v52 = vpop.f32.mrb[15].mxu0  ;;  %v1139_v34 = vmul.f32 %v1823_v26, %v1823_v26  ;;  %v2293_v61 = vpop.f32.mrb[10].mxu1 }
 0x111   :  { %v1199_v12 = vadd.f32 %v1198_v24, %v1136_v23  ;;  %v1563_v28 = vpack.c.bf16 %v536_v52, %v533_v19  ;;  %v1072_v29 = vadd.f32 %v1071_v22, %v536_v52  ;;  %v1137_v5 = vmul.f32 %v536_v52, %v536_v52  ;;  %v2297_v0 = vpop.f32.mrb[11].mxu1 }
 0x112   :  { %1727 = vst [vmem:[%s2521_s4 + $0x38] sm:$0xff] %v1568_v27   ;;  %v1638_v63 = vpack.c.bf16 %v2293_v61, %v2289_v54  ;;  %v1633_v11 = vpack.c.bf16 %v2297_v0, %v2291_v55 }
 0x113   :  { %1726 = vst [vmem:[%s2521_s4 + $0x30] sm:$0xff] %v1563_v28   ;;  %v1073_v31 = vadd.f32 %v1822_v3, %v1072_v29  ;;  %v1200_v32 = vadd.f32 %v1199_v12, %v1137_v5 }
 0x114   :  { %1741 = vst [vmem:[%s2521_s4 + $0xa8] sm:$0xff] %v1638_v63   ;;  %1740 = vst [vmem:[%s2521_s4 + $0xa0] sm:$0xff] %v1633_v11  }
 0x115   :  { %v1201_v50 = vadd.f32 %v1200_v32, %v1138_v30  ;;  %v1826_v35 = vpop.f32.mrb[16].mxu0  ;;  %v1074_v53 = vadd.f32 %v1823_v26, %v1073_v31 }
 0x116   :  { %v549_v6 = vpop.f32.mrb[17].mxu0  ;;  %v1142_v48 = vmul.f32 %v1826_v35, %v1826_v35 }
 0x117   :  { %v1075_v37 = vadd.f32 %v1074_v53, %v549_v6  ;;  %v1140_v38 = vmul.f32 %v549_v6, %v549_v6  ;;  %v1202_v39 = vadd.f32 %v1201_v50, %v1139_v34  ;;  %v1827_v40 = vpop.f32.mrb[18].mxu0 }
 0x118   :  { %v1578_v42 = vpack.c.bf16 %v1827_v40, %v1826_v35  ;;  %v552_v43 = vpop.f32.mrb[19].mxu0  ;;  %v1143_v56 = vmul.f32 %v1827_v40, %v1827_v40  ;;  %v2313_v24 = vpop.f32.mrb[12].mxu1 }
 0x119   :  { %v1203_v44 = vadd.f32 %v1202_v39, %v1140_v38  ;;  %v1573_v45 = vpack.c.bf16 %v552_v43, %v549_v6  ;;  %v1076_v46 = vadd.f32 %v1075_v37, %v552_v43  ;;  %v1141_v47 = vmul.f32 %v552_v43, %v552_v43  ;;  %v2315_v26 = vpop.f32.mrb[13].mxu1 }
 0x11a   :  { %1729 = vst [vmem:[%s2521_s4 + $0x48] sm:$0xff] %v1578_v42   ;;  %v2317_v28 = vpop.f32.mrb[14].mxu1 }
 0x11b   :  { %1728 = vst [vmem:[%s2521_s4 + $0x40] sm:$0xff] %v1573_v45   ;;  %v1077_v49 = vadd.f32 %v1826_v35, %v1076_v46  ;;  %v1204_v51 = vadd.f32 %v1203_v44, %v1141_v47  ;;  %v1648_v5 = vpack.c.bf16 %v2317_v28, %v2313_v24  ;;  %v2321_v30 = vpop.f32.mrb[15].mxu1 }
 0x11c   :  { %v1643_v35 = vpack.c.bf16 %v2321_v30, %v2315_v26 }
 0x11d   :  { %v1205_v25 = vadd.f32 %v1204_v51, %v1142_v48  ;;  %v1830_v57 = vpop.f32.mrb[20].mxu0  ;;  %v1078_v59 = vadd.f32 %v1827_v40, %v1077_v49  ;;  %1743 = vst [vmem:[%s2521_s4 + $0xb8] sm:$0xff] %v1648_v5  }
 0x11e   :  { %v565_v62 = vpop.f32.mrb[21].mxu0  ;;  %v1146_v20 = vmul.f32 %v1830_v57, %v1830_v57  ;;  %1742 = vst [vmem:[%s2521_s4 + $0xb0] sm:$0xff] %v1643_v35   ;;  %v1157_v35 = vmul.f32 %v2249_v21, %v2249_v21 }
 0x11f   :  { %v1079_v1 = vadd.f32 %v1078_v59, %v565_v62  ;;  %v1144_v4 = vmul.f32 %v565_v62, %v565_v62  ;;  %v1206_v8 = vadd.f32 %v1205_v25, %v1143_v56  ;;  %v1831_v9 = vpop.f32.mrb[22].mxu0 }
 0x120   :  { %v1588_v13 = vpack.c.bf16 %v1831_v9, %v1830_v57  ;;  %v568_v17 = vpop.f32.mrb[23].mxu0  ;;  %v1147_v60 = vmul.f32 %v1831_v9, %v1831_v9  ;;  %v2337_v43 = vpop.f32.mrb[16].mxu1 }
 0x121   :  { %v1207_v18 = vadd.f32 %v1206_v8, %v1144_v4  ;;  %v1583_v3 = vpack.c.bf16 %v568_v17, %v565_v62  ;;  %v1080_v58 = vadd.f32 %v1079_v1, %v568_v17  ;;  %v1145_v19 = vmul.f32 %v568_v17, %v568_v17  ;;  %v2339_v44 = vpop.f32.mrb[17].mxu1 }
 0x122   :  { %1731 = vst [vmem:[%s2521_s4 + $0x58] sm:$0xff] %v1588_v13   ;;  %v2341_v49 = vpop.f32.mrb[18].mxu1 }
 0x123   :  { %1730 = vst [vmem:[%s2521_s4 + $0x50] sm:$0xff] %v1583_v3   ;;  %v1081_v22 = vadd.f32 %v1830_v57, %v1080_v58  ;;  %v1208_v23 = vadd.f32 %v1207_v18, %v1145_v19  ;;  %v1658_v56 = vpack.c.bf16 %v2341_v49, %v2337_v43  ;;  %v2345_v25 = vpop.f32.mrb[19].mxu1 }
 0x124   :  { %v1653_v1 = vpack.c.bf16 %v2345_v25, %v2339_v44 }
 0x125   :  { %v1209_v27 = vadd.f32 %v1208_v23, %v1146_v20  ;;  %v1834_v52 = vpop.f32.mrb[24].mxu0  ;;  %v1082_v12 = vadd.f32 %v1831_v9, %v1081_v22  ;;  %1745 = vst [vmem:[%s2521_s4 + $0xc8] sm:$0xff] %v1658_v56  }
 0x126   :  { %v581_v29 = vpop.f32.mrb[25].mxu0  ;;  %v1150_v40 = vmul.f32 %v1834_v52, %v1834_v52  ;;  %1744 = vst [vmem:[%s2521_s4 + $0xc0] sm:$0xff] %v1653_v1  }
 0x127   :  { %v1083_v31 = vadd.f32 %v1082_v12, %v581_v29  ;;  %v1148_v32 = vmul.f32 %v581_v29, %v581_v29  ;;  %v1210_v34 = vadd.f32 %v1209_v27, %v1147_v60  ;;  %v1835_v50 = vpop.f32.mrb[26].mxu0  ;;  %v1156_v27 = vmul.f32 %v2243_v15, %v2243_v15 }
 0x128   :  { %v1598_v53 = vpack.c.bf16 %v1835_v50, %v1834_v52  ;;  %v584_v6 = vpop.f32.mrb[27].mxu0  ;;  %v1151_v45 = vmul.f32 %v1835_v50, %v1835_v50  ;;  %v2361_v19 = vpop.f32.mrb[20].mxu1 }
 0x129   :  { %v1211_v16 = vadd.f32 %v1210_v34, %v1148_v32  ;;  %v1593_v37 = vpack.c.bf16 %v584_v6, %v581_v29  ;;  %v1084_v38 = vadd.f32 %v1083_v31, %v584_v6  ;;  %v1149_v39 = vmul.f32 %v584_v6, %v584_v6  ;;  %v2363_v20 = vpop.f32.mrb[21].mxu1 }
 0x12a   :  { %1733 = vst [vmem:[%s2521_s4 + $0x68] sm:$0xff] %v1598_v53  }
 0x12b   :  { %1732 = vst [vmem:[%s2521_s4 + $0x60] sm:$0xff] %v1593_v37   ;;  %v1085_v41 = vadd.f32 %v1834_v52, %v1084_v38  ;;  %v1212_v42 = vadd.f32 %v1211_v16, %v1149_v39  ;;  %v2367_v52 = vpop.f32.mrb[22].mxu1  ;;  %v1159_v38 = vmul.f32 %v2245_v7, %v2245_v7 }
 0x12c   :  { %v1668_v12 = vpack.c.bf16 %v2367_v52, %v2361_v19  ;;  %v2371_v29 = vpop.f32.mrb[23].mxu1 }
 0x12d   :  { %v1213_v46 = vadd.f32 %v1212_v42, %v1150_v40  ;;  %v1838_v47 = vpop.f32.mrb[28].mxu0  ;;  %v1086_v48 = vadd.f32 %v1835_v50, %v1085_v41  ;;  %v1663_v32 = vpack.c.bf16 %v2371_v29, %v2363_v20  ;;  %v1160_v40 = vmul.f32 %v2267_v10, %v2267_v10 }
 0x12e   :  { %v597_v51 = vpop.f32.mrb[29].mxu0  ;;  %v1154_v18 = vmul.f32 %v1838_v47, %v1838_v47  ;;  %1747 = vst [vmem:[%s2521_s4 + $0xd8] sm:$0xff] %v1668_v12   ;;  %v1168_v12 = vmul.f32 %v2315_v26, %v2315_v26 }
 0x12f   :  { %v1087_v57 = vadd.f32 %v1086_v48, %v597_v51  ;;  %v1152_v59 = vmul.f32 %v597_v51, %v597_v51  ;;  %v1214_v62 = vadd.f32 %v1213_v46, %v1151_v45  ;;  %v1839_v63 = vpop.f32.mrb[30].mxu0  ;;  %1746 = vst [vmem:[%s2521_s4 + $0xd0] sm:$0xff] %v1663_v32  }
 0x130   :  { %v1608_v4 = vpack.c.bf16 %v1839_v63, %v1838_v47  ;;  %v600_v8 = vpop.f32.mrb[31].mxu0  ;;  %v1155_v22 = vmul.f32 %v1839_v63, %v1839_v63  ;;  %v2388_v16 = vpop.f32.mrb[24].mxu1 }
 0x131   :  { %v1215_v9 = vadd.f32 %v1214_v62, %v1152_v59  ;;  %v1603_v11 = vpack.c.bf16 %v600_v8, %v597_v51  ;;  %v1088_v13 = vadd.f32 %v1087_v57, %v600_v8  ;;  %v1153_v17 = vmul.f32 %v600_v8, %v600_v8  ;;  %v2390_v37 = vpop.f32.mrb[25].mxu1 }
 0x132   :  { %1735 = vst [vmem:[%s2521_s4 + $0x78] sm:$0xff] %v1608_v4   ;;  %v2397_v41 = vpop.f32.mrb[26].mxu1  ;;  %v1161_v51 = vmul.f32 %v2273_v36, %v2273_v36  ;;  %v1164_v4 = vmul.f32 %v2291_v55, %v2291_v55 }
 0x133   :  { %1734 = vst [vmem:[%s2521_s4 + $0x70] sm:$0xff] %v1603_v11   ;;  %v1089_v3 = vadd.f32 %v1838_v47, %v1088_v13  ;;  %v1216_v58 = vadd.f32 %v1215_v9, %v1153_v17  ;;  %v1678_v42 = vpack.c.bf16 %v2397_v41, %v2388_v16 }
 0x135   :  { %v1217_v23 = vadd.f32 %v1216_v58, %v1154_v18  ;;  %v1090_v60 = vadd.f32 %v1839_v63, %v1089_v3  ;;  %1749 = vst [vmem:[%s2521_s4 + $0xe8] sm:$0xff] %v1678_v42   ;;  %v1163_v63 = vmul.f32 %v2269_v2, %v2269_v2  ;;  %v1165_v3 = vmul.f32 %v2297_v0, %v2297_v0 }
 0x137   :  { %v1091_v5 = vadd.f32 %v1090_v60, %v2243_v15  ;;  %v1218_v31 = vadd.f32 %v1217_v23, %v1155_v22  ;;  %v1158_v15 = vmul.f32 %v2241_v14, %v2241_v14  ;;  %v1167_v23 = vmul.f32 %v2293_v61, %v2293_v61 }
 0x139   :  { %v1219_v34 = vadd.f32 %v1218_v31, %v1156_v27  ;;  %v1092_v50 = vadd.f32 %v1091_v5, %v2249_v21 }
 0x13b   :  { %v1093_v53 = vadd.f32 %v2241_v14, %v1092_v50  ;;  %v1220_v6 = vadd.f32 %v1219_v34, %v1157_v35  ;;  %v2401_v14 = vpop.f32.mrb[27].mxu1  ;;  %v1169_v34 = vmul.f32 %v2321_v30, %v2321_v30 }
 0x13c   :  { %v1673_v47 = vpack.c.bf16 %v2401_v14, %v2390_v37  ;;  %v2418_v59 = vpop.f32.mrb[28].mxu1 }
 0x13d   :  { %v1221_v39 = vadd.f32 %v1220_v6, %v1158_v15  ;;  %v1094_v21 = vadd.f32 %v2245_v7, %v1093_v53  ;;  %v2420_v62 = vpop.f32.mrb[29].mxu1 }
 0x13e   :  { %1748 = vst [vmem:[%s2521_s4 + $0xe0] sm:$0xff] %v1673_v47   ;;  %v2427_v8 = vpop.f32.mrb[30].mxu1 }
 0x13f   :  { %v1095_v45 = vadd.f32 %v1094_v21, %v2267_v10  ;;  %v1222_v46 = vadd.f32 %v1221_v39, %v1159_v38  ;;  %v1162_v10 = vmul.f32 %v2265_v33, %v2265_v33  ;;  %v1688_v9 = vpack.c.bf16 %v2427_v8, %v2418_v59 }
 0x140   :  { %v1173_v21 = vmul.f32 %v2345_v25, %v2345_v25 }
 0x141   :  { %v1223_v7 = vadd.f32 %v1222_v46, %v1160_v40  ;;  %v1096_v48 = vadd.f32 %v1095_v45, %v2273_v36  ;;  %1751 = vst [vmem:[%s2521_s4 + $0xf8] sm:$0xff] %v1688_v9   ;;  %v1181_v9 = vmul.f32 %v2401_v14, %v2401_v14 }
 0x143   :  { %v1097_v56 = vadd.f32 %v2265_v33, %v1096_v48  ;;  %v1224_v57 = vadd.f32 %v1223_v7, %v1161_v51  ;;  %v2431_v33 = vpop.f32.mrb[31].mxu1  ;;  %v1177_v51 = vmul.f32 %v2371_v29, %v2371_v29 }
 0x144   :  { %v1683_v17 = vpack.c.bf16 %v2431_v33, %v2420_v62 }
 0x145   :  { %v1225_v1 = vadd.f32 %v1224_v57, %v1162_v10  ;;  %v1098_v36 = vadd.f32 %v2269_v2, %v1097_v56 }
 0x146   :  { %1750 = vst [vmem:[%s2521_s4 + $0xf0] sm:$0xff] %v1683_v17  }
 0x147   :  { %v1099_v11 = vadd.f32 %v1098_v36, %v2291_v55  ;;  %v1226_v13 = vadd.f32 %v1225_v1, %v1163_v63  ;;  %v1166_v55 = vmul.f32 %v2289_v54, %v2289_v54 }
 0x149   :  { %v1227_v2 = vadd.f32 %v1226_v13, %v1164_v4  ;;  %v1100_v18 = vadd.f32 %v1099_v11, %v2297_v0 }
 0x14b   :  { %v1101_v58 = vadd.f32 %v2289_v54, %v1100_v18  ;;  %v1228_v22 = vadd.f32 %v1227_v2, %v1165_v3  ;;  %v1170_v54 = vmul.f32 %v2313_v24, %v2313_v24 }
 0x14d   :  { %v1229_v60 = vadd.f32 %v1228_v22, %v1166_v55  ;;  %v1102_v27 = vadd.f32 %v2293_v61, %v1101_v58  ;;  %v1171_v61 = vmul.f32 %v2317_v28, %v2317_v28  ;;  %v1185_v58 = vmul.f32 %v2431_v33, %v2431_v33 }
 0x14f   :  { %v1103_v0 = vadd.f32 %v1102_v27, %v2315_v26  ;;  %v1230_v5 = vadd.f32 %v1229_v60, %v1167_v23  ;;  %v1172_v26 = vmul.f32 %v2339_v44, %v2339_v44 }
 0x151   :  { %v1231_v31 = vadd.f32 %v1230_v5, %v1168_v12  ;;  %v1104_v32 = vadd.f32 %v1103_v0, %v2321_v30 }
 0x153   :  { %v1105_v50 = vadd.f32 %v2313_v24, %v1104_v32  ;;  %v1232_v35 = vadd.f32 %v1231_v31, %v1169_v34  ;;  %v1174_v24 = vmul.f32 %v2337_v43, %v2337_v43 }
 0x155   :  { %v1233_v15 = vadd.f32 %v1232_v35, %v1170_v54  ;;  %v1106_v53 = vadd.f32 %v2317_v28, %v1105_v50  ;;  %v1175_v28 = vmul.f32 %v2341_v49, %v2341_v49 }
 0x157   :  { %v1107_v6 = vadd.f32 %v1106_v53, %v2339_v44  ;;  %v1234_v38 = vadd.f32 %v1233_v15, %v1171_v61  ;;  %v1176_v44 = vmul.f32 %v2363_v20, %v2363_v20 }
 0x159   :  { %v1235_v39 = vadd.f32 %v1234_v38, %v1172_v26  ;;  %v1108_v30 = vadd.f32 %v1107_v6, %v2345_v25 }
 0x15b   :  { %v1109_v40 = vadd.f32 %v2337_v43, %v1108_v30  ;;  %v1236_v42 = vadd.f32 %v1235_v39, %v1173_v21  ;;  %v1178_v43 = vmul.f32 %v2361_v19, %v2361_v19 }
 0x15d   :  { %v1237_v45 = vadd.f32 %v1236_v42, %v1174_v24  ;;  %v1110_v46 = vadd.f32 %v2341_v49, %v1109_v40  ;;  %v1179_v49 = vmul.f32 %v2367_v52, %v2367_v52 }
 0x15f   :  { %v1111_v47 = vadd.f32 %v1110_v46, %v2363_v20  ;;  %v1238_v7 = vadd.f32 %v1237_v45, %v1175_v28  ;;  %v1180_v20 = vmul.f32 %v2390_v37, %v2390_v37 }
 0x161   :  { %v1239_v48 = vadd.f32 %v1238_v7, %v1176_v44  ;;  %v1112_v25 = vadd.f32 %v1111_v47, %v2371_v29 }
 0x163   :  { %v1113_v10 = vadd.f32 %v2361_v19, %v1112_v25  ;;  %v1240_v56 = vadd.f32 %v1239_v48, %v1177_v51  ;;  %v1182_v19 = vmul.f32 %v2388_v16, %v2388_v16 }
 0x165   :  { %v1241_v57 = vadd.f32 %v1240_v56, %v1178_v43  ;;  %v1114_v63 = vadd.f32 %v2367_v52, %v1113_v10  ;;  %v1183_v52 = vmul.f32 %v2397_v41, %v2397_v41 }
 0x167   :  { %v1115_v1 = vadd.f32 %v1114_v63, %v2390_v37  ;;  %v1242_v36 = vadd.f32 %v1241_v57, %v1179_v49  ;;  %v1184_v37 = vmul.f32 %v2420_v62, %v2420_v62 }
 0x169   :  { %v1243_v4 = vadd.f32 %v1242_v36, %v1180_v20  ;;  %v1116_v29 = vadd.f32 %v1115_v1, %v2401_v14 }
 0x16b   :  { %v1117_v11 = vadd.f32 %v2388_v16, %v1116_v29  ;;  %v1244_v13 = vadd.f32 %v1243_v4, %v1181_v9  ;;  %v1186_v16 = vmul.f32 %v2418_v59, %v2418_v59 }
 0x16d   :  { %v1245_v17 = vadd.f32 %v1244_v13, %v1182_v19  ;;  %v1118_v2 = vadd.f32 %v2397_v41, %v1117_v11  ;;  %v1187_v41 = vmul.f32 %v2427_v8, %v2427_v8 }
 0x16f   :  { %v1119_v18 = vadd.f32 %v1118_v2, %v2420_v62  ;;  %v1246_v3 = vadd.f32 %v1245_v17, %v1183_v52 }
 0x171   :  { %v1247_v55 = vadd.f32 %v1246_v3, %v1184_v37  ;;  %v1120_v14 = vadd.f32 %v1119_v18, %v2431_v33 }
 0x173   :  { %v1121_v22 = vadd.f32 %v2418_v59, %v1120_v14  ;;  %v1248_v23 = vadd.f32 %v1247_v55, %v1185_v58 }
 0x175   :  { %v1122_v60 = vadd.f32 %v2427_v8, %v1121_v22  ;;  %v1249_v27 = vadd.f32 %v1248_v23, %v1186_v16 }
 0x177   :  { %1123 = vst [vmem:[%s2522_s5] sm:$0xff] %v1122_v60  ;;  %v1250_v62 = vadd.f32 %v1249_v27, %v1187_v41 }
 0x179   :  { %1251 = vst [vmem:[%s2523_s6] sm:$0xff] %v1250_v62 }

// kernel: bottleneck_block.5
= control target key start
LH: loop header
LB: loop body
LE: loop exit
PB: predicated region body
PF: predicated region fallthrough
CT: control target
= control target key end

     0   :  { %s5016_s21 = smov 0   ;;  %s6228_s0 = inlined_call_operand.vmem [shape: bf16[2,16,16,128], index: 0, kind: input, shape index: {}]   ;;  %s6229_s1 = inlined_call_operand.vmem [shape: f32[1,128], index: 1, kind: input, shape index: {}]   ;;  %s6230_s2 = inlined_call_operand.vmem [shape: f32[1,128], index: 2, kind: input, shape index: {}]   ;;  %s6231_s3 = inlined_call_operand.vmem [shape: bf16[1152,128], index: 3, kind: input, shape index: {}]   ;;  %s6232_s4 = inlined_call_operand.vmem [shape: bf16[2,16,16,128], index: 4, kind: output, shape index: {0}]   ;;  %s6233_s5 = inlined_call_operand.vmem [shape: f32[16,128], index: 5, kind: output, shape index: {1}]   ;;  %s6234_s6 = inlined_call_operand.vmem [shape: f32[16,128], index: 6, kind: output, shape index: {2}]  }
   0x1 LB: > { %s3644_s22 = sadd.s32 4294967295, %s4978_s21   ;;  %p3648_p0 = scmp.ge.s32.totalorder %s4978_s21, 1  ;;  %s4978_s21 = sphi %s5016_s21, %s17_s21  }
   0x2   : > { %p217_p1 = scmp.lt.s32.totalorder %s4978_s21, 3 }
   0x4   : > { %p218_p2 = pnand %p3648_p0, %p217_p1 }
   0x6   : > { %221 = sbr.rel (%p218_p2) target bundleno = 627 (0x273), region = 36 }
   0xd   : > { %v5027_v0 = vld [vmem:[%s6231_s3 + $0x140] sm:$0xff]   ;;  %v5040_v3 = vld [vmem:[%s6231_s3 + $0x148] sm:$0xff]   ;;  %v5052_v6 = vld [vmem:[%s6231_s3 + $0x150] sm:$0xff]   ;;  %v4980_v8 = vmov 0   ;;  %p255_p3 = scmp.lt.s32.totalorder %s3644_s22, 1  ;;  %vm281_vm0 = vcmask 1040384  }
   0xe   : > { %v4827_v1 = vld [vmem:[%s6231_s3 + $0x100] sm:$0xff]   ;;  %4641 = vmatprep.subr.bf16.mxu1 %v5027_v0  ;;  %v4830_v4 = vld [vmem:[%s6231_s3 + $0x108] sm:$0xff]   ;;  %v4833_v7 = vld [vmem:[%s6231_s3 + $0x110] sm:$0xff]   ;;  %274 = vst [vmem:[#allocation2] sm:$0xf] %v4980_v8  ;;  %vm987_vm5 = vcmask 1043456  }
   0xf   : > { %v4828_v2 = vld [vmem:[%s6231_s3 + $0xc0] sm:$0xff]   ;;  %4649 = vmatpush3.bf16.msra.mxu1 %v5027_v0  ;;  %4089 = vmatprep.subr.bf16.mxu0 %v4827_v1  ;;  %v4831_v5 = vld [vmem:[%s6231_s3 + $0xc8] sm:$0xff]   ;;  %275 = vst [vmem:[#allocation2 + $0x4] sm:$0xf] %v4980_v8  ;;  %276 = vst [vmem:[#allocation2 + $0x8] sm:$0x1] %v4980_v8 }
  0x10   : > { %4090 = vmatpush3.bf16.msra.mxu0 %v4828_v2  ;;  %4642 = vmatprep.subr.bf16.mxu1 %v5040_v3  ;;  %278 = vst [vmem:[#allocation2 + $0xcc] sm:$0xf] %v4980_v8  ;;  %279 = vst [vmem:[#allocation2 + $0xd0] sm:$0xf] %v4980_v8  ;;  %v4834_v9 = vld [vmem:[%s6231_s3 + $0xd0] sm:$0xff]   ;;  %v5065_v10 = vld [vmem:[%s6231_s3 + $0x158] sm:$0xff]  }
  0x11   : > { %4091 = vmatprep.subr.bf16.mxu0 %v4830_v4  ;;  %280 = vst [vmem:[#allocation2 + $0xd4] sm:$0x1] %v4980_v8  ;;  %v4836_v11 = vld [vmem:[%s6231_s3 + $0x118] sm:$0xff]   ;;  %v5080_v13 = vld [vmem:[%s6231_s3 + $0x160] sm:$0xff]   ;;  %s6273_s22 = smov (!%p255_p3, %s3644_s22), 1  ;;  %v5097_v16 = vld [vmem:[%s6231_s3 + $0x168] sm:$0xff]  }
  0x12   : > { %v4837_v12 = vld [vmem:[%s6231_s3 + $0xd8] sm:$0xff]   ;;  %v4839_v14 = vld [vmem:[%s6231_s3 + $0x120] sm:$0xff]   ;;  %v4842_v17 = vld [vmem:[%s6231_s3 + $0x128] sm:$0xff]   ;;  %s3849_s11 = sshll.u32 %s6273_s22, 7  ;;  %vm282_vm1 = vsmask.f32 256 }
  0x13   : > { %4650 = vmatpush3.bf16.msra.mxu1 %v5040_v3  ;;  %v4840_v15 = vld [vmem:[%s6231_s3 + $0xe0] sm:$0xff]   ;;  %v4843_v18 = vld [vmem:[%s6231_s3 + $0xe8] sm:$0xff]   ;;  %v5111_v19 = vld [vmem:[%s6231_s3 + $0x170] sm:$0xff]   ;;  %s5121_s20 = scalar_lea.vmem %s6228_s0, %s3849_s11  ;;  %vm338_vm2 = vsmask.f32 7938  ;;  %vm1624_vm9 = vcmask 1046528   ;;  %s6169_s17 = scalar_lea.vmem %s6232_s4, %s3849_s11 }
  0x14   : > { %4092 = vmatpush3.bf16.msra.mxu0 %v4831_v5  ;;  %4643 = vmatprep.subr.bf16.mxu1 %v5052_v6  ;;  %v4845_v20 = vld [vmem:[%s6231_s3 + $0x130] sm:$0xff]   ;;  %v4847_v22 = vld [vmem:[%s6231_s3 + $0x178] sm:$0xff]   ;;  %v311_v24 = vld [vmem:[#allocation2 + $0x6c] sm:$0x1]  ;;  %vm664_vm6 = vsmask.f32 4368 }
  0x15   : > { %4093 = vmatprep.subr.bf16.mxu0 %v4833_v7  ;;  %v4846_v21 = vld [vmem:[%s6231_s3 + $0xf0] sm:$0xff]   ;;  %v4848_v23 = vld [vmem:[%s6231_s3 + $0x138] sm:$0xff]   ;;  %vm5136_vm3 = vmand %vm281_vm0, %vm282_vm1  ;;  %vm1335_vm10 = vsmask.f32 7424  ;;  %s3653_s11 = sshll.u32 %s6273_s22, 3 }
  0x16   : > { %v367_v26 = vld [vmem:[#allocation2 + $0x74] sm:$0x1]  ;;  %v4066_v27 = vld [vmem:[%s5121_s20 + $0x40] sm:$0xff]   ;;  %v312_v28 = vsel %vm5136_vm3, 0, %v311_v24  ;;  %vm5145_vm4 = vmand %vm281_vm0, %vm338_vm2  ;;  %s272_s25 = scalar_lea.vmem %s6234_s6, %s3653_s11 }
  0x17   : > { %4651 = vmatpush3.bf16.msra.mxu1 %v5052_v6  ;;  %v3949_v30 = vunpack.c.l.bf16 %v4066_v27  ;;  %v3950_v31 = vunpack.c.h.bf16 %v4066_v27  ;;  %v5152_v32 = vld [vmem:[%s6229_s1] ss:$0 sm:$0xff]  ;;  %313 = vst [vmem:[#allocation2 + $0x6c] sm:$0x1] %v312_v28  ;;  %v368_v34 = vsel %vm5145_vm4, 0, %v367_v26  ;;  %v4852_v37 = vld [vmem:[%s6231_s3 + $0xf8] sm:$0xff]   ;;  %vm5192_vm7 = vmor %vm282_vm1, %vm664_vm6 }
  0x18   : > { %4094 = vmatpush3.bf16.msra.mxu0 %v4834_v9  ;;  %4644 = vmatprep.subr.bf16.mxu1 %v5065_v10  ;;  %v5157_v33 = vld [vmem:[%s6230_s2] ss:$0 sm:$0xff]  ;;  %369 = vst [vmem:[#allocation2 + $0x74] sm:$0x1] %v368_v34  ;;  %v314_v38 = vld [vmem:[#allocation2 + $0x78] sm:$0x1]  ;;  %vm5202_vm8 = vmand %vm987_vm5, %vm338_vm2 }
  0x19   : > { %4095 = vmatprep.subr.bf16.mxu0 %v4836_v11  ;;  %v481_v35 = vmul.f32 %v3949_v30, %v5152_v32  ;;  %v482_v36 = vmul.f32 %v3950_v31, %v5152_v32  ;;  %v315_v39 = vsel %vm5136_vm3, 0, %v314_v38  ;;  %v370_v40 = vld [vmem:[#allocation2 + $0x80] sm:$0x1]  ;;  %v4067_v41 = vld [vmem:[%s5121_s20 + $0x48] sm:$0xff]   ;;  %v343_v53 = vld [vmem:[#allocation2 + $0x14] sm:$0x1] }
  0x1a   : > { %316 = vst [vmem:[#allocation2 + $0x78] sm:$0x1] %v315_v39  ;;  %v371_v44 = vsel %vm5145_vm4, 0, %v370_v40  ;;  %v3953_v45 = vunpack.c.l.bf16 %v4067_v41  ;;  %v4856_v46 = vld [vmem:[%s6231_s3 + $0x40] sm:$0xff]   ;;  %v3954_v47 = vunpack.c.h.bf16 %v4067_v41  ;;  %v287_v48 = vld [vmem:[#allocation2 + $0xc] sm:$0x1] }
  0x1b   : > { %4652 = vmatpush3.bf16.msra.mxu1 %v5065_v10  ;;  %v520_v42 = vadd.f32 %v5157_v33, %v481_v35  ;;  %v521_v43 = vadd.f32 %v5157_v33, %v482_v36  ;;  %372 = vst [vmem:[#allocation2 + $0x80] sm:$0x1] %v371_v44  ;;  %v288_v52 = vsel %vm5136_vm3, 0, %v287_v48  ;;  %v3916_v54 = vld [vmem:[%s5121_s20] sm:$0xff]   ;;  %v344_v56 = vsel %vm5145_vm4, 0, %v343_v53  ;;  %v4068_v38 = vld [vmem:[%s5121_s20 + $0x50] sm:$0xff]  }
  0x1c   : > { %4096 = vmatpush3.bf16.msra.mxu0 %v4837_v12  ;;  %4645 = vmatprep.subr.bf16.mxu1 %v5080_v13  ;;  %v483_v51 = vmul.f32 %v3953_v45, %v5152_v32  ;;  %v484_v55 = vmul.f32 %v3954_v47, %v5152_v32  ;;  %289 = vst [vmem:[#allocation2 + $0xc] sm:$0x1] %v288_v52  ;;  %v3917_v57 = vunpack.c.l.bf16 %v3916_v54  ;;  %v3918_v58 = vunpack.c.h.bf16 %v3916_v54  ;;  %v317_v2 = vld [vmem:[#allocation2 + $0x84] sm:$0x1]  ;;  %v373_v9 = vld [vmem:[#allocation2 + $0x8c] sm:$0x1] }
  0x1d   : > { %4097 = vmatprep.subr.bf16.mxu0 %v4839_v14  ;;  %v552_v49 = vmax.f32 %v520_v42, 0.0  ;;  %v553_v50 = vmax.f32 %v521_v43, 0.0  ;;  %345 = vst [vmem:[#allocation2 + $0x14] sm:$0x1] %v344_v56  ;;  %v320_v43 = vld [vmem:[#allocation2 + $0x90] sm:$0x1]  ;;  %v3957_v52 = vunpack.c.l.bf16 %v4068_v38  ;;  %v3958_v56 = vunpack.c.h.bf16 %v4068_v38 }
  0x1e   : > { %v522_v61 = vadd.f32 %v5157_v33, %v483_v51  ;;  %v523_v62 = vadd.f32 %v5157_v33, %v484_v55  ;;  %v465_v63 = vmul.f32 %v3917_v57, %v5152_v32  ;;  %v466_v1 = vmul.f32 %v3918_v58, %v5152_v32  ;;  %v1045_v24 = vld [vmem:[#allocation2 + $0x6c] sm:$0xf]  ;;  %v4925_v25 = vld [vmem:[%s6231_s3 + $0x198] sm:$0xff]   ;;  %v4930_v29 = vld [vmem:[%s6231_s3 + $0x1a0] sm:$0xff]  }
  0x1f   : > { %4653 = vmatpush3.bf16.msra.mxu1 %v5080_v13  ;;  %v3867_v59 = vpack.c.bf16 %v552_v49, %v552_v49  ;;  %v3868_v60 = vpack.c.bf16 %v553_v50, %v553_v50  ;;  %v1049_v26 = vld [vmem:[#allocation2 + $0x74] sm:$0x1]  ;;  %v321_v57 = vsel %vm5136_vm3, 0, %v320_v43 }
  0x20   : > { %4098 = vmatpush3.bf16.msra.mxu0 %v4840_v15  ;;  %4646 = vmatprep.subr.bf16.mxu1 %v5097_v16  ;;  %v554_v11 = vmax.f32 %v522_v61, 0.0  ;;  %v555_v12 = vmax.f32 %v523_v62, 0.0  ;;  %v504_v14 = vadd.f32 %v5157_v33, %v465_v63  ;;  %v505_v15 = vadd.f32 %v5157_v33, %v466_v1  ;;  %322 = vst [vmem:[#allocation2 + $0x90] sm:$0x1] %v321_v57  ;;  %v376_v62 = vld [vmem:[#allocation2 + $0x98] sm:$0x1] }
  0x21   : > { %4099 = vmatprep.subr.bf16.mxu0 %v4842_v17  ;;  %v803_v4 = vshrl.u32 %v3867_v59, 16  ;;  %v806_v5 = vshll.u32 %v3867_v59, 16  ;;  %v811_v7 = vshrl.u32 %v3868_v60, 16  ;;  %v814_v8 = vshll.u32 %v3868_v60, 16  ;;  %v1052_v50 = vld [vmem:[#allocation2 + $0x78] sm:$0xf] }
  0x22   : > { %v3869_v27 = vpack.c.bf16 %v554_v11, %v554_v11  ;;  %v3870_v28 = vpack.c.bf16 %v555_v12, %v555_v12  ;;  %v536_v30 = vmax.f32 %v504_v14, 0.0  ;;  %v537_v31 = vmax.f32 %v505_v15, 0.0  ;;  %v1056_v53 = vld [vmem:[#allocation2 + $0x80] sm:$0x1]  ;;  %v4059_v14 = vld [vmem:[%s5121_s20 + $0x8] sm:$0xff]  }
  0x23   : > { %4654 = vmatpush3.bf16.msra.mxu1 %v5097_v16  ;;  %v486_v12 = vmul.f32 %v3958_v56, %v5152_v32 }
  0x24   : > { %4100 = vmatpush3.bf16.msra.mxu0 %v4843_v18  ;;  %4647 = vmatprep.subr.bf16.mxu1 %v5111_v19  ;;  %v805_v18 = vrot.slane %v803_v4, 7  ;;  %v820_v39 = vshrl.u32 %v3869_v27, 16  ;;  %v823_v40 = vshll.u32 %v3869_v27, 16  ;;  %v828_v41 = vshrl.u32 %v3870_v28, 16  ;;  %v989_v4 = vld [vmem:[#allocation2 + $0xc] sm:$0xf] }
  0x25   : > { %4101 = vmatprep.subr.bf16.mxu0 %v4845_v20  ;;  %v813_v20 = vrot.slane %v811_v7, 7  ;;  %v831_v42 = vshll.u32 %v3870_v28, 16  ;;  %v3851_v47 = vpack.c.bf16 %v536_v30, %v536_v30  ;;  %v3852_v51 = vpack.c.bf16 %v537_v31, %v537_v31  ;;  %v4069_v7 = vld [vmem:[%s5121_s20 + $0x58] sm:$0xff]  }
  0x26   : > { %v808_v34 = vor.u32 %v806_v5, %v805_v18  ;;  %v809_v35 = vrot.slane %v805_v18, 4  ;;  %v822_v48 = vrot.slane %v820_v39, 7  ;;  %v830_v49 = vrot.slane %v828_v41, 7 }
  0x27   : > { %4655 = vmatpush3.bf16.msra.mxu1 %v5111_v19  ;;  %v816_v36 = vor.u32 %v814_v8, %v813_v20  ;;  %v667_v54 = vshrl.u32 %v3851_v47, 16  ;;  %v670_v55 = vshll.u32 %v3851_v47, 16  ;;  %v675_v1 = vshrl.u32 %v3852_v51, 16  ;;  %v5236_v47 = vld [vmem:[%s5121_s20 + $0x60] sm:$0xff]  }
  0x28   : > { %4102 = vmatpush3.bf16.msra.mxu0 %v4846_v21  ;;  %4648 = vmatprep.subr.bf16.mxu1 %v4847_v22  ;;  %v318_v21 = vsel %vm5136_vm3, 0, %v317_v2  ;;  %v1046_v45 = vsel %vm5202_vm8, %v808_v34, %v1045_v24  ;;  %v825_v58 = vor.u32 %v823_v40, %v822_v48  ;;  %v826_v59 = vrot.slane %v822_v48, 4 }
  0x29   : > { %4103 = vmatprep.subr.bf16.mxu0 %v4848_v23  ;;  %319 = vst [vmem:[#allocation2 + $0x84] sm:$0x1] %v318_v21  ;;  %v817_v44 = vsel %vm5192_vm7, %v809_v35, %v816_v36  ;;  %1047 = vst [vmem:[#allocation2 + $0x6c] sm:$0xf] %v1046_v45  ;;  %v833_v60 = vor.u32 %v831_v42, %v830_v49  ;;  %v835_v61 = vrot.slane %v830_v49, 4  ;;  %v669_v63 = vrot.slane %v667_v54, 7 }
  0x2a   : > { %1048 = vst [vmem:[#allocation2 + $0x70] sm:$0xf] %v817_v44  ;;  %v678_v2 = vshll.u32 %v3852_v51, 16  ;;  %v485_v5 = vmul.f32 %v3957_v52, %v5152_v32  ;;  %v525_v24 = vadd.f32 %v5157_v33, %v486_v12  ;;  %v3961_v27 = vunpack.c.l.bf16 %v4069_v7  ;;  %v290_v35 = vld [vmem:[#allocation2 + $0x18] sm:$0x1]  ;;  %v5243_v52 = vld [vmem:[%s5121_s20 + $0x68] sm:$0xff]  }
  0x2b   : > { %4656 = vmatpush3.bf16.msra.mxu1 %v4847_v22  ;;  %v374_v22 = vsel %vm5145_vm4, 0, %v373_v9  ;;  %v834_v8 = vsel %vm5192_vm7, %v826_v59, %v833_v60  ;;  %v1053_v9 = vsel %vm5202_vm8, %v825_v58, %v1052_v50  ;;  %v1057_v11 = vsel %vm5136_vm3, %v835_v61, %v1056_v53  ;;  %v346_v58 = vld [vmem:[#allocation2 + $0x20] sm:$0x1] }
  0x2c   : > { %4104 = vmatpush3.bf16.msra.mxu0 %v4852_v37  ;;  %4225 = vmatprep.subr.bf16.mxu1 %v4856_v46  ;;  %375 = vst [vmem:[#allocation2 + $0x8c] sm:$0x1] %v374_v22  ;;  %v818_v37 = vrot.slane %v813_v20, 4  ;;  %1054 = vst [vmem:[#allocation2 + $0x78] sm:$0xf] %v1053_v9  ;;  %v672_v15 = vor.u32 %v670_v55, %v669_v63  ;;  %v673_v18 = vrot.slane %v669_v63, 4  ;;  %v3962_v28 = vunpack.c.h.bf16 %v4069_v7 }
  0x2d   : > { %4497 = vmatprep.subr.bf16.mxu0 %v5027_v0  ;;  %1055 = vst [vmem:[#allocation2 + $0x7c] sm:$0xf] %v834_v8  ;;  %1058 = vst [vmem:[#allocation2 + $0x80] sm:$0x1] %v1057_v11  ;;  %v677_v20 = vrot.slane %v675_v1, 7  ;;  %v524_v21 = vadd.f32 %v5157_v33, %v485_v5  ;;  %v3921_v36 = vunpack.c.l.bf16 %v4059_v14  ;;  %v487_v40 = vmul.f32 %v3961_v27, %v5152_v32 }
  0x2e   : > { %v1050_v46 = vsel %vm5136_vm3, %v818_v37, %v1049_v26  ;;  %v993_v22 = vld [vmem:[#allocation2 + $0x14] sm:$0x1]  ;;  %v377_v26 = vsel %vm5145_vm4, 0, %v376_v62  ;;  %v990_v34 = vsel %vm5202_vm8, %v672_v15, %v989_v4  ;;  %v488_v41 = vmul.f32 %v3962_v28, %v5152_v32 }
  0x2f   : > { %1051 = vst [vmem:[#allocation2 + $0x74] sm:$0x1] %v1050_v46  ;;  %v680_v31 = vor.u32 %v678_v2, %v677_v20  ;;  %378 = vst [vmem:[#allocation2 + $0x98] sm:$0x1] %v377_v26  ;;  %v682_v39 = vrot.slane %v677_v20, 4  ;;  %v3922_v42 = vunpack.c.h.bf16 %v4059_v14  ;;  %v556_v45 = vmax.f32 %v524_v21, 0.0 }
  0x30   : > { %v1164_v37 = vld [vmem:[#allocation2 + $0x6c] sm:$0xe]  ;;  %991 = vst [vmem:[#allocation2 + $0xc] sm:$0xf] %v990_v34  ;;  %v557_v46 = vmax.f32 %v525_v24, 0.0  ;;  %v526_v50 = vadd.f32 %v5157_v33, %v487_v40  ;;  %v527_v51 = vadd.f32 %v5157_v33, %v488_v41  ;;  %v291_v56 = vsel %vm5136_vm3, 0, %v290_v35 }
  0x31   : > { %v1120_v30 = vld [vmem:[#allocation2 + $0x70] sm:$0xf]  ;;  %v681_v44 = vsel %vm5192_vm7, %v673_v18, %v680_v31  ;;  %v994_v49 = vsel %vm5136_vm3, %v682_v39, %v993_v22  ;;  %v3871_v54 = vpack.c.bf16 %v556_v45, %v556_v45  ;;  %292 = vst [vmem:[#allocation2 + $0x18] sm:$0x1] %v291_v56  ;;  %v467_v59 = vmul.f32 %v3921_v36, %v5152_v32  ;;  %v1059_v12 = vld [vmem:[#allocation2 + $0x84] sm:$0xf] }
  0x32   : > { %v3734_v43 = vcombine.low %v1164_v37, %v1120_v30  ;;  %992 = vst [vmem:[#allocation2 + $0x10] sm:$0xf] %v681_v44  ;;  %995 = vst [vmem:[#allocation2 + $0x14] sm:$0x1] %v994_v49  ;;  %v3872_v55 = vpack.c.bf16 %v557_v46, %v557_v46  ;;  %v5249_v60 = vmul.f32 %v3922_v42, %v5152_v32  ;;  %v3965_v61 = vunpack.c.l.bf16 %v5236_v47  ;;  %v4857_v24 = vld [vmem:[%s6231_s3] sm:$0xff]   ;;  %v4860_v31 = vld [vmem:[%s6231_s3 + $0x48] sm:$0xff]  }
  0x33   : > { %v1165_v63 = vld [vmem:[#allocation2 + $0x78] sm:$0xe]  ;;  %v837_v2 = vshrl.u32 %v3871_v54, 16  ;;  %v3966_v4 = vunpack.c.h.bf16 %v5236_v47  ;;  %v3969_v5 = vunpack.c.l.bf16 %v5243_v52  ;;  %v840_v8 = vshll.u32 %v3871_v54, 16  ;;  %v1063_v36 = vld [vmem:[#allocation2 + $0x8c] sm:$0x1] }
  0x34   : > { %v1652_v53 = vrot.slane %v3734_v43, 1  ;;  %v1122_v57 = vld [vmem:[#allocation2 + $0x7c] sm:$0xf]  ;;  %v4854_v1 = vld [vmem:[#allocation2 + $0x80] ss:$0 sps:$4 sm:$0x11]   ;;  %v506_v28 = vadd.f32 %v5157_v33, %v467_v59 }
  0x35   : > { %v3735_v7 = vcombine.low %v1165_v63, %v1122_v57  ;;  %v845_v9 = vshrl.u32 %v3872_v55, 16  ;;  %v848_v11 = vshll.u32 %v3872_v55, 16  ;;  %v1656_v14 = vrot.slane %v4854_v1, 1  ;;  %v323_v49 = vld [vmem:[#allocation2 + $0x9c] sm:$0x1]  ;;  %v4861_v54 = vld [vmem:[%s6231_s3 + $0x8] sm:$0xff]  }
  0x36   : > { %v4850_v38 = vld [vmem:[#allocation2 + $0x74] ss:$0 sps:$4 sm:$0x11]   ;;  %v839_v18 = vrot.slane %v837_v2, 7  ;;  %v558_v20 = vmax.f32 %v526_v50, 0.0  ;;  %v559_v21 = vmax.f32 %v527_v51, 0.0 }
  0x37   : > { %v1653_v48 = vrot.slane %v4850_v38, 1  ;;  %v1103_v15 = vld [vmem:[#allocation2 + $0xc] sm:$0xf]  ;;  %v1655_v22 = vrot.slane %v3735_v7, 1  ;;  %v847_v26 = vrot.slane %v845_v9, 7  ;;  %v347_v27 = vsel %vm5145_vm4, 0, %v346_v58 }
  0x38   : > { %v842_v34 = vor.u32 %v840_v8, %v839_v18  ;;  %v843_v35 = vrot.slane %v839_v18, 4  ;;  %v3873_v37 = vpack.c.bf16 %v558_v20, %v558_v20  ;;  %v3874_v38 = vpack.c.bf16 %v559_v21, %v559_v21  ;;  %348 = vst [vmem:[#allocation2 + $0x20] sm:$0x1] %v347_v27  ;;  %v1066_v56 = vld [vmem:[#allocation2 + $0x90] sm:$0xf]  ;;  %v4880_v47 = vld [vmem:[%s6231_s3 + $0x60] sm:$0xff]  }
  0x39   : > { %v5253_v62 = vsel %vm1624_vm9, %v1652_v53, %v1653_v48  ;;  %v1104_v30 = vld [vmem:[#allocation2 + $0x10] sm:$0xf]  ;;  %v5268_v39 = vsel %vm1624_vm9, %v1655_v22, %v1656_v14  ;;  %v4859_v41 = vld [vmem:[#allocation2 + $0x14] ss:$0 sps:$4 sm:$0x11]   ;;  %v850_v42 = vor.u32 %v848_v11, %v847_v26  ;;  %v852_v43 = vrot.slane %v847_v26, 4 }
  0x3a   : > { %4529 = vmatprep.mubr.bf16.mxu1 %v5253_v62  ;;  %v5270_v40 = vcombine.low %v1103_v15, %v1104_v30  ;;  %v1060_v44 = vsel %vm5202_vm8, %v842_v34, %v1059_v12  ;;  %v854_v45 = vshrl.u32 %v3873_v37, 16  ;;  %v857_v46 = vshll.u32 %v3873_v37, 16  ;;  %v1070_v57 = vld [vmem:[#allocation2 + $0x98] sm:$0x1]  ;;  %v379_v58 = vld [vmem:[#allocation2 + $0xa4] sm:$0x1] }
  0x3b   : > { %4530 = vmatmul.mubr.bf16.vlgmr.msra.gmra.mrb[0].mxu1 %v5268_v39  ;;  %v862_v48 = vshrl.u32 %v3874_v38, 16  ;;  %v1356_v53 = vshll.u32 %v4859_v41, 16  ;;  %v851_v55 = vsel %vm5192_vm7, %v843_v35, %v850_v42  ;;  %1061 = vst [vmem:[#allocation2 + $0x84] sm:$0xf] %v1060_v44  ;;  %v1064_v59 = vsel %vm5136_vm3, %v852_v43, %v1063_v36  ;;  %v4868_v7 = vld [vmem:[%s6231_s3 + $0x50] sm:$0xff]   ;;  %v4872_v35 = vld [vmem:[%s6231_s3 + $0x58] sm:$0xff]  }
  0x3c   : > { %4226 = vmatpush3.bf16.msra.mxu1 %v4857_v24  ;;  %v1349_v50 = vshrl.u32 %v5270_v40, 16  ;;  %v1351_v51 = vshll.u32 %v5270_v40, 16  ;;  %1062 = vst [vmem:[#allocation2 + $0x88] sm:$0xf] %v851_v55  ;;  %v856_v63 = vrot.slane %v854_v45, 7  ;;  %v865_v2 = vshll.u32 %v3874_v38, 16 }
  0x3d   : > { %4227 = vmatprep.subr.bf16.mxu1 %v4860_v31  ;;  %v864_v1 = vrot.slane %v862_v48, 7  ;;  %v1358_v9 = vrot.slane %v1356_v53, 1  ;;  %1065 = vst [vmem:[#allocation2 + $0x8c] sm:$0x1] %v1064_v59  ;;  %v4869_v11 = vld [vmem:[%s6231_s3 + $0x10] sm:$0xff]   ;;  %v507_v12 = vadd.f32 %v5157_v33, %v5249_v60  ;;  %v538_v14 = vmax.f32 %v506_v28, 0.0 }
  0x3e   : > { %v1353_v8 = vrot.slane %v1351_v51, 1  ;;  %v859_v15 = vor.u32 %v857_v46, %v856_v63  ;;  %v860_v18 = vrot.slane %v856_v63, 4  ;;  %v324_v27 = vsel %vm5136_vm3, 0, %v323_v49  ;;  %v326_v30 = vld [vmem:[#allocation2 + $0xa8] sm:$0x1]  ;;  %v4873_v43 = vld [vmem:[%s6231_s3 + $0x18] sm:$0xff]  }
  0x3f   : > { %v867_v20 = vor.u32 %v865_v2, %v864_v1  ;;  %v869_v21 = vrot.slane %v864_v1, 4  ;;  %v539_v24 = vmax.f32 %v507_v12, 0.0  ;;  %v3853_v26 = vpack.c.bf16 %v538_v14, %v538_v14  ;;  %v382_v31 = vld [vmem:[#allocation2 + $0xb0] sm:$0x1]  ;;  %325 = vst [vmem:[#allocation2 + $0x9c] sm:$0x1] %v324_v27 }
  0x40   : > { %v1354_v22 = vor.u32 %v1353_v8, %v1349_v50  ;;  %4228 = vmatpush3.bf16.msra.mxu1 %v4861_v54  ;;  %v1067_v60 = vsel %vm5202_vm8, %v859_v15, %v1066_v56  ;;  %v380_v36 = vsel %vm5145_vm4, 0, %v379_v58  ;;  %v293_v44 = vld [vmem:[#allocation2 + $0x24] sm:$0x1]  ;;  %v996_v46 = vld [vmem:[#allocation2 + $0x18] sm:$0xf]  ;;  %v489_v48 = vmul.f32 %v3965_v61, %v5152_v32 }
  0x41   : > { %v868_v34 = vsel %vm5192_vm7, %v860_v18, %v867_v20  ;;  %v1071_v28 = vsel %vm5136_vm3, %v869_v21, %v1070_v57  ;;  %4229 = vmatprep.subr.bf16.mxu1 %v4868_v7  ;;  %1068 = vst [vmem:[#allocation2 + $0x90] sm:$0xf] %v1067_v60  ;;  %v3854_v38 = vpack.c.bf16 %v539_v24, %v539_v24  ;;  %v684_v41 = vshrl.u32 %v3853_v26, 16  ;;  %v1000_v57 = vld [vmem:[#allocation2 + $0x20] sm:$0x1] }
  0x42   : > { %v5306_v37 = vsel %vm1335_vm10, %v1354_v22, %v1358_v9  ;;  %1069 = vst [vmem:[#allocation2 + $0x94] sm:$0xf] %v868_v34  ;;  %1072 = vst [vmem:[#allocation2 + $0x98] sm:$0x1] %v1071_v28  ;;  %v687_v42 = vshll.u32 %v3853_v26, 16  ;;  %v490_v49 = vmul.f32 %v3966_v4, %v5152_v32  ;;  %v327_v50 = vsel %vm5136_vm3, 0, %v326_v30 }
  0x43   : > { %381 = vst [vmem:[#allocation2 + $0xa4] sm:$0x1] %v380_v36  ;;  %1969 = vmatprep.mubr.bf16.mxu0 %v5306_v37  ;;  %v1166_v45 = vld [vmem:[#allocation2 + $0x84] sm:$0xe]  ;;  %v383_v51 = vsel %vm5145_vm4, 0, %v382_v31  ;;  %v686_v54 = vrot.slane %v684_v41, 7  ;;  %v528_v58 = vadd.f32 %v5157_v33, %v489_v48  ;;  %v3970_v59 = vunpack.c.h.bf16 %v5243_v52 }
  0x44   : > { %1970 = vmatmul.mubr.bf16.vlgmr.msra.gmra.mrb[0].mxu0 %v5270_v40  ;;  %v1124_v53 = vld [vmem:[#allocation2 + $0x88] sm:$0xf]  ;;  %4230 = vmatpush3.bf16.msra.mxu1 %v4869_v11  ;;  %v692_v55 = vshrl.u32 %v3854_v38, 16  ;;  %v695_v56 = vshll.u32 %v3854_v38, 16  ;;  %328 = vst [vmem:[#allocation2 + $0xa8] sm:$0x1] %v327_v50  ;;  %v529_v8 = vadd.f32 %v5157_v33, %v490_v49  ;;  %v491_v12 = vmul.f32 %v3969_v5, %v5152_v32 }
  0x45   : > { %384 = vst [vmem:[#allocation2 + $0xb0] sm:$0x1] %v383_v51  ;;  %4498 = vmatpush3.bf16.msra.mxu0 %v5027_v0  ;;  %v4863_v61 = vld [vmem:[#allocation2 + $0x8c] ss:$0 sps:$4 sm:$0x11]   ;;  %v3736_v4 = vcombine.low %v1166_v45, %v1124_v53  ;;  %4231 = vmatprep.subr.bf16.mxu1 %v4872_v35  ;;  %v294_v63 = vsel %vm5136_vm3, 0, %v293_v44  ;;  %v689_v1 = vor.u32 %v687_v42, %v686_v54 }
  0x46   : > { %v690_v2 = vrot.slane %v686_v54, 4  ;;  %v694_v7 = vrot.slane %v692_v55, 7  ;;  %295 = vst [vmem:[#allocation2 + $0x24] sm:$0x1] %v294_v63  ;;  %4499 = vmatprep.subr.bf16.mxu0 %v5040_v3  ;;  %v1659_v9 = vrot.slane %v4863_v61, 1  ;;  %v560_v11 = vmax.f32 %v528_v58, 0.0 }
  0x47   : > { %v1658_v0 = vrot.slane %v3736_v4, 1  ;;  %v997_v18 = vsel %vm5202_vm8, %v689_v1, %v996_v46  ;;  %v561_v20 = vmax.f32 %v529_v8, 0.0  ;;  %v4881_v21 = vld [vmem:[%s6231_s3 + $0x20] sm:$0xff]   ;;  %v4884_v22 = vld [vmem:[%s6231_s3 + $0x68] sm:$0xff]   ;;  %v492_v26 = vmul.f32 %v3970_v59, %v5152_v32  ;;  %v1073_v53 = vld [vmem:[#allocation2 + $0x9c] sm:$0xf] }
  0x48   : > { %v697_v14 = vor.u32 %v695_v56, %v694_v7  ;;  %v699_v15 = vrot.slane %v694_v7, 4  ;;  %4232 = vmatpush3.bf16.msra.mxu1 %v4873_v43  ;;  %998 = vst [vmem:[#allocation2 + $0x18] sm:$0xf] %v997_v18  ;;  %v3875_v5 = vpack.c.bf16 %v560_v11, %v560_v11  ;;  %v530_v27 = vadd.f32 %v5157_v33, %v491_v12  ;;  %v349_v30 = vld [vmem:[#allocation2 + $0x2c] sm:$0x1]  ;;  %v4060_v43 = vld [vmem:[%s5121_s20 + $0x10] sm:$0xff]  }
  0x49   : > { %v5345_v24 = vsel %vm1624_vm9, %v1658_v0, %v1659_v9  ;;  %v1126_v52 = vld [vmem:[#allocation2 + $0x94] sm:$0xf]  ;;  %4233 = vmatprep.subr.bf16.mxu1 %v4880_v47  ;;  %v1167_v31 = vld [vmem:[#allocation2 + $0x90] sm:$0xe]  ;;  %v3876_v35 = vpack.c.bf16 %v561_v20, %v561_v20  ;;  %v531_v42 = vadd.f32 %v5157_v33, %v492_v26  ;;  %4500 = vmatpush3.bf16.msra.mxu0 %v5040_v3  ;;  %v4885_v49 = vld [vmem:[%s6231_s3 + $0x28] sm:$0xff]   ;;  %v350_v55 = vsel %vm5145_vm4, 0, %v349_v30 }
  0x4a   : > { %6254 = vst [vmem:[#allocation3_spill] sm:$0xff] %v5345_v24  ;;  %4533 = vmatprep.mubr.bf16.mxu1 %v5345_v24  ;;  %v4866_v34 = vld [vmem:[#allocation2 + $0x98] ss:$0 sps:$4 sm:$0x11]   ;;  %v698_v60 = vsel %vm5192_vm7, %v690_v2, %v697_v14  ;;  %v1001_v28 = vsel %vm5136_vm3, %v699_v15, %v1000_v57  ;;  %v3737_v36 = vcombine.low %v1167_v31, %v1126_v52  ;;  %v871_v38 = vshrl.u32 %v3875_v5, 16  ;;  %v4892_v58 = vld [vmem:[%s6231_s3 + $0x70] sm:$0xff]  }
  0x4b   : > { %999 = vst [vmem:[#allocation2 + $0x1c] sm:$0xf] %v698_v60  ;;  %1002 = vst [vmem:[#allocation2 + $0x20] sm:$0x1] %v1001_v28  ;;  %v874_v41 = vshll.u32 %v3875_v5, 16  ;;  %v1662_v44 = vrot.slane %v4866_v34, 1  ;;  %4501 = vmatprep.subr.bf16.mxu0 %v5052_v6  ;;  %v3925_v61 = vunpack.c.l.bf16 %v4060_v43  ;;  %v3926_v4 = vunpack.c.h.bf16 %v4060_v43 }
  0x4c   : > { %v879_v45 = vshrl.u32 %v3876_v35, 16  ;;  %v882_v46 = vshll.u32 %v3876_v35, 16  ;;  %v562_v48 = vmax.f32 %v530_v27, 0.0  ;;  %4234 = vmatpush3.bf16.msra.mxu1 %v4881_v21  ;;  %v1661_v50 = vrot.slane %v3737_v36, 1  ;;  %v1077_v56 = vld [vmem:[#allocation2 + $0xa4] sm:$0x1] }
  0x4d   : > { %v873_v51 = vrot.slane %v871_v38, 7  ;;  %v563_v54 = vmax.f32 %v531_v42, 0.0  ;;  %4235 = vmatprep.subr.bf16.mxu1 %v4884_v22  ;;  %351 = vst [vmem:[#allocation2 + $0x2c] sm:$0x1] %v350_v55  ;;  %v329_v57 = vld [vmem:[#allocation2 + $0xb4] sm:$0x1]  ;;  %4502 = vmatpush3.bf16.msra.mxu0 %v5052_v6  ;;  %v469_v6 = vmul.f32 %v3925_v61, %v5152_v32  ;;  %v470_v27 = vmul.f32 %v3926_v4, %v5152_v32 }
  0x4e   : > { %v881_v3 = vrot.slane %v879_v45, 7  ;;  %v3877_v47 = vpack.c.bf16 %v562_v48, %v562_v48  ;;  %v5367_v59 = vsel %vm1624_vm9, %v1661_v50, %v1662_v44  ;;  %v385_v7 = vld [vmem:[#allocation2 + $0xbc] sm:$0x1]  ;;  %v4893_v14 = vld [vmem:[%s6231_s3 + $0x30] sm:$0xff]   ;;  %4503 = vmatprep.subr.bf16.mxu0 %v5065_v10  ;;  %v1080_v21 = vld [vmem:[#allocation2 + $0xa8] sm:$0xf] }
  0x4f   : > { %6255 = vst [vmem:[#allocation4_spill] sm:$0xff] %v5367_v59  ;;  %v876_v63 = vor.u32 %v874_v41, %v873_v51  ;;  %v877_v1 = vrot.slane %v873_v51, 4  ;;  %v3878_v2 = vpack.c.bf16 %v563_v54, %v563_v54  ;;  %4534 = vmatmul.mubr.bf16.gmra.mrb[4].mxu1 %v5367_v59  ;;  %v1105_v8 = vld [vmem:[#allocation2 + $0x18] sm:$0xf]  ;;  %v508_v28 = vadd.f32 %v5157_v33, %v469_v6  ;;  %v4072_v43 = vld [vmem:[%s5121_s20 + $0x70] sm:$0xff]  }
  0x50   : > { %v884_v0 = vor.u32 %v882_v46, %v881_v3  ;;  %v886_v9 = vrot.slane %v881_v3, 4  ;;  %v888_v11 = vshrl.u32 %v3877_v47, 16  ;;  %v891_v12 = vshll.u32 %v3877_v47, 16  ;;  %4236 = vmatpush3.bf16.msra.mxu1 %v4885_v49  ;;  %v4896_v30 = vld [vmem:[%s6231_s3 + $0x78] sm:$0xff]   ;;  %v332_v44 = vld [vmem:[#allocation2 + $0xc0] sm:$0x1] }
  0x51   : > { %v1074_v15 = vsel %vm5202_vm8, %v876_v63, %v1073_v53  ;;  %v896_v18 = vshrl.u32 %v3878_v2, 16  ;;  %v899_v20 = vshll.u32 %v3878_v2, 16  ;;  %4237 = vmatprep.subr.bf16.mxu1 %v4892_v58  ;;  %v330_v35 = vsel %vm5136_vm3, 0, %v329_v57  ;;  %4504 = vmatpush3.bf16.msra.mxu0 %v5065_v10  ;;  %v1084_v50 = vld [vmem:[#allocation2 + $0xb0] sm:$0x1]  ;;  %v4897_v10 = vld [vmem:[%s6231_s3 + $0x38] sm:$0xff]  }
  0x52   : > { %v1106_v22 = vld [vmem:[#allocation2 + $0x1c] sm:$0xf]  ;;  %v885_v52 = vsel %vm5192_vm7, %v877_v1, %v884_v0  ;;  %1075 = vst [vmem:[#allocation2 + $0x9c] sm:$0xf] %v1074_v15  ;;  %v1078_v5 = vsel %vm5136_vm3, %v886_v9, %v1077_v56  ;;  %v890_v26 = vrot.slane %v888_v11, 7  ;;  %v509_v41 = vadd.f32 %v5157_v33, %v470_v27  ;;  %4505 = vmatprep.subr.bf16.mxu0 %v5080_v13  ;;  %v5407_v56 = vld [vmem:[%s6231_s3 + $0x80] sm:$0xff]  }
  0x53   : > { %v5386_v31 = vcombine.low %v1105_v8, %v1106_v22  ;;  %v4871_v34 = vld [vmem:[#allocation2 + $0x20] ss:$0 sps:$4 sm:$0x11]   ;;  %1076 = vst [vmem:[#allocation2 + $0xa0] sm:$0xf] %v885_v52  ;;  %v898_v60 = vrot.slane %v896_v18, 7  ;;  %v3973_v57 = vunpack.c.l.bf16 %v4072_v43 }
  0x54   : > { %1079 = vst [vmem:[#allocation2 + $0xa4] sm:$0x1] %v1078_v5  ;;  %v893_v36 = vor.u32 %v891_v12, %v890_v26  ;;  %v894_v38 = vrot.slane %v890_v26, 4  ;;  %331 = vst [vmem:[#allocation2 + $0xb4] sm:$0x1] %v330_v35  ;;  %v386_v42 = vsel %vm5145_vm4, 0, %v385_v7  ;;  %4238 = vmatpush3.bf16.msra.mxu1 %v4893_v14  ;;  %v3974_v7 = vunpack.c.h.bf16 %v4072_v43 }
  0x55   : > { %v1361_v45 = vshrl.u32 %v5386_v31, 16  ;;  %v1363_v46 = vshll.u32 %v5386_v31, 16  ;;  %v1368_v48 = vshll.u32 %v4871_v34, 16  ;;  %v901_v49 = vor.u32 %v899_v20, %v898_v60  ;;  %387 = vst [vmem:[#allocation2 + $0xbc] sm:$0x1] %v386_v42  ;;  %4239 = vmatprep.subr.bf16.mxu1 %v4896_v30  ;;  %v5412_v58 = vld [vmem:[%s5121_s20 + $0x78] sm:$0xff]   ;;  %4506 = vmatpush3.bf16.msra.mxu0 %v5080_v13 }
  0x56   : > { %v903_v51 = vrot.slane %v898_v60, 4  ;;  %v1081_v53 = vsel %vm5202_vm8, %v893_v36, %v1080_v21  ;;  %v540_v54 = vmax.f32 %v508_v28, 0.0  ;;  %v541_v55 = vmax.f32 %v509_v41, 0.0  ;;  %v388_v3 = vld [vmem:[#allocation2 + $0xc8] sm:$0x1]  ;;  %4507 = vmatprep.subr.bf16.mxu0 %v5097_v16 }
  0x57   : > { %v1365_v47 = vrot.slane %v1363_v46, 1  ;;  %v1370_v61 = vrot.slane %v1368_v48, 1  ;;  %v902_v4 = vsel %vm5192_vm7, %v894_v38, %v901_v49  ;;  %1082 = vst [vmem:[#allocation2 + $0xa8] sm:$0xf] %v1081_v53  ;;  %v493_v9 = vmul.f32 %v3973_v57, %v5152_v32  ;;  %v4951_v52 = vld [vmem:[%s6231_s3 + $0x168] sm:$0xff]  }
  0x58   : > { %1083 = vst [vmem:[#allocation2 + $0xac] sm:$0xf] %v902_v4  ;;  %v1085_v63 = vsel %vm5136_vm3, %v903_v51, %v1084_v50  ;;  %v3855_v1 = vpack.c.bf16 %v540_v54, %v540_v54  ;;  %v3856_v2 = vpack.c.bf16 %v541_v55, %v541_v55  ;;  %v333_v11 = vsel %vm5136_vm3, 0, %v332_v44  ;;  %4240 = vmatpush3.bf16.msra.mxu1 %v4897_v10  ;;  %v1003_v35 = vld [vmem:[#allocation2 + $0x24] sm:$0xf]  ;;  %v4952_v50 = vld [vmem:[%s6231_s3 + $0x170] sm:$0xff]  }
  0x59   : > { %v1366_v8 = vor.u32 %v1365_v47, %v1361_v45  ;;  %v1168_v0 = vld [vmem:[#allocation2 + $0x9c] sm:$0xe]  ;;  %1086 = vst [vmem:[#allocation2 + $0xb0] sm:$0x1] %v1085_v63  ;;  %v389_v13 = vsel %vm5145_vm4, 0, %v388_v3  ;;  %v494_v18 = vmul.f32 %v3974_v7, %v5152_v32  ;;  %v3977_v16 = vunpack.c.l.bf16 %v5412_v58  ;;  %4545 = vmatprep.subr.bf16.mxu1 %v5407_v56  ;;  %4508 = vmatpush3.bf16.msra.mxu0 %v4951_v52 }
  0x5a   : > { %v1128_v12 = vld [vmem:[#allocation2 + $0xa0] sm:$0xf]  ;;  %v701_v14 = vshrl.u32 %v3855_v1, 16  ;;  %v704_v15 = vshll.u32 %v3855_v1, 16  ;;  %334 = vst [vmem:[#allocation2 + $0xc0] sm:$0x1] %v333_v11  ;;  %v532_v27 = vadd.f32 %v5157_v33, %v493_v9  ;;  %4509 = vmatprep.subr.bf16.mxu0 %v5111_v19  ;;  %v3978_v36 = vunpack.c.h.bf16 %v5412_v58 }
  0x5b   : > { %390 = vst [vmem:[#allocation2 + $0xc8] sm:$0x1] %v389_v13  ;;  %v5427_v20 = vsel %vm1335_vm10, %v1366_v8, %v1370_v61  ;;  %v4875_v21 = vld [vmem:[#allocation2 + $0xa4] ss:$0 sps:$4 sm:$0x11]   ;;  %v3738_v6 = vcombine.low %v1168_v0, %v1128_v12  ;;  %v709_v22 = vshrl.u32 %v3856_v2, 16  ;;  %v533_v30 = vadd.f32 %v5157_v33, %v494_v18 }
  0x5c   : > { %1977 = vmatprep.mubr.bf16.mxu0 %v5427_v20  ;;  %v703_v5 = vrot.slane %v701_v14, 7  ;;  %v712_v26 = vshll.u32 %v3856_v2, 16  ;;  %v1665_v60 = vrot.slane %v4875_v21, 1  ;;  %v1007_v43 = vld [vmem:[#allocation2 + $0x2c] sm:$0x1]  ;;  %v564_v44 = vmax.f32 %v532_v27, 0.0 }
  0x5d   : > { %1978 = vmatmul.mubr.bf16.gmra.mrb[4].mxu0 %v5386_v31  ;;  %v1664_v34 = vrot.slane %v3738_v6, 1  ;;  %v711_v28 = vrot.slane %v709_v22, 7  ;;  %v495_v45 = vmul.f32 %v3977_v16, %v5152_v32  ;;  %v565_v49 = vmax.f32 %v533_v30, 0.0  ;;  %v4061_v54 = vld [vmem:[%s5121_s20 + $0x18] sm:$0xff]   ;;  %v5456_v61 = vld [vmem:[%s6229_s1] ss:$0 sm:$0xff] }
  0x5e   : > { %v1169_v38 = vld [vmem:[#allocation2 + $0xa8] sm:$0xe]  ;;  %v706_v41 = vor.u32 %v704_v15, %v703_v5  ;;  %v707_v42 = vrot.slane %v703_v5, 4  ;;  %4510 = vmatpush3.bf16.msra.mxu0 %v4952_v50  ;;  %v3879_v32 = vpack.c.bf16 %v564_v44, %v564_v44  ;;  %v496_v4 = vmul.f32 %v5456_v61, %v3978_v36  ;;  %v296_v57 = vld [vmem:[#allocation2 + $0x30] sm:$0x1]  ;;  %v4954_v63 = vld [vmem:[%s6231_s3 + $0x178] sm:$0xff]  }
  0x5f   : > { %v5440_v33 = vsel %vm1624_vm9, %v1664_v34, %v1665_v60  ;;  %v1130_v19 = vld [vmem:[#allocation2 + $0xac] sm:$0xf]  ;;  %v714_v46 = vor.u32 %v712_v26, %v711_v28  ;;  %v716_v48 = vrot.slane %v711_v28, 4  ;;  %v3880_v47 = vpack.c.bf16 %v565_v49, %v565_v49  ;;  %v352_v58 = vld [vmem:[#allocation2 + $0x38] sm:$0x1]  ;;  %4511 = vmatprep.subr.bf16.mxu0 %v4954_v63 }
  0x60   : > { %6256 = vst [vmem:[#allocation5_spill] sm:$0xff] %v5440_v33  ;;  %4537 = vmatprep.mubr.bf16.mxu1 %v5440_v33  ;;  %v4878_v10 = vld [vmem:[#allocation2 + $0xb0] ss:$0 sps:$4 sm:$0x11]   ;;  %v3739_v51 = vcombine.low %v1169_v38, %v1130_v19  ;;  %v1004_v53 = vsel %vm5202_vm8, %v706_v41, %v1003_v35  ;;  %v905_v7 = vshrl.u32 %v3879_v32, 16  ;;  %v908_v8 = vshll.u32 %v3879_v32, 16 }
  0x61   : > { %v715_v55 = vsel %vm5192_vm7, %v707_v42, %v714_v46  ;;  %1005 = vst [vmem:[#allocation2 + $0x24] sm:$0xf] %v1004_v53  ;;  %v1008_v3 = vsel %vm5136_vm3, %v716_v48, %v1007_v43  ;;  %v1668_v2 = vrot.slane %v4878_v10, 1  ;;  %v284_v0 = vld [vmem:[#allocation2] sm:$0x1]  ;;  %v913_v9 = vshrl.u32 %v3880_v47, 16 }
  0x62   : > { %v1667_v1 = vrot.slane %v3739_v51, 1  ;;  %1006 = vst [vmem:[#allocation2 + $0x28] sm:$0xf] %v715_v55  ;;  %1009 = vst [vmem:[#allocation2 + $0x2c] sm:$0x1] %v1008_v3  ;;  %v916_v11 = vshll.u32 %v3880_v47, 16  ;;  %4512 = vmatpush3.bf16.msra.mxu0 %v4954_v63  ;;  %v3929_v30 = vunpack.c.l.bf16 %v4061_v54  ;;  %v3930_v28 = vunpack.c.h.bf16 %v4061_v54 }
  0x63   : > { %v1087_v13 = vld [vmem:[#allocation2 + $0xb4] sm:$0xf]  ;;  %v5465_v12 = vld [vmem:[%s6230_s2] ss:$0 sm:$0xff]  ;;  %v340_v18 = vld [vmem:[#allocation2 + $0x8] sm:$0x1] }
  0x64   : > { %v534_v14 = vadd.f32 %v5465_v12, %v495_v45  ;;  %v535_v15 = vadd.f32 %v5465_v12, %v496_v4  ;;  %v5470_v16 = vsel %vm1624_vm9, %v1667_v1, %v1668_v2  ;;  %v907_v21 = vrot.slane %v905_v7, 7  ;;  %v1091_v6 = vld [vmem:[#allocation2 + $0xbc] sm:$0x1]  ;;  %v355_v38 = vld [vmem:[#allocation2 + $0x44] sm:$0x1] }
  0x65   : > { %6257 = vst [vmem:[#allocation6_spill] sm:$0xff] %v5470_v16  ;;  %v297_v22 = vsel %vm5136_vm3, 0, %v296_v57  ;;  %v353_v52 = vsel %vm5145_vm4, 0, %v352_v58  ;;  %4538 = vmatmul.mubr.bf16.gmra.mrb[8].mxu1 %v5470_v16  ;;  %v915_v5 = vrot.slane %v913_v9, 7  ;;  %v285_v35 = vsel %vm5136_vm3, 0, %v284_v0 }
  0x66   : > { %v566_v26 = vmax.f32 %v534_v14, 0.0  ;;  %v567_v27 = vmax.f32 %v535_v15, 0.0  ;;  %298 = vst [vmem:[#allocation2 + $0x30] sm:$0x1] %v297_v22  ;;  %354 = vst [vmem:[#allocation2 + $0x38] sm:$0x1] %v353_v52  ;;  %v910_v34 = vor.u32 %v908_v8, %v907_v21  ;;  %v471_v46 = vmul.f32 %v5456_v61, %v3929_v30 }
  0x67   : > { %v911_v60 = vrot.slane %v907_v21, 4  ;;  %v299_v36 = vld [vmem:[#allocation2 + $0x3c] sm:$0x1]  ;;  %v918_v41 = vor.u32 %v916_v11, %v915_v5  ;;  %v920_v42 = vrot.slane %v915_v5, 4  ;;  %286 = vst [vmem:[#allocation2] sm:$0x1] %v285_v35  ;;  %v472_v48 = vmul.f32 %v5456_v61, %v3930_v28 }
  0x68   : > { %v3881_v43 = vpack.c.bf16 %v566_v26, %v566_v26  ;;  %v3882_v44 = vpack.c.bf16 %v567_v27, %v567_v27  ;;  %v1107_v45 = vld [vmem:[#allocation2 + $0x24] sm:$0xf]  ;;  %v1088_v19 = vsel %vm5202_vm8, %v910_v34, %v1087_v13  ;;  %v341_v49 = vsel %vm5145_vm4, 0, %v340_v18  ;;  %v1094_v11 = vld [vmem:[#allocation2 + $0xc0] sm:$0xf]  ;;  %v5514_v35 = vld [vmem:[%s5121_s20 + $0x28] sm:$0xff]  }
  0x69   : > { %v5485_v50 = vld [vmem:[#allocation2 + $0x28] sm:$0xf]  ;;  %v919_v10 = vsel %vm5192_vm7, %v911_v60, %v918_v41  ;;  %1089 = vst [vmem:[#allocation2 + $0xb4] sm:$0xf] %v1088_v19  ;;  %v1092_v51 = vsel %vm5136_vm3, %v920_v42, %v1091_v6  ;;  %342 = vst [vmem:[#allocation2 + $0x8] sm:$0x1] %v341_v49  ;;  %v510_v4 = vadd.f32 %v5465_v12, %v471_v46 }
  0x6a   : > { %v922_v53 = vshrl.u32 %v3881_v43, 16  ;;  %v925_v32 = vshll.u32 %v3881_v43, 16  ;;  %v5492_v54 = vcombine.low %v1107_v45, %v5485_v50  ;;  %v5494_v55 = vld [vmem:[#allocation2 + $0x2c] ss:$0 sps:$4 sm:$0x11]   ;;  %v930_v3 = vshrl.u32 %v3882_v44, 16 }
  0x6b   : > { %1090 = vst [vmem:[#allocation2 + $0xb8] sm:$0xf] %v919_v10  ;;  %1093 = vst [vmem:[#allocation2 + $0xbc] sm:$0x1] %v1092_v51  ;;  %v933_v47 = vshll.u32 %v3882_v44, 16  ;;  %v511_v63 = vadd.f32 %v5465_v12, %v472_v48  ;;  %v300_v1 = vsel %vm5136_vm3, 0, %v299_v36 }
  0x6c   : > { %v5497_v57 = vld [vmem:[#allocation2 + $0x4] sm:$0xf]  ;;  %v924_v58 = vrot.slane %v922_v53, 7  ;;  %v356_v2 = vsel %vm5145_vm4, 0, %v355_v38  ;;  %v1373_v7 = vshrl.u32 %v5492_v54, 16  ;;  %v1375_v8 = vshll.u32 %v5492_v54, 16 }
  0x6d   : > { %v1380_v0 = vshll.u32 %v5494_v55, 16  ;;  %v932_v9 = vrot.slane %v930_v3, 7  ;;  %301 = vst [vmem:[#allocation2 + $0x3c] sm:$0x1] %v300_v1  ;;  %357 = vst [vmem:[#allocation2 + $0x44] sm:$0x1] %v356_v2  ;;  %v3937_v53 = vunpack.c.l.bf16 %v5514_v35 }
  0x6e   : > { %v927_v13 = vor.u32 %v925_v32, %v924_v58  ;;  %v928_v14 = vrot.slane %v924_v58, 4  ;;  %v1098_v15 = vld [vmem:[#allocation2 + $0xc8] sm:$0x1]  ;;  %v542_v18 = vmax.f32 %v510_v4, 0.0  ;;  %v543_v21 = vmax.f32 %v511_v63, 0.0  ;;  %v4062_v6 = vld [vmem:[%s5121_s20 + $0x20] sm:$0xff]  }
  0x6f   : > { %v1377_v22 = vrot.slane %v1375_v8, 1  ;;  %v1382_v52 = vrot.slane %v1380_v0, 1  ;;  %v935_v5 = vor.u32 %v933_v47, %v932_v9  ;;  %v937_v26 = vrot.slane %v932_v9, 4  ;;  %v1101_v27 = vld [vmem:[#allocation2] sm:$0xf] }
  0x70   : > { %v1095_v30 = vsel %vm5202_vm8, %v927_v13, %v1094_v11  ;;  %v3857_v34 = vpack.c.bf16 %v542_v18, %v542_v18  ;;  %v3858_v60 = vpack.c.bf16 %v543_v21, %v543_v21  ;;  %v5511_v28 = vcombine.low %v1101_v27, %v5497_v57  ;;  %v1170_v38 = vld [vmem:[#allocation2 + $0xb4] sm:$0xe]  ;;  %v4915_v32 = vld [vmem:[%s6231_s3 + $0x1c0] sm:$0xff]   ;;  %v5533_v4 = vld [vmem:[#allocation2 + $0x8] ss:$0 sps:$4 sm:$0x11]  }
  0x71   : > { %v1378_v36 = vor.u32 %v1377_v22, %v1373_v7  ;;  %v936_v41 = vsel %vm5192_vm7, %v928_v14, %v935_v5  ;;  %1096 = vst [vmem:[#allocation2 + $0xc0] sm:$0xf] %v1095_v30  ;;  %v1099_v42 = vsel %vm5136_vm3, %v937_v26, %v1098_v15  ;;  %v3933_v43 = vunpack.c.l.bf16 %v4062_v6  ;;  %v302_v1 = vld [vmem:[#allocation2 + $0x48] sm:$0x1]  ;;  %v1010_v0 = vld [vmem:[#allocation2 + $0x30] sm:$0xf]  ;;  %4361 = vmatprep.subr.bf16.mxu0 %v4915_v32 }
  0x72   : > { %v5520_v44 = vld [vmem:[#allocation2 + $0xb8] sm:$0xf]  ;;  %1097 = vst [vmem:[#allocation2 + $0xc4] sm:$0xf] %v936_v41  ;;  %1100 = vst [vmem:[#allocation2 + $0xc8] sm:$0x1] %v1099_v42  ;;  %v3934_v46 = vunpack.c.h.bf16 %v4062_v6 }
  0x73   : > { %v718_v45 = vshrl.u32 %v3857_v34, 16  ;;  %v721_v19 = vshll.u32 %v3857_v34, 16  ;;  %v5523_v48 = vsel %vm1335_vm10, %v1378_v36, %v1382_v52  ;;  %v5525_v49 = vld [vmem:[#allocation2 + $0xbc] ss:$0 sps:$4 sm:$0x11]   ;;  %v3740_v10 = vcombine.low %v1170_v38, %v5520_v44 }
  0x74   : > { %v726_v51 = vshrl.u32 %v3858_v60, 16  ;;  %1985 = vmatprep.mubr.bf16.mxu0 %v5523_v48  ;;  %v729_v47 = vshll.u32 %v3858_v60, 16  ;;  %v1337_v58 = vshrl.u32 %v5511_v28, 16  ;;  %v473_v63 = vmul.f32 %v5456_v61, %v3933_v43  ;;  %v1014_v14 = vld [vmem:[#allocation2 + $0x38] sm:$0x1] }
  0x75   : > { %v720_v3 = vrot.slane %v718_v45, 7  ;;  %1986 = vmatmul.mubr.bf16.gmra.mrb[8].mxu0 %v5492_v54  ;;  %v1670_v2 = vrot.slane %v3740_v10, 1  ;;  %v1671_v7 = vrot.slane %v5525_v49, 1  ;;  %v1339_v9 = vshll.u32 %v5511_v28, 16  ;;  %v358_v5 = vld [vmem:[#allocation2 + $0x50] sm:$0x1] }
  0x76   : > { %v728_v8 = vrot.slane %v726_v51, 7  ;;  %v1344_v15 = vshll.u32 %v5533_v4, 16  ;;  %v474_v18 = vmul.f32 %v5456_v61, %v3934_v46  ;;  %v512_v34 = vadd.f32 %v5465_v12, %v473_v63  ;;  %v305_v36 = vld [vmem:[#allocation2 + $0x54] sm:$0x1]  ;;  %v361_v38 = vld [vmem:[#allocation2 + $0x5c] sm:$0x1] }
  0x77   : > { %v723_v11 = vor.u32 %v721_v19, %v720_v3  ;;  %v724_v13 = vrot.slane %v720_v3, 4  ;;  %v5543_v21 = vsel %vm1624_vm9, %v1670_v2, %v1671_v7  ;;  %v1341_v52 = vrot.slane %v1339_v9, 1  ;;  %v5567_v2 = vld [vmem:[%s5121_s20 + $0x30] sm:$0xff]  }
  0x78   : > { %6258 = vst [vmem:[#allocation7_spill] sm:$0xff] %v5543_v21  ;;  %v731_v6 = vor.u32 %v729_v47, %v728_v8  ;;  %v733_v22 = vrot.slane %v728_v8, 4  ;;  %4541 = vmatprep.mubr.bf16.mxu1 %v5543_v21  ;;  %v1171_v26 = vld [vmem:[#allocation2 + $0xc0] sm:$0xe]  ;;  %v1346_v30 = vrot.slane %v1344_v15, 1  ;;  %v513_v60 = vadd.f32 %v5465_v12, %v474_v18 }
  0x79   : > { %v1011_v27 = vsel %vm5202_vm8, %v723_v11, %v1010_v0  ;;  %v5550_v41 = vld [vmem:[#allocation2 + $0xc4] sm:$0xf]  ;;  %v1342_v45 = vor.u32 %v1341_v52, %v1337_v58  ;;  %v303_v19 = vsel %vm5136_vm3, 0, %v302_v1  ;;  %v5558_v46 = vld [vmem:[#allocation2 + $0xc8] ss:$0 sps:$4 sm:$0x11]   ;;  %v3938_v63 = vunpack.c.h.bf16 %v5514_v35 }
  0x7a   : > { %v732_v42 = vsel %vm5192_vm7, %v724_v13, %v731_v6  ;;  %1012 = vst [vmem:[#allocation2 + $0x30] sm:$0xf] %v1011_v27  ;;  %v1015_v43 = vsel %vm5136_vm3, %v733_v22, %v1014_v14  ;;  %v3741_v10 = vcombine.low %v1171_v26, %v5550_v41  ;;  %v544_v51 = vmax.f32 %v512_v34, 0.0  ;;  %304 = vst [vmem:[#allocation2 + $0x48] sm:$0x1] %v303_v19 }
  0x7b   : > { %1013 = vst [vmem:[#allocation2 + $0x34] sm:$0xf] %v732_v42  ;;  %1016 = vst [vmem:[#allocation2 + $0x38] sm:$0x1] %v1015_v43  ;;  %v545_v32 = vmax.f32 %v513_v60, 0.0  ;;  %v1347_v3 = vsel %vm1335_vm10, %v1342_v45, %v1346_v30  ;;  %v359_v47 = vsel %vm5145_vm4, 0, %v358_v5  ;;  %v475_v58 = vmul.f32 %v5456_v61, %v3937_v53 }
  0x7c   : > { %v308_v1 = vld [vmem:[#allocation2 + $0x60] sm:$0x1]  ;;  %v1673_v7 = vrot.slane %v3741_v10, 1  ;;  %v1674_v8 = vrot.slane %v5558_v46, 1  ;;  %v3859_v0 = vpack.c.bf16 %v544_v51, %v544_v51  ;;  %360 = vst [vmem:[#allocation2 + $0x50] sm:$0x1] %v359_v47  ;;  %v476_v11 = vmul.f32 %v5456_v61, %v3938_v63 }
  0x7d   : > { %v3860_v9 = vpack.c.bf16 %v545_v32, %v545_v32  ;;  %v514_v13 = vadd.f32 %v5465_v12, %v475_v58  ;;  %v306_v14 = vsel %vm5136_vm3, 0, %v305_v36  ;;  %v362_v35 = vsel %vm5145_vm4, 0, %v361_v38  ;;  %v364_v53 = vld [vmem:[#allocation2 + $0x68] sm:$0x1]  ;;  %v1017_v36 = vld [vmem:[#allocation2 + $0x3c] sm:$0xf] }
  0x7e   : > { %v5577_v15 = vsel %vm1624_vm9, %v1673_v7, %v1674_v8  ;;  %v735_v18 = vshrl.u32 %v3859_v0, 16  ;;  %v738_v6 = vshll.u32 %v3859_v0, 16  ;;  %307 = vst [vmem:[#allocation2 + $0x54] sm:$0x1] %v306_v14  ;;  %363 = vst [vmem:[#allocation2 + $0x5c] sm:$0x1] %v362_v35  ;;  %v515_v5 = vadd.f32 %v5465_v12, %v476_v11 }
  0x7f   : > { %6259 = vst [vmem:[#allocation8_spill] sm:$0xff] %v5577_v15  ;;  %v743_v22 = vshrl.u32 %v3860_v9, 16  ;;  %4542 = vmatmul.mubr.bf16.gmra.mrb[12].mxu1 %v5577_v15  ;;  %v746_v52 = vshll.u32 %v3860_v9, 16  ;;  %v546_v26 = vmax.f32 %v514_v13, 0.0  ;;  %v3941_v27 = vunpack.c.l.bf16 %v5567_v2 }
  0x80   : > { %2435 = vmatprep.mubr.bf16.mxu1 %v1347_v3  ;;  %v737_v34 = vrot.slane %v735_v18, 7  ;;  %v3942_v38 = vunpack.c.h.bf16 %v5567_v2  ;;  %v309_v42 = vsel %vm5136_vm3, 0, %v308_v1  ;;  %v547_v45 = vmax.f32 %v515_v5, 0.0  ;;  %v1021_v2 = vld [vmem:[#allocation2 + $0x44] sm:$0x1]  ;;  %v4065_v5 = vld [vmem:[%s5121_s20 + $0x38] sm:$0xff]   ;;  %s268_s20 = scalar_lea.vmem %s6233_s5, %s3653_s11 }
  0x81   : > { %v1109_v30 = vld [vmem:[#allocation2 + $0x30] sm:$0xf]  ;;  %v745_v60 = vrot.slane %v743_v22, 7  ;;  %v3861_v19 = vpack.c.bf16 %v546_v26, %v546_v26  ;;  %v477_v10 = vmul.f32 %v5456_v61, %v3941_v27  ;;  %310 = vst [vmem:[#allocation2 + $0x60] sm:$0x1] %v309_v42  ;;  %v365_v51 = vsel %vm5145_vm4, 0, %v364_v53 }
  0x82   : > { %v5585_v43 = vld [vmem:[#allocation2 + $0x34] sm:$0xf]  ;;  %v5593_v3 = vld [vmem:[#allocation2 + $0x38] ss:$0 sps:$4 sm:$0x11]   ;;  %v740_v47 = vor.u32 %v738_v6, %v737_v34  ;;  %v741_v63 = vrot.slane %v737_v34, 4  ;;  %v3862_v7 = vpack.c.bf16 %v547_v45, %v547_v45  ;;  %v478_v34 = vmul.f32 %v5456_v61, %v3942_v38 }
  0x83   : > { %v5591_v32 = vcombine.low %v1109_v30, %v5585_v43  ;;  %v748_v58 = vor.u32 %v746_v52, %v745_v60  ;;  %366 = vst [vmem:[#allocation2 + $0x68] sm:$0x1] %v365_v51  ;;  %v750_v1 = vrot.slane %v745_v60, 4  ;;  %v752_v8 = vshrl.u32 %v3861_v19, 16  ;;  %v1024_v22 = vld [vmem:[#allocation2 + $0x48] sm:$0xf] }
  0x84   : > { %v755_v0 = vshll.u32 %v3861_v19, 16  ;;  %v1392_v13 = vshll.u32 %v5593_v3, 16  ;;  %v1018_v35 = vsel %vm5202_vm8, %v740_v47, %v1017_v36  ;;  %v760_v6 = vshrl.u32 %v3862_v7, 16  ;;  %v4907_v52 = vld [vmem:[%s6231_s3 + $0x88] sm:$0xff]   ;;  %v1028_v51 = vld [vmem:[#allocation2 + $0x50] sm:$0x1] }
  0x85   : > { %v1385_v9 = vshrl.u32 %v5591_v32, 16  ;;  %v1387_v11 = vshll.u32 %v5591_v32, 16  ;;  %v749_v14 = vsel %vm5192_vm7, %v741_v63, %v748_v58  ;;  %v1022_v53 = vsel %vm5136_vm3, %v750_v1, %v1021_v2  ;;  %1019 = vst [vmem:[#allocation2 + $0x3c] sm:$0xf] %v1018_v35 }
  0x86   : > { %1020 = vst [vmem:[#allocation2 + $0x40] sm:$0xf] %v749_v14  ;;  %v754_v18 = vrot.slane %v752_v8, 7  ;;  %v1394_v27 = vrot.slane %v1392_v13, 1  ;;  %1023 = vst [vmem:[#allocation2 + $0x44] sm:$0x1] %v1022_v53  ;;  %v516_v45 = vadd.f32 %v5465_v12, %v477_v10  ;;  %v517_v47 = vadd.f32 %v5465_v12, %v478_v34 }
  0x87   : > { %v1389_v26 = vrot.slane %v1387_v11, 1  ;;  %v763_v30 = vshll.u32 %v3862_v7, 16  ;;  %2436 = vmatmul.mubr.bf16.vlgmr.msra.gmra.mrb[16].mxu1 %v5511_v28  ;;  %v762_v42 = vrot.slane %v760_v6, 7  ;;  %v3945_v63 = vunpack.c.l.bf16 %v4065_v5  ;;  %v4910_v10 = vld [vmem:[%s6231_s3 + $0x90] sm:$0xff]   ;;  %v4911_v53 = vld [vmem:[%s6231_s3 + $0x98] sm:$0xff]  }
  0x88   : > { %v757_v60 = vor.u32 %v755_v0, %v754_v18  ;;  %v758_v36 = vrot.slane %v754_v18, 4  ;;  %4546 = vmatpush3.bf16.msra.mxu1 %v5407_v56  ;;  %2443 = vmatprep.mubr.bf16.mxu1 %v5306_v37  ;;  %v3946_v58 = vunpack.c.h.bf16 %v4065_v5  ;;  %v548_v38 = vmax.f32 %v516_v45, 0.0 }
  0x89   : > { %v1390_v19 = vor.u32 %v1389_v26, %v1385_v9  ;;  %v765_v2 = vor.u32 %v763_v30, %v762_v42  ;;  %v767_v1 = vrot.slane %v762_v42, 4  ;;  %4547 = vmatprep.subr.bf16.mxu1 %v4907_v52  ;;  %v549_v37 = vmax.f32 %v517_v47, 0.0 }
  0x8a   : > { %v1025_v28 = vsel %vm5202_vm8, %v757_v60, %v1024_v22  ;;  %v479_v7 = vmul.f32 %v5456_v61, %v3945_v63  ;;  %v480_v8 = vmul.f32 %v5456_v61, %v3946_v58  ;;  %v3863_v11 = vpack.c.bf16 %v548_v38, %v548_v38  ;;  %v1035_v58 = vld [vmem:[#allocation2 + $0x5c] sm:$0x1] }
  0x8b   : > { %v5620_v56 = vsel %vm1335_vm10, %v1390_v19, %v1394_v27  ;;  %1026 = vst [vmem:[#allocation2 + $0x48] sm:$0xf] %v1025_v28  ;;  %v766_v0 = vsel %vm5192_vm7, %v758_v36, %v765_v2  ;;  %v1029_v9 = vsel %vm5136_vm3, %v767_v1, %v1028_v51  ;;  %v3864_v14 = vpack.c.bf16 %v549_v37, %v549_v37 }
  0x8c   : > { %1993 = vmatprep.mubr.bf16.mxu0 %v5620_v56  ;;  %1027 = vst [vmem:[#allocation2 + $0x4c] sm:$0xf] %v766_v0  ;;  %1030 = vst [vmem:[#allocation2 + $0x50] sm:$0x1] %v1029_v9  ;;  %4548 = vmatpush3.bf16.msra.mxu1 %v4907_v52  ;;  %v518_v35 = vadd.f32 %v5465_v12, %v479_v7  ;;  %v519_v61 = vadd.f32 %v5465_v12, %v480_v8  ;;  %v1111_v18 = vld [vmem:[#allocation2 + $0x3c] sm:$0xf] }
  0x8d   : > { %1994 = vmatmul.mubr.bf16.gmra.mrb[12].mxu0 %v5591_v32  ;;  %v5630_v13 = vld [vmem:[#allocation2 + $0x40] sm:$0xf]  ;;  %v769_v6 = vshrl.u32 %v3863_v11, 16  ;;  %v772_v22 = vshll.u32 %v3863_v11, 16  ;;  %4549 = vmatprep.subr.bf16.mxu1 %v4910_v10  ;;  %v777_v27 = vshrl.u32 %v3864_v14, 16  ;;  %v780_v30 = vshll.u32 %v3864_v14, 16 }
  0x8e   : > { %v5638_v5 = vcombine.low %v1111_v18, %v5630_v13  ;;  %v5640_v26 = vld [vmem:[#allocation2 + $0x44] ss:$0 sps:$4 sm:$0x11]   ;;  %v550_v52 = vmax.f32 %v518_v35, 0.0  ;;  %v1031_v12 = vld [vmem:[#allocation2 + $0x54] sm:$0xf] }
  0x8f   : > { %2444 = vmatmul.mubr.bf16.gmra.mrb[20].mxu1 %v5270_v40  ;;  %v771_v34 = vrot.slane %v769_v6, 7  ;;  %v551_v60 = vmax.f32 %v519_v61, 0.0  ;;  %v1404_v45 = vshll.u32 %v5640_v26, 16  ;;  %v779_v19 = vrot.slane %v777_v27, 7  ;;  %v4912_v40 = vld [vmem:[%s6231_s3 + $0xa0] sm:$0xff]  }
  0x90   : > { %v1397_v36 = vshrl.u32 %v5638_v5, 16  ;;  %v1399_v42 = vshll.u32 %v5638_v5, 16  ;;  %2451 = vmatprep.mubr.bf16.mxu1 %v5427_v20  ;;  %4550 = vmatpush3.bf16.msra.mxu1 %v4910_v10  ;;  %v3865_v2 = vpack.c.bf16 %v550_v52, %v550_v52  ;;  %v1038_v6 = vld [vmem:[#allocation2 + $0x60] sm:$0xf] }
  0x91   : > { %v774_v47 = vor.u32 %v772_v22, %v771_v34  ;;  %v775_v63 = vrot.slane %v771_v34, 4  ;;  %v3866_v1 = vpack.c.bf16 %v551_v60, %v551_v60  ;;  %4551 = vmatprep.subr.bf16.mxu1 %v4911_v53  ;;  %v1406_v38 = vrot.slane %v1404_v45, 1 }
  0x92   : > { %v1113_v51 = vld [vmem:[#allocation2 + $0x48] sm:$0xf]  ;;  %v1401_v28 = vrot.slane %v1399_v42, 1  ;;  %v782_v37 = vor.u32 %v780_v30, %v779_v19  ;;  %v784_v7 = vrot.slane %v779_v19, 4  ;;  %v786_v0 = vshrl.u32 %v3865_v2, 16 }
  0x93   : > { %v5650_v8 = vld [vmem:[#allocation2 + $0x4c] sm:$0xf]  ;;  %v1032_v10 = vsel %vm5202_vm8, %v774_v47, %v1031_v12  ;;  %v789_v9 = vshll.u32 %v3865_v2, 16  ;;  %v5657_v35 = vld [vmem:[#allocation2 + $0x50] ss:$0 sps:$4 sm:$0x11]  }
  0x94   : > { %v1402_v11 = vor.u32 %v1401_v28, %v1397_v36  ;;  %v5655_v14 = vcombine.low %v1113_v51, %v5650_v8  ;;  %v783_v61 = vsel %vm5192_vm7, %v775_v63, %v782_v37  ;;  %1033 = vst [vmem:[#allocation2 + $0x54] sm:$0xf] %v1032_v10  ;;  %v1036_v18 = vsel %vm5136_vm3, %v784_v7, %v1035_v58  ;;  %v4913_v36 = vld [vmem:[%s6231_s3 + $0xa8] sm:$0xff]  }
  0x95   : > { %4552 = vmatpush3.bf16.msra.mxu1 %v4911_v53  ;;  %1034 = vst [vmem:[#allocation2 + $0x58] sm:$0xf] %v783_v61  ;;  %1037 = vst [vmem:[#allocation2 + $0x5c] sm:$0x1] %v1036_v18  ;;  %v788_v22 = vrot.slane %v786_v0, 7  ;;  %v794_v27 = vshrl.u32 %v3866_v1, 16 }
  0x96   : > { %v797_v30 = vshll.u32 %v3866_v1, 16  ;;  %4553 = vmatprep.subr.bf16.mxu1 %v4912_v40  ;;  %v5664_v52 = vsel %vm1335_vm10, %v1402_v11, %v1406_v38  ;;  %v1409_v34 = vshrl.u32 %v5655_v14, 16  ;;  %v1411_v12 = vshll.u32 %v5655_v14, 16  ;;  %v1042_v47 = vld [vmem:[#allocation2 + $0x68] sm:$0x1]  ;;  %v4914_v38 = vld [vmem:[%s6231_s3 + $0xb0] sm:$0xff]  }
  0x97   : > { %v1416_v60 = vshll.u32 %v5657_v35, 16  ;;  %2001 = vmatprep.mubr.bf16.mxu0 %v5664_v52  ;;  %2452 = vmatmul.mubr.bf16.gmra.mrb[24].mxu1 %v5386_v31  ;;  %v791_v53 = vor.u32 %v789_v9, %v788_v22  ;;  %v792_v42 = vrot.slane %v788_v22, 4  ;;  %v796_v45 = vrot.slane %v794_v27, 7  ;;  %v1119_v1 = vld [vmem:[#allocation2 + $0x6c] sm:$0xf]  ;;  %v4927_v18 = vld [vmem:[%s6231_s3 + $0xb8] sm:$0xff]  }
  0x98   : > { %2002 = vmatmul.mubr.bf16.gmra.mrb[16].mxu0 %v5638_v5  ;;  %v1413_v19 = vrot.slane %v1411_v12, 1  ;;  %2459 = vmatprep.mubr.bf16.mxu1 %v5523_v48  ;;  %v1121_v11 = vld [vmem:[#allocation2 + $0x78] sm:$0xf] }
  0x99   : > { %v1418_v51 = vrot.slane %v1416_v60, 1  ;;  %v799_v63 = vor.u32 %v797_v30, %v796_v45  ;;  %v801_v58 = vrot.slane %v796_v45, 4  ;;  %v1039_v2 = vsel %vm5202_vm8, %v791_v53, %v1038_v6  ;;  %4554 = vmatpush3.bf16.msra.mxu1 %v4912_v40  ;;  %v4956_v40 = vld [vmem:[#allocation2 + $0x70] sm:$0xf]  ;;  %v4957_v30 = vld [vmem:[#allocation2 + $0x7c] sm:$0xf] }
  0x9a   : > { %v1414_v28 = vor.u32 %v1413_v19, %v1409_v34  ;;  %1040 = vst [vmem:[#allocation2 + $0x60] sm:$0xf] %v1039_v2  ;;  %4555 = vmatprep.subr.bf16.mxu1 %v4913_v36  ;;  %v5690_v9 = vcombine.low %v1119_v1, %v4956_v40  ;;  %v5707_v34 = vcombine.low %v1121_v11, %v4957_v30  ;;  %v4959_v11 = vld [vmem:[#allocation2 + $0x88] sm:$0xf] }
  0x9b   : > { %v1115_v37 = vld [vmem:[#allocation2 + $0x54] sm:$0xf]  ;;  %v800_v7 = vsel %vm5192_vm7, %v792_v42, %v799_v63  ;;  %v1043_v10 = vsel %vm5136_vm3, %v801_v58, %v1042_v47  ;;  %v5713_v42 = vld [vmem:[%s6231_s3 + $0x200] sm:$0xff]  }
  0x9c   : > { %v5686_v0 = vsel %vm1335_vm10, %v1414_v28, %v1418_v51  ;;  %v5688_v23 = vld [vmem:[#allocation2 + $0x58] sm:$0xf]  ;;  %1041 = vst [vmem:[#allocation2 + $0x64] sm:$0xf] %v800_v7  ;;  %1044 = vst [vmem:[#allocation2 + $0x68] sm:$0x1] %v1043_v10 }
  0x9d   : > { %2009 = vmatprep.mubr.bf16.mxu0 %v5686_v0  ;;  %v5694_v61 = vcombine.low %v1115_v37, %v5688_v23  ;;  %v5696_v17 = vld [vmem:[#allocation2 + $0x5c] ss:$0 sps:$4 sm:$0x11]   ;;  %4556 = vmatpush3.bf16.msra.mxu1 %v4913_v36  ;;  %v1447_v53 = vshll.u32 %v5690_v9, 16  ;;  %v1123_v51 = vld [vmem:[#allocation2 + $0x84] sm:$0xf] }
  0x9e   : > { %4557 = vmatprep.subr.bf16.mxu1 %v4914_v38  ;;  %v1428_v27 = vshll.u32 %v5696_v17, 16  ;;  %v4958_v58 = vld [vmem:[#allocation2 + $0x74] ss:$0 sps:$4 sm:$0x11]   ;;  %v1445_v28 = vshrl.u32 %v5690_v9, 16  ;;  %v1459_v37 = vshll.u32 %v5707_v34, 16 }
  0x9f   : > { %v1421_v6 = vshrl.u32 %v5694_v61, 16  ;;  %v1423_v22 = vshll.u32 %v5694_v61, 16  ;;  %2460 = vmatmul.mubr.bf16.gmra.mrb[28].mxu1 %v5492_v54  ;;  %v1452_v2 = vshll.u32 %v4958_v58, 16  ;;  %v4960_v58 = vld [vmem:[#allocation2 + $0x80] ss:$0 sps:$4 sm:$0x11]  }
  0xa0   : > { %2010 = vmatmul.mubr.bf16.gmra.mrb[20].mxu0 %v5655_v14  ;;  %2467 = vmatprep.mubr.bf16.mxu1 %v5620_v56  ;;  %v1430_v60 = vrot.slane %v1428_v27, 1  ;;  %v1159_v27 = vld [vmem:[#allocation2 + $0x30] sm:$0xe]  ;;  %v1464_v15 = vshll.u32 %v4960_v58, 16 }
  0xa1   : > { %v1425_v12 = vrot.slane %v1423_v22, 1  ;;  %v1117_v36 = vld [vmem:[#allocation2 + $0x60] sm:$0xf]  ;;  %4558 = vmatpush3.bf16.msra.mxu1 %v4914_v38  ;;  %v1449_v38 = vrot.slane %v1447_v53, 1  ;;  %v1158_v22 = vld [vmem:[#allocation2 + $0x24] sm:$0xe] }
  0xa2   : > { %4559 = vmatprep.subr.bf16.mxu1 %v4927_v18  ;;  %v3728_v16 = vcombine.low %v1158_v22, %v5485_v50  ;;  %v1163_v33 = vld [vmem:[#allocation2 + $0x60] sm:$0xe]  ;;  %v1641_v22 = vrot.slane %v5640_v26, 1 }
  0xa3   : > { %v1426_v45 = vor.u32 %v1425_v12, %v1421_v6  ;;  %v5715_v19 = vld [vmem:[#allocation2 + $0x64] sm:$0xf]  ;;  %v5720_v63 = vld [vmem:[#allocation2 + $0x68] ss:$0 sps:$4 sm:$0x11]   ;;  %v5732_v6 = vcombine.low %v1123_v51, %v4959_v11  ;;  %v1454_v12 = vrot.slane %v1452_v2, 1  ;;  %v1450_v53 = vor.u32 %v1449_v38, %v1445_v28 }
  0xa4   : > { %v5718_v47 = vcombine.low %v1117_v36, %v5715_v19  ;;  %v1440_v40 = vshll.u32 %v5720_v63, 16  ;;  %v1160_v36 = vld [vmem:[#allocation2 + $0x3c] sm:$0xe]  ;;  %v1161_v51 = vld [vmem:[#allocation2 + $0x48] sm:$0xe]  ;;  %v3729_v2 = vcombine.low %v1159_v27, %v5585_v43  ;;  %v1634_v28 = vrot.slane %v3728_v16, 1 }
  0xa5   : > { %v5723_v1 = vsel %vm1335_vm10, %v1426_v45, %v1430_v60  ;;  %4560 = vmatpush3.bf16.msra.mxu1 %v4927_v18  ;;  %v1457_v60 = vshrl.u32 %v5707_v34, 16  ;;  %v1461_v45 = vrot.slane %v1459_v37, 1  ;;  %v1162_v11 = vld [vmem:[#allocation2 + $0x54] sm:$0xe]  ;;  %v1471_v59 = vshll.u32 %v5732_v6, 16 }
  0xa6   : > { %2017 = vmatprep.mubr.bf16.mxu0 %v5723_v1  ;;  %v1433_v7 = vshrl.u32 %v5718_v47, 16  ;;  %v1435_v10 = vshll.u32 %v5718_v47, 16  ;;  %4593 = vmatprep.subr.bf16.mxu1 %v5713_v42  ;;  %v1442_v30 = vrot.slane %v1440_v40, 1  ;;  %v1155_v40 = vld [vmem:[#allocation2] sm:$0xe]  ;;  %v1638_v38 = vrot.slane %v5593_v3, 1 }
  0xa7   : > { %2468 = vmatmul.mubr.bf16.gmra.mrb[32].mxu1 %v5591_v32  ;;  %v5748_v37 = vsel %vm1335_vm10, %v1450_v53, %v1454_v12  ;;  %v1637_v50 = vrot.slane %v3729_v2, 1  ;;  %v3731_v43 = vcombine.low %v1161_v51, %v5650_v8  ;;  %v3732_v16 = vcombine.low %v1162_v11, %v5688_v23  ;;  %v4961_v51 = vld [vmem:[#allocation2 + $0x94] sm:$0xf] }
  0xa8   : > { %2018 = vmatmul.mubr.bf16.gmra.mrb[24].mxu0 %v5694_v61  ;;  %v1437_v18 = vrot.slane %v1435_v10, 1  ;;  %2475 = vmatprep.mubr.bf16.mxu1 %v5664_v52  ;;  %v1635_v10 = vrot.slane %v5494_v55, 1  ;;  %v3725_v23 = vcombine.low %v1155_v40, %v5497_v57  ;;  %v1127_v40 = vld [vmem:[#allocation2 + $0x9c] sm:$0xf] }
  0xa9   : > { %v5760_v3 = vsel %vm1624_vm9, %v1637_v50, %v1638_v38  ;;  %v1643_v26 = vrot.slane %v3731_v43, 1  ;;  %v1646_v8 = vrot.slane %v3732_v16, 1  ;;  %v4964_v16 = vld [vmem:[#allocation2 + $0x98] ss:$0 sps:$4 sm:$0x11]  }
  0xaa   : > { %v1438_v21 = vor.u32 %v1437_v18, %v1433_v7  ;;  %v3730_v7 = vcombine.low %v1160_v36, %v5630_v13  ;;  %v5753_v55 = vsel %vm1624_vm9, %v1634_v28, %v1635_v10  ;;  %v1647_v18 = vrot.slane %v5696_v17, 1  ;;  %v4962_v10 = vld [vmem:[#allocation2 + $0x8c] ss:$0 sps:$4 sm:$0x11]  }
  0xab   : > { %v3733_v13 = vcombine.low %v1163_v33, %v5715_v19  ;;  %v1626_v17 = vrot.slane %v5533_v4, 1  ;;  %v1125_v33 = vld [vmem:[#allocation2 + $0x90] sm:$0xf]  ;;  %v1462_v19 = vor.u32 %v1461_v45, %v1457_v60  ;;  %v1469_v60 = vshrl.u32 %v5732_v6, 16 }
  0xac   : > { %v5743_v24 = vsel %vm1335_vm10, %v1438_v21, %v1442_v30  ;;  %v1644_v21 = vrot.slane %v5657_v35, 1  ;;  %v1640_v27 = vrot.slane %v3730_v7, 1  ;;  %v1650_v35 = vrot.slane %v5720_v63, 1  ;;  %v4963_v7 = vld [vmem:[#allocation2 + $0xa0] sm:$0xf] }
  0xad   : > { %2025 = vmatprep.mubr.bf16.mxu0 %v5743_v24  ;;  %v1466_v30 = vrot.slane %v1464_v15, 1  ;;  %v1649_v36 = vrot.slane %v3733_v13, 1  ;;  %v5777_v58 = vsel %vm1624_vm9, %v1646_v8, %v1647_v18  ;;  %v1625_v63 = vrot.slane %v3725_v23, 1  ;;  %v1129_v18 = vld [vmem:[#allocation2 + $0xa8] sm:$0xf] }
  0xae   : > { %v5770_v12 = vsel %vm1624_vm9, %v1640_v27, %v1641_v22  ;;  %v5774_v53 = vsel %vm1624_vm9, %v1643_v26, %v1644_v21  ;;  %v5785_v11 = vcombine.low %v1125_v33, %v4961_v51  ;;  %v1473_v45 = vrot.slane %v1471_v59, 1  ;;  %v4966_v33 = vld [vmem:[#allocation2 + $0xa4] ss:$0 sps:$4 sm:$0x11]  }
  0xaf   : > { %2476 = vmatmul.mubr.bf16.gmra.mrb[36].mxu1 %v5638_v5  ;;  %v5780_v57 = vsel %vm1624_vm9, %v1649_v36, %v1650_v35  ;;  %v5783_v15 = vsel %vm1624_vm9, %v1625_v63, %v1626_v17  ;;  %v5788_v4 = vsel %vm1335_vm10, %v1462_v19, %v1466_v30  ;;  %v1476_v2 = vshll.u32 %v4962_v10, 16  ;;  %v4965_v35 = vld [vmem:[#allocation2 + $0xac] sm:$0xf]  ;;  %v1131_v63 = vld [vmem:[#allocation2 + $0xb4] sm:$0xf] }
  0xb0   : > { %2026 = vmatmul.mubr.bf16.gmra.mrb[28].mxu0 %v5718_v47  ;;  %2483 = vmatprep.mubr.bf16.mxu1 %v5686_v0  ;;  %v1474_v28 = vor.u32 %v1473_v45, %v1469_v60  ;;  %v1483_v50 = vshll.u32 %v5785_v11, 16  ;;  %v5796_v22 = vcombine.low %v1127_v40, %v4963_v7  ;;  %v1481_v43 = vshrl.u32 %v5785_v11, 16  ;;  %v1133_v7 = vld [vmem:[#allocation2 + $0xc0] sm:$0xf] }
  0xb1   : > { %2033 = vmatprep.mubr.bf16.mxu0 %v5748_v37  ;;  %v1478_v38 = vrot.slane %v1476_v2, 1  ;;  %v1488_v27 = vshll.u32 %v4964_v16, 16  ;;  %v5807_v23 = vcombine.low %v1129_v18, %v4965_v35  ;;  %v1500_v19 = vshll.u32 %v4966_v33, 16 }
  0xb2   : > { %v1485_v21 = vrot.slane %v1483_v50, 1  ;;  %v1495_v8 = vshll.u32 %v5796_v22, 16  ;;  %v1493_v36 = vshrl.u32 %v5796_v22, 16  ;;  %v5819_v10 = vcombine.low %v1131_v63, %v5520_v44 }
  0xb3   : > { %v5799_v59 = vsel %vm1335_vm10, %v1474_v28, %v1478_v38  ;;  %v1490_v26 = vrot.slane %v1488_v27, 1  ;;  %v1502_v60 = vrot.slane %v1500_v19, 1  ;;  %v1507_v45 = vshll.u32 %v5807_v23, 16  ;;  %v4967_v38 = vld [vmem:[#allocation2 + $0xb0] ss:$0 sps:$4 sm:$0x11]  }
  0xb4   : > { %v1486_v13 = vor.u32 %v1485_v21, %v1481_v43  ;;  %v1497_v17 = vrot.slane %v1495_v8, 1  ;;  %v1505_v40 = vshrl.u32 %v5807_v23, 16  ;;  %v1512_v50 = vshll.u32 %v4967_v38, 16 }
  0xb5   : > { %v1509_v28 = vrot.slane %v1507_v45, 1  ;;  %v1519_v21 = vshll.u32 %v5819_v10, 16  ;;  %v5831_v16 = vcombine.low %v1133_v7, %v5550_v41  ;;  %v1517_v18 = vshrl.u32 %v5819_v10, 16  ;;  %v4968_v45 = vld [vmem:[#allocation2 + $0x10] sm:$0xf] }
  0xb6   : > { %v5810_v30 = vsel %vm1335_vm10, %v1486_v13, %v1490_v26  ;;  %v1498_v51 = vor.u32 %v1497_v17, %v1493_v36  ;;  %v1514_v44 = vrot.slane %v1512_v50, 1  ;;  %v1524_v26 = vshll.u32 %v5525_v49, 16  ;;  %v1157_v50 = vld [vmem:[#allocation2 + $0x18] sm:$0xe]  ;;  %v4970_v7 = vld [vmem:[#allocation2 + $0x1c] sm:$0xf] }
  0xb7   : > { %2484 = vmatmul.mubr.bf16.gmra.mrb[40].mxu1 %v5655_v14  ;;  %v1510_v43 = vor.u32 %v1509_v28, %v1505_v40  ;;  %v1521_v13 = vrot.slane %v1519_v21, 1  ;;  %v1531_v41 = vshll.u32 %v5831_v16, 16  ;;  %v1529_v17 = vshrl.u32 %v5831_v16, 16  ;;  %v4969_v28 = vld [vmem:[#allocation2 + $0x14] ss:$0 sps:$4 sm:$0x11]  }
  0xb8   : > { %2034 = vmatmul.mubr.bf16.gmra.mrb[32].mxu0 %v5690_v9  ;;  %2491 = vmatprep.mubr.bf16.mxu1 %v5723_v1  ;;  %v5822_v2 = vsel %vm1335_vm10, %v1498_v51, %v1502_v60  ;;  %v1526_v35 = vrot.slane %v1524_v26, 1  ;;  %v1536_v49 = vshll.u32 %v5558_v46, 16  ;;  %v1156_v51 = vld [vmem:[#allocation2 + $0xc] sm:$0xe]  ;;  %v1629_v38 = vrot.slane %v4969_v28, 1 }
  0xb9   : > { %2041 = vmatprep.mubr.bf16.mxu0 %v5788_v4  ;;  %v5834_v27 = vsel %vm1335_vm10, %v1510_v43, %v1514_v44  ;;  %v1522_v8 = vor.u32 %v1521_v13, %v1517_v18  ;;  %v1533_v33 = vrot.slane %v1531_v41, 1  ;;  %v3726_v40 = vcombine.low %v1156_v51, %v4968_v45  ;;  %v4971_v18 = vld [vmem:[#allocation2 + $0x20] ss:$0 sps:$4 sm:$0x11]   ;;  %v4919_v41 = vld [vmem:[%s6231_s3 + $0x188] sm:$0xff]  }
  0xba   : > { %v1538_v63 = vrot.slane %v1536_v49, 1  ;;  %v3727_v43 = vcombine.low %v1157_v50, %v4970_v7  ;;  %v1632_v13 = vrot.slane %v4971_v18, 1  ;;  %v4923_v49 = vld [vmem:[%s6231_s3 + $0x190] sm:$0xff]   ;;  %v4932_v28 = vld [vmem:[%s6231_s3 + $0x1a8] sm:$0xff]   ;;  %v4938_v7 = vld [vmem:[%s6231_s3 + $0x1f8] sm:$0xff]  }
  0xbb   : > { %v5844_v36 = vsel %vm1335_vm10, %v1522_v8, %v1526_v35  ;;  %v1534_v19 = vor.u32 %v1533_v33, %v1529_v17  ;;  %v1628_v46 = vrot.slane %v3726_v40, 1  ;;  %v4917_v8 = vld [vmem:[%s6231_s3 + $0x180] sm:$0xff]   ;;  %v4918_v35 = vld [vmem:[%s6231_s3 + $0x1c8] sm:$0xff]   ;;  %v4921_v17 = vld [vmem:[%s6231_s3 + $0x1d0] sm:$0xff]  }
  0xbc   : > { %v1631_v21 = vrot.slane %v3727_v43, 1  ;;  %v335_v33 = vld [vmem:[#allocation2 + $0xcc] sm:$0x1]  ;;  %v391_v51 = vld [vmem:[#allocation2 + $0xd4] sm:$0x1]  ;;  %v4928_v40 = vld [vmem:[%s6231_s3 + $0x1e0] sm:$0xff]  }
  0xbd   : > { %v5853_v60 = vsel %vm1335_vm10, %v1534_v19, %v1538_v63  ;;  %v1630_v44 = vsel %vm1624_vm9, %v1628_v46, %v1629_v38  ;;  %v336_v19 = vsel %vm5136_vm3, 0, %v335_v33  ;;  %v4924_v63 = vld [vmem:[%s6231_s3 + $0x1d8] sm:$0xff]   ;;  %v392_v45 = vsel %vm5145_vm4, 0, %v391_v51  ;;  %v4941_v46 = vld [vmem:[%s6231_s3 + $0x208] sm:$0xff]   ;;  %v4942_v38 = vld [vmem:[%s6231_s3 + $0x210] sm:$0xff]  }
  0xbe   : > { %v5864_v26 = vsel %vm1624_vm9, %v1631_v21, %v1632_v13  ;;  %337 = vst [vmem:[#allocation2 + $0xcc] sm:$0x1] %v336_v19  ;;  %393 = vst [vmem:[#allocation2 + $0xd4] sm:$0x1] %v392_v45  ;;  %v4934_v50 = vld [vmem:[%s6231_s3 + $0x1f0] sm:$0xff]   ;;  %v4943_v43 = vld [vmem:[%s6231_s3 + $0x218] sm:$0xff]  }
  0xbf   : > { %2492 = vmatmul.mubr.bf16.gmra.mrb[44].mxu1 %v5694_v61  ;;  %v4944_v21 = vld [vmem:[%s6231_s3 + $0x220] sm:$0xff]   ;;  %v4945_v18 = vld [vmem:[%s6231_s3 + $0x228] sm:$0xff]  }
  0xc0   : > { %2042 = vmatmul.mubr.bf16.gmra.mrb[36].mxu0 %v5707_v34  ;;  %2499 = vmatprep.mubr.bf16.mxu1 %v5743_v24 }
  0xc1   : > { %2049 = vmatprep.mubr.bf16.mxu0 %v5799_v59 }
  0xc7   : > { %2500 = vmatmul.mubr.bf16.gmra.mrb[48].mxu1 %v5718_v47 }
  0xc8   : > { %2050 = vmatmul.mubr.bf16.gmra.mrb[40].mxu0 %v5732_v6  ;;  %2507 = vmatprep.mubr.bf16.mxu1 %v5748_v37 }
  0xc9   : > { %2057 = vmatprep.mubr.bf16.mxu0 %v5810_v30 }
  0xcf   : > { %2508 = vmatmul.mubr.bf16.gmra.mrb[52].mxu1 %v5690_v9 }
  0xd0   : > { %2058 = vmatmul.mubr.bf16.gmra.mrb[44].mxu0 %v5785_v11  ;;  %2515 = vmatprep.mubr.bf16.mxu1 %v5788_v4 }
  0xd1   : > { %2065 = vmatprep.mubr.bf16.mxu0 %v5822_v2 }
  0xd7   : > { %2516 = vmatmul.mubr.bf16.gmra.mrb[56].mxu1 %v5707_v34 }
  0xd8   : > { %2066 = vmatmul.mubr.bf16.gmra.mrb[48].mxu0 %v5796_v22  ;;  %2523 = vmatprep.mubr.bf16.mxu1 %v5799_v59 }
  0xd9   : > { %2073 = vmatprep.mubr.bf16.mxu0 %v5834_v27 }
  0xdf   : > { %2524 = vmatmul.mubr.bf16.gmra.mrb[60].mxu1 %v5732_v6 }
  0xe0   : > { %2074 = vmatmul.mubr.bf16.gmra.mrb[52].mxu0 %v5807_v23  ;;  %2531 = vmatprep.mubr.bf16.mxu1 %v5810_v30 }
  0xe1   : > { %2081 = vmatprep.mubr.bf16.mxu0 %v5844_v36 }
  0xe7   : > { %2532 = vmatmul.mubr.bf16.gmra.mrb[64].mxu1 %v5785_v11 }
  0xe8   : > { %2082 = vmatmul.mubr.bf16.gmra.mrb[56].mxu0 %v5819_v10  ;;  %2539 = vmatprep.mubr.bf16.mxu1 %v5822_v2 }
  0xe9   : > { %2089 = vmatprep.mubr.bf16.mxu0 %v5853_v60 }
  0xef   : > { %2540 = vmatmul.mubr.bf16.gmra.mrb[68].mxu1 %v5796_v22 }
  0xf0   : > { %2090 = vmatmul.mubr.bf16.gmra.mrb[60].mxu0 %v5831_v16  ;;  %2547 = vmatprep.mubr.bf16.mxu1 %v5834_v27 }
  0xf1   : > { %4513 = vmatprep.mubr.bf16.mxu0 %v1630_v44 }
  0xf7   : > { %2548 = vmatmul.mubr.bf16.gmra.mrb[72].mxu1 %v5807_v23 }
  0xf8   : > { %4514 = vmatmul.mubr.bf16.vlgmr.msra.gmra.mrb[64].mxu0 %v5864_v26  ;;  %2555 = vmatprep.mubr.bf16.mxu1 %v5844_v36 }
  0xf9   : > { %4362 = vmatpush3.bf16.msra.mxu0 %v4917_v8  ;;  %4517 = vmatprep.mubr.bf16.mxu0 %v5753_v55 }
  0xfa   : > { %4363 = vmatprep.subr.bf16.mxu0 %v4918_v35 }
  0xfd   : > { %4364 = vmatpush3.bf16.msra.mxu0 %v4919_v41  ;;  %v4946_v41 = vld [vmem:[%s6231_s3 + $0x230] sm:$0xff]  }
  0xfe   : > { %4365 = vmatprep.subr.bf16.mxu0 %v4921_v17 }
  0xff   : > { %2556 = vmatmul.mubr.bf16.gmra.mrb[76].mxu1 %v5819_v10 }
 0x100   : > { %4518 = vmatmul.mubr.bf16.gmra.mrb[68].mxu0 %v5760_v3  ;;  %4561 = vmatprep.mubr.bf16.mxu1 %v5783_v15  ;;  %v4931_v15 = vld [vmem:[%s6231_s3 + $0x1e8] sm:$0xff]  }
 0x101   : > { %4366 = vmatpush3.bf16.msra.mxu0 %v4923_v49  ;;  %4521 = vmatprep.mubr.bf16.mxu0 %v5770_v12 }
 0x102   : > { %4367 = vmatprep.subr.bf16.mxu0 %v4924_v63 }
 0x105   : > { %4368 = vmatpush3.bf16.msra.mxu0 %v4925_v25 }
 0x106   : > { %4369 = vmatprep.subr.bf16.mxu0 %v4928_v40 }
 0x107   : > { %4562 = vmatmul.mubr.bf16.vlgmr.msra.gmra.mrb[80].mxu1 %v1630_v44  ;;  %v4939_v44 = vld [vmem:[%s6231_s3 + $0x1b8] sm:$0xff]  }
 0x108   : > { %4522 = vmatmul.mubr.bf16.gmra.mrb[72].mxu0 %v5774_v53  ;;  %4594 = vmatpush3.bf16.msra.mxu1 %v5713_v42  ;;  %v4936_v42 = vld [vmem:[%s6231_s3 + $0x1b0] sm:$0xff]  }
 0x109   : > { %4370 = vmatpush3.bf16.msra.mxu0 %v4930_v29  ;;  %4525 = vmatprep.mubr.bf16.mxu0 %v5777_v58 }
 0x10a   : > { %4371 = vmatprep.subr.bf16.mxu0 %v4931_v15  ;;  %4565 = vmatprep.mubr.bf16.mxu1 %v5864_v26 }
 0x10b   : > { %4595 = vmatprep.subr.bf16.mxu1 %v4941_v46 }
 0x10c   : > { %4596 = vmatpush3.bf16.msra.mxu1 %v4941_v46 }
 0x10d   : > { %4372 = vmatpush3.bf16.msra.mxu0 %v4932_v28  ;;  %4597 = vmatprep.subr.bf16.mxu1 %v4942_v38 }
 0x10e   : > { %4373 = vmatprep.subr.bf16.mxu0 %v4934_v50 }
 0x10f   : > { %4566 = vmatmul.mubr.bf16.gmra.mrb[84].mxu1 %v5753_v55 }
 0x110   : > { %4526 = vmatmul.mubr.bf16.gmra.mrb[76].mxu0 %v5780_v57  ;;  %4569 = vmatprep.mubr.bf16.mxu1 %v5760_v3 }
 0x111   : > { %4374 = vmatpush3.bf16.msra.mxu0 %v4936_v42  ;;  %2949 = vmatprep.mubr.bf16.mxu0 %v5427_v20 }
 0x112   : > { %4375 = vmatprep.subr.bf16.mxu0 %v4938_v7  ;;  %4598 = vmatpush3.bf16.msra.mxu1 %v4942_v38 }
 0x113   : > { %4599 = vmatprep.subr.bf16.mxu1 %v4943_v43 }
 0x115   : > { %4376 = vmatpush3.bf16.msra.mxu0 %v4939_v44 }
 0x116   : > { %4600 = vmatpush3.bf16.msra.mxu1 %v4943_v43 }
 0x117   : > { %4570 = vmatmul.mubr.bf16.gmra.mrb[88].mxu1 %v5770_v12  ;;  %4601 = vmatprep.subr.bf16.mxu1 %v4944_v21  ;;  %v4105_v20 = vpop.f32.mrb[0].mxu0 }
 0x118   : > { %2950 = vmatmul.mubr.bf16.vlgmr.msra.gmra.mrb[80].mxu0 %v5386_v31  ;;  %4573 = vmatprep.mubr.bf16.mxu1 %v5774_v53  ;;  %v4106_v13 = vpop.f32.mrb[1].mxu0  ;;  %v4947_v31 = vld [vmem:[%s6231_s3 + $0x238] sm:$0xff]  }
 0x119   : > { %2957 = vmatprep.mubr.bf16.mxu0 %v5523_v48  ;;  %v5950_v8 = vadd.f32 %v4106_v13, %v4105_v20  ;;  %v4108_v35 = vpop.f32.mrb[2].mxu0  ;;  %v6260_v48 = vld [vmem:[#allocation3_spill] sm:$0xff] }
 0x11a   : > { %4602 = vmatpush3.bf16.msra.mxu1 %v4944_v21  ;;  %v4109_v17 = vpop.f32.mrb[3].mxu0 }
 0x11b   : > { %4603 = vmatprep.subr.bf16.mxu1 %v4945_v18  ;;  %v5955_v33 = vadd.f32 %v4109_v17, %v4108_v35 }
 0x11e   : > { %4604 = vmatpush3.bf16.msra.mxu1 %v4945_v18 }
 0x11f   : > { %4574 = vmatmul.mubr.bf16.gmra.mrb[92].mxu1 %v5777_v58  ;;  %4605 = vmatprep.subr.bf16.mxu1 %v4946_v41 }
 0x120   : > { %2958 = vmatmul.mubr.bf16.gmra.mrb[84].mxu0 %v5492_v54  ;;  %4577 = vmatprep.mubr.bf16.mxu1 %v5780_v57  ;;  %v6261_v54 = vld [vmem:[#allocation4_spill] sm:$0xff] }
 0x121   : > { %2965 = vmatprep.mubr.bf16.mxu0 %v5620_v56 }
 0x122   : > { %4606 = vmatpush3.bf16.msra.mxu1 %v4946_v41  ;;  %v1135_v41 = vld [vmem:[#allocation2 + $0xcc] sm:$0xf] }
 0x123   : > { %4607 = vmatprep.subr.bf16.mxu1 %v4947_v31 }
 0x126   : > { %4608 = vmatpush3.bf16.msra.mxu1 %v4947_v31 }
 0x127   : > { %4578 = vmatmul.mubr.bf16.gmra.mrb[0].mxu1 %v5253_v62 }
 0x128   : > { %2966 = vmatmul.mubr.bf16.gmra.mrb[88].mxu0 %v5591_v32  ;;  %4581 = vmatprep.mubr.bf16.mxu1 %v5268_v39  ;;  %v6262_v32 = vld [vmem:[#allocation5_spill] sm:$0xff] }
 0x129   : > { %2973 = vmatprep.mubr.bf16.mxu0 %v5664_v52  ;;  %v6263_v52 = vld [vmem:[#allocation6_spill] sm:$0xff] }
 0x12f   : > { %4582 = vmatmul.mubr.bf16.gmra.mrb[4].mxu1 %v6260_v48 }
 0x130   : > { %2974 = vmatmul.mubr.bf16.gmra.mrb[92].mxu0 %v5638_v5  ;;  %4585 = vmatprep.mubr.bf16.mxu1 %v6261_v54  ;;  %v4111_v56 = vpop.f32.mrb[4].mxu0  ;;  %v6264_v5 = vld [vmem:[#allocation7_spill] sm:$0xff] }
 0x131   : > { %2981 = vmatprep.mubr.bf16.mxu0 %v5686_v0  ;;  %v4112_v49 = vpop.f32.mrb[5].mxu0 }
 0x132   : > { %v5972_v19 = vadd.f32 %v4112_v49, %v4111_v56  ;;  %v4114_v63 = vpop.f32.mrb[6].mxu0 }
 0x133   : > { %v4115_v51 = vpop.f32.mrb[7].mxu0 }
 0x134   : > { %v5974_v45 = vadd.f32 %v4115_v51, %v4114_v63 }
 0x137   : > { %4586 = vmatmul.mubr.bf16.gmra.mrb[8].mxu1 %v6262_v32 }
 0x138   : > { %2982 = vmatmul.mubr.bf16.gmra.mrb[96].mxu0 %v5655_v14  ;;  %4589 = vmatprep.mubr.bf16.mxu1 %v6263_v52 }
 0x139   : > { %2989 = vmatprep.mubr.bf16.mxu0 %v5723_v1 }
 0x13f   : > { %4590 = vmatmul.mubr.bf16.gmra.mrb[12].mxu1 %v6264_v5 }
 0x140   : > { %2990 = vmatmul.mubr.bf16.gmra.mrb[100].mxu0 %v5694_v61  ;;  %4609 = vmatprep.mubr.bf16.mxu1 %v5864_v26 }
 0x141   : > { %2997 = vmatprep.mubr.bf16.mxu0 %v5743_v24 }
 0x147   : > { %4610 = vmatmul.mubr.bf16.vlgmr.msra.gmra.mrb[80].mxu1 %v5753_v55 }
 0x148   : > { %2998 = vmatmul.mubr.bf16.gmra.mrb[104].mxu0 %v5718_v47  ;;  %v4117_v0 = vpop.f32.mrb[8].mxu0  ;;  %4613 = vmatprep.mubr.bf16.mxu1 %v5760_v3 }
 0x149   : > { %3005 = vmatprep.mubr.bf16.mxu0 %v5748_v37  ;;  %v4118_v14 = vpop.f32.mrb[9].mxu0 }
 0x14a   : > { %v5988_v25 = vadd.f32 %v4118_v14, %v4117_v0  ;;  %v4120_v1 = vpop.f32.mrb[10].mxu0  ;;  %v6265_v0 = vld [vmem:[#allocation8_spill] sm:$0xff] }
 0x14b   : > { %v4121_v40 = vpop.f32.mrb[11].mxu0 }
 0x14c   : > { %v5990_v29 = vadd.f32 %v4121_v40, %v4120_v1 }
 0x14f   : > { %4614 = vmatmul.mubr.bf16.gmra.mrb[84].mxu1 %v5770_v12 }
 0x150   : > { %3006 = vmatmul.mubr.bf16.gmra.mrb[108].mxu0 %v5690_v9  ;;  %4617 = vmatprep.mubr.bf16.mxu1 %v5774_v53 }
 0x151   : > { %3013 = vmatprep.mubr.bf16.mxu0 %v5788_v4 }
 0x157   : > { %4618 = vmatmul.mubr.bf16.gmra.mrb[88].mxu1 %v5777_v58 }
 0x158   : > { %3014 = vmatmul.mubr.bf16.gmra.mrb[112].mxu0 %v5707_v34  ;;  %4621 = vmatprep.mubr.bf16.mxu1 %v5780_v57 }
 0x159   : > { %3021 = vmatprep.mubr.bf16.mxu0 %v5799_v59 }
 0x15a   : > { %v4241_v24 = vpop.f32.mrb[16].mxu1 }
 0x15b   : > { %v4242_v61 = vpop.f32.mrb[17].mxu1 }
 0x15c   : > { %v6000_v47 = vadd.f32 %v4242_v61, %v4241_v24  ;;  %v4244_v37 = vpop.f32.mrb[18].mxu1 }
 0x15d   : > { %v4245_v55 = vpop.f32.mrb[19].mxu1 }
 0x15e   : > { %v6002_v3 = vadd.f32 %v4245_v55, %v4244_v37 }
 0x15f   : > { %4622 = vmatmul.mubr.bf16.gmra.mrb[92].mxu1 %v5253_v62 }
 0x160   : > { %v4123_v9 = vpop.f32.mrb[12].mxu0  ;;  %3022 = vmatmul.mubr.bf16.gmra.mrb[116].mxu0 %v5732_v6  ;;  %4625 = vmatprep.mubr.bf16.mxu1 %v5268_v39 }
 0x161   : > { %v4124_v12 = vpop.f32.mrb[13].mxu0  ;;  %3029 = vmatprep.mubr.bf16.mxu0 %v5810_v30 }
 0x162   : > { %v6007_v34 = vadd.f32 %v4124_v12, %v4123_v9  ;;  %v4126_v53 = vpop.f32.mrb[14].mxu0  ;;  %v4247_v57 = vpop.f32.mrb[20].mxu1 }
 0x163   : > { %v4127_v58 = vpop.f32.mrb[15].mxu0  ;;  %v4248_v59 = vpop.f32.mrb[21].mxu1 }
 0x164   : > { %v6010_v4 = vadd.f32 %v4127_v58, %v4126_v53  ;;  %v6012_v26 = vadd.f32 %v4248_v59, %v4247_v57  ;;  %v4250_v15 = vpop.f32.mrb[22].mxu1 }
 0x165   : > { %v4251_v46 = vpop.f32.mrb[23].mxu1 }
 0x166   : > { %v6014_v62 = vadd.f32 %v4251_v46, %v4250_v15 }
 0x167   : > { %4626 = vmatmul.mubr.bf16.gmra.mrb[0].mxu1 %v6260_v48 }
 0x168   : > { %3030 = vmatmul.mubr.bf16.gmra.mrb[120].mxu0 %v5785_v11  ;;  %4629 = vmatprep.mubr.bf16.mxu1 %v6261_v54  ;;  %v1136_v11 = vld [vmem:[#allocation2 + $0xd0] sm:$0xf]  ;;  %v4949_v54 = vld [vmem:[#allocation2 + $0xd4] ss:$0 sps:$4 sm:$0x11]  }
 0x169   : > { %3037 = vmatprep.mubr.bf16.mxu0 %v5822_v2  ;;  %v1172_v2 = vld [vmem:[#allocation2 + $0xcc] sm:$0xe]  ;;  %v1677_v1 = vrot.slane %v4949_v54, 1 }
 0x16a   : > { %v4253_v39 = vpop.f32.mrb[24].mxu1  ;;  %v3742_v56 = vcombine.low %v1172_v2, %v1136_v11 }
 0x16b   : > { %v4129_v6 = vpop.f32.mrb[16].mxu0  ;;  %v4254_v30 = vpop.f32.mrb[25].mxu1 }
 0x16c   : > { %v4130_v28 = vpop.f32.mrb[17].mxu0  ;;  %v6020_v38 = vadd.f32 %v4254_v30, %v4253_v39  ;;  %v4256_v50 = vpop.f32.mrb[26].mxu1  ;;  %v1676_v14 = vrot.slane %v3742_v56, 1 }
 0x16d   : > { %v6022_v42 = vadd.f32 %v4130_v28, %v4129_v6  ;;  %v4132_v7 = vpop.f32.mrb[18].mxu0  ;;  %v4257_v43 = vpop.f32.mrb[27].mxu1 }
 0x16e   : > { %v4133_v44 = vpop.f32.mrb[19].mxu0  ;;  %v6024_v21 = vadd.f32 %v4257_v43, %v4256_v50  ;;  %v1678_v53 = vsel %vm1624_vm9, %v1676_v14, %v1677_v1 }
 0x16f   : > { %v6026_v18 = vadd.f32 %v4133_v44, %v4132_v7  ;;  %4630 = vmatmul.mubr.bf16.gmra.mrb[4].mxu1 %v6262_v32 }
 0x170   : > { %3038 = vmatmul.mubr.bf16.gmra.mrb[124].mxu0 %v5796_v22  ;;  %4633 = vmatprep.mubr.bf16.mxu1 %v6263_v52 }
 0x171   : > { %3045 = vmatprep.mubr.bf16.mxu0 %v5834_v27  ;;  %v3706_v27 = vcombine.low %v1135_v41, %v1136_v11 }
 0x172   : > { %v4259_v20 = vpop.f32.mrb[28].mxu1 }
 0x173   : > { %v4135_v13 = vpop.f32.mrb[20].mxu0  ;;  %v4260_v35 = vpop.f32.mrb[29].mxu1  ;;  %v1543_v24 = vshll.u32 %v3706_v27, 16  ;;  %v1541_v15 = vshrl.u32 %v3706_v27, 16 }
 0x174   : > { %v4136_v17 = vpop.f32.mrb[21].mxu0  ;;  %v6032_v31 = vadd.f32 %v4260_v35, %v4259_v20  ;;  %v4262_v48 = vpop.f32.mrb[30].mxu1 }
 0x175   : > { %v6034_v49 = vadd.f32 %v4136_v17, %v4135_v13  ;;  %v4138_v63 = vpop.f32.mrb[22].mxu0  ;;  %v4263_v22 = vpop.f32.mrb[31].mxu1  ;;  %v1545_v46 = vrot.slane %v1543_v24, 1 }
 0x176   : > { %v4139_v51 = vpop.f32.mrb[23].mxu0  ;;  %v6036_v32 = vadd.f32 %v4263_v22, %v4262_v48 }
 0x177   : > { %v6038_v52 = vadd.f32 %v4139_v51, %v4138_v63  ;;  %4634 = vmatmul.mubr.bf16.gmra.mrb[8].mxu1 %v6264_v5  ;;  %v1546_v6 = vor.u32 %v1545_v46, %v1541_v15 }
 0x178   : > { %3046 = vmatmul.mubr.bf16.gmra.mrb[128].mxu0 %v5807_v23  ;;  %4637 = vmatprep.mubr.bf16.mxu1 %v6265_v0 }
 0x179   : > { %3053 = vmatprep.mubr.bf16.mxu0 %v5844_v36  ;;  %v1548_v36 = vshll.u32 %v4949_v54, 16 }
 0x17a   : > { %v4265_v40 = vpop.f32.mrb[32].mxu1 }
 0x17b   : > { %v4141_v61 = vpop.f32.mrb[24].mxu0  ;;  %v4266_v37 = vpop.f32.mrb[33].mxu1  ;;  %v1550_v30 = vrot.slane %v1548_v36, 1 }
 0x17c   : > { %v4142_v55 = vpop.f32.mrb[25].mxu0  ;;  %v6044_v9 = vadd.f32 %v4266_v37, %v4265_v40  ;;  %v4268_v12 = vpop.f32.mrb[34].mxu1 }
 0x17d   : > { %v6047_v58 = vadd.f32 %v4142_v55, %v4141_v61  ;;  %v4144_v5 = vpop.f32.mrb[26].mxu0  ;;  %v4269_v23 = vpop.f32.mrb[35].mxu1  ;;  %v1551_v41 = vsel %vm1335_vm10, %v1546_v6, %v1550_v30 }
 0x17e   : > { %v4145_v57 = vpop.f32.mrb[27].mxu0  ;;  %v6049_v59 = vadd.f32 %v4269_v23, %v4268_v12 }
 0x17f   : > { %v6051_v39 = vadd.f32 %v4145_v57, %v4144_v5  ;;  %4638 = vmatmul.mubr.bf16.gmra.mrb[12].mxu1 %v1678_v53 }
 0x180   : > { %3054 = vmatmul.mubr.bf16.gmra.mrb[132].mxu0 %v5819_v10 }
 0x181   : > { %3061 = vmatprep.mubr.bf16.mxu0 %v5853_v60 }
 0x182   : > { %v4271_v28 = vpop.f32.mrb[36].mxu1 }
 0x183   : > { %v4147_v50 = vpop.f32.mrb[28].mxu0  ;;  %v4272_v7 = vpop.f32.mrb[37].mxu1 }
 0x184   : > { %v4148_v43 = vpop.f32.mrb[29].mxu0  ;;  %v6055_v44 = vadd.f32 %v4272_v7, %v4271_v28  ;;  %v4274_v11 = vpop.f32.mrb[38].mxu1 }
 0x185   : > { %v6057_v2 = vadd.f32 %v4148_v43, %v4147_v50  ;;  %v4150_v20 = vpop.f32.mrb[30].mxu0  ;;  %v4275_v13 = vpop.f32.mrb[39].mxu1 }
 0x186   : > { %v4151_v35 = vpop.f32.mrb[31].mxu0  ;;  %v6060_v17 = vadd.f32 %v4275_v13, %v4274_v11 }
 0x187   : > { %v6062_v10 = vadd.f32 %v4151_v35, %v4150_v20 }
 0x188   : > { %3062 = vmatmul.mubr.bf16.gmra.mrb[136].mxu0 %v5831_v16 }
 0x189   : > { %3069 = vmatprep.mubr.bf16.mxu0 %v1551_v41 }
 0x18a   : > { %v4277_v60 = vpop.f32.mrb[40].mxu1 }
 0x18b   : > { %v4153_v48 = vpop.f32.mrb[32].mxu0  ;;  %v4278_v54 = vpop.f32.mrb[41].mxu1 }
 0x18c   : > { %v4154_v56 = vpop.f32.mrb[33].mxu0  ;;  %v6065_v63 = vadd.f32 %v4278_v54, %v4277_v60  ;;  %v4280_v22 = vpop.f32.mrb[42].mxu1 }
 0x18d   : > { %v4155_v51 = vadd.f32 %v4154_v56, %v4153_v48  ;;  %v4156_v0 = vpop.f32.mrb[34].mxu0  ;;  %v4281_v14 = vpop.f32.mrb[43].mxu1 }
 0x18e   : > { %v4157_v1 = vpop.f32.mrb[35].mxu0  ;;  %v6067_v40 = vadd.f32 %v4281_v14, %v4280_v22 }
 0x18f   : > { %v4158_v24 = vadd.f32 %v4157_v1, %v4156_v0 }
 0x190   : > { %3070 = vmatmul.mubr.bf16.gmra.mrb[140].mxu0 %v3706_v27 }
 0x192   : > { %v4283_v61 = vpop.f32.mrb[44].mxu1 }
 0x193   : > { %v4159_v37 = vpop.f32.mrb[36].mxu0  ;;  %v4284_v55 = vpop.f32.mrb[45].mxu1 }
 0x194   : > { %v4160_v16 = vpop.f32.mrb[37].mxu0  ;;  %v6069_v12 = vadd.f32 %v4284_v55, %v4283_v61  ;;  %v4286_v53 = vpop.f32.mrb[46].mxu1 }
 0x195   : > { %v4161_v5 = vadd.f32 %v4160_v16, %v4159_v37  ;;  %v4162_v23 = vpop.f32.mrb[38].mxu0  ;;  %v4287_v57 = vpop.f32.mrb[47].mxu1 }
 0x196   : > { %v4163_v15 = vpop.f32.mrb[39].mxu0  ;;  %v6071_v46 = vadd.f32 %v4287_v57, %v4286_v53 }
 0x197   : > { %v4164_v36 = vadd.f32 %v4163_v15, %v4162_v23 }
 0x19a   : > { %v4289_v6 = vpop.f32.mrb[48].mxu1 }
 0x19b   : > { %v4165_v30 = vpop.f32.mrb[40].mxu0  ;;  %v4290_v28 = vpop.f32.mrb[49].mxu1 }
 0x19c   : > { %v4166_v50 = vpop.f32.mrb[41].mxu0  ;;  %v4291_v7 = vadd.f32 %v4290_v28, %v4289_v6  ;;  %v4292_v27 = vpop.f32.mrb[50].mxu1 }
 0x19d   : > { %v4167_v43 = vadd.f32 %v4166_v50, %v4165_v30  ;;  %v4168_v11 = vpop.f32.mrb[42].mxu0  ;;  %v4293_v20 = vpop.f32.mrb[51].mxu1 }
 0x19e   : > { %v4169_v13 = vpop.f32.mrb[43].mxu0  ;;  %v6073_v35 = vadd.f32 %v4291_v7, %v4155_v51  ;;  %v4294_v41 = vadd.f32 %v4293_v20, %v4292_v27 }
 0x19f   : > { %v4170_v60 = vadd.f32 %v4169_v13, %v4168_v11 }
 0x1a0   : > { %v6075_v48 = vadd.f32 %v4294_v41, %v4158_v24 }
 0x1a2   : > { %v4295_v54 = vpop.f32.mrb[52].mxu1 }
 0x1a3   : > { %v4171_v56 = vpop.f32.mrb[44].mxu0  ;;  %v4296_v22 = vpop.f32.mrb[53].mxu1 }
 0x1a4   : > { %v4172_v0 = vpop.f32.mrb[45].mxu0  ;;  %v4297_v14 = vadd.f32 %v4296_v22, %v4295_v54  ;;  %v4298_v1 = vpop.f32.mrb[54].mxu1 }
 0x1a5   : > { %v4173_v61 = vadd.f32 %v4172_v0, %v4171_v56  ;;  %v4174_v37 = vpop.f32.mrb[46].mxu0  ;;  %v4299_v55 = vpop.f32.mrb[55].mxu1 }
 0x1a6   : > { %v4175_v16 = vpop.f32.mrb[47].mxu0  ;;  %v6077_v53 = vadd.f32 %v4297_v14, %v4161_v5  ;;  %v4300_v23 = vadd.f32 %v4299_v55, %v4298_v1 }
 0x1a7   : > { %v4176_v57 = vadd.f32 %v4175_v16, %v4174_v37 }
 0x1a8   : > { %v6079_v51 = vadd.f32 %v4300_v23, %v4164_v36 }
 0x1aa   : > { %v4301_v15 = vpop.f32.mrb[56].mxu1 }
 0x1ab   : > { %v4177_v6 = vpop.f32.mrb[48].mxu0  ;;  %v4302_v24 = vpop.f32.mrb[57].mxu1 }
 0x1ac   : > { %v4178_v30 = vpop.f32.mrb[49].mxu0  ;;  %v4303_v28 = vadd.f32 %v4302_v24, %v4301_v15  ;;  %v4304_v50 = vpop.f32.mrb[58].mxu1 }
 0x1ad   : > { %v4179_v7 = vadd.f32 %v4178_v30, %v4177_v6  ;;  %v4180_v27 = vpop.f32.mrb[50].mxu0  ;;  %v4305_v11 = vpop.f32.mrb[59].mxu1 }
 0x1ae   : > { %v4181_v20 = vpop.f32.mrb[51].mxu0  ;;  %v6081_v13 = vadd.f32 %v4303_v28, %v4167_v43  ;;  %v4306_v41 = vadd.f32 %v4305_v11, %v4304_v50 }
 0x1af   : > { %v4182_v54 = vadd.f32 %v4181_v20, %v4180_v27 }
 0x1b0   : > { %v6083_v5 = vadd.f32 %v4306_v41, %v4170_v60 }
 0x1b2   : > { %6266 = vst [vmem:[#allocation3_spill] sm:$0xff] %v6083_v5  ;;  %v4307_v56 = vpop.f32.mrb[60].mxu1 }
 0x1b3   : > { %v4183_v22 = vpop.f32.mrb[52].mxu0  ;;  %v4308_v36 = vpop.f32.mrb[61].mxu1 }
 0x1b4   : > { %v4184_v0 = vpop.f32.mrb[53].mxu0  ;;  %v4309_v14 = vadd.f32 %v4308_v36, %v4307_v56  ;;  %v4310_v1 = vpop.f32.mrb[62].mxu1 }
 0x1b5   : > { %v4185_v37 = vadd.f32 %v4184_v0, %v4183_v22  ;;  %v4186_v55 = vpop.f32.mrb[54].mxu0  ;;  %v4311_v16 = vpop.f32.mrb[63].mxu1 }
 0x1b6   : > { %v4187_v23 = vpop.f32.mrb[55].mxu0  ;;  %v6085_v15 = vadd.f32 %v4309_v14, %v4173_v61  ;;  %v4312_v6 = vadd.f32 %v4311_v16, %v4310_v1 }
 0x1b7   : > { %v4188_v24 = vadd.f32 %v4187_v23, %v4186_v55 }
 0x1b8   : > { %6267 = vst [vmem:[#allocation4_spill] sm:$0xff] %v6085_v15  ;;  %v6087_v43 = vadd.f32 %v4312_v6, %v4176_v57 }
 0x1ba   : > { %6268 = vst [vmem:[#allocation5_spill] sm:$0xff] %v6087_v43  ;;  %v4313_v30 = vpop.f32.mrb[64].mxu1 }
 0x1bb   : > { %v4189_v28 = vpop.f32.mrb[56].mxu0  ;;  %v4314_v60 = vpop.f32.mrb[65].mxu1 }
 0x1bc   : > { %v4190_v50 = vpop.f32.mrb[57].mxu0  ;;  %v4315_v27 = vadd.f32 %v4314_v60, %v4313_v30  ;;  %v4316_v11 = vpop.f32.mrb[66].mxu1 }
 0x1bd   : > { %v4191_v20 = vadd.f32 %v4190_v50, %v4189_v28  ;;  %v4192_v41 = vpop.f32.mrb[58].mxu0  ;;  %v4317_v56 = vpop.f32.mrb[67].mxu1 }
 0x1be   : > { %v4193_v36 = vpop.f32.mrb[59].mxu0  ;;  %v6089_v22 = vadd.f32 %v4315_v27, %v4179_v7  ;;  %v4318_v0 = vadd.f32 %v4317_v56, %v4316_v11 }
 0x1bf   : > { %v4194_v5 = vadd.f32 %v4193_v36, %v4192_v41 }
 0x1c0   : > { %v6091_v61 = vadd.f32 %v4318_v0, %v4182_v54 }
 0x1c2   : > { %v4319_v14 = vpop.f32.mrb[68].mxu1 }
 0x1c3   : > { %v4195_v1 = vpop.f32.mrb[60].mxu0  ;;  %v4320_v57 = vpop.f32.mrb[69].mxu1 }
 0x1c4   : > { %v4196_v55 = vpop.f32.mrb[61].mxu0  ;;  %v4321_v16 = vadd.f32 %v4320_v57, %v4319_v14  ;;  %v4322_v23 = vpop.f32.mrb[70].mxu1 }
 0x1c5   : > { %v4197_v6 = vadd.f32 %v4196_v55, %v4195_v1  ;;  %v4198_v43 = vpop.f32.mrb[62].mxu0  ;;  %v4323_v30 = vpop.f32.mrb[71].mxu1 }
 0x1c6   : > { %v4199_v60 = vpop.f32.mrb[63].mxu0  ;;  %v6093_v28 = vadd.f32 %v4321_v16, %v4185_v37  ;;  %v4324_v50 = vadd.f32 %v4323_v30, %v4322_v23 }
 0x1c7   : > { %v4200_v15 = vadd.f32 %v4199_v60, %v4198_v43 }
 0x1c8   : > { %v6095_v7 = vadd.f32 %v4324_v50, %v4188_v24 }
 0x1ca   : > { %v4325_v27 = vpop.f32.mrb[72].mxu1 }
 0x1cb   : > { %v4515_v11 = vpop.f32.mrb[64].mxu0  ;;  %v4326_v54 = vpop.f32.mrb[73].mxu1 }
 0x1cc   : > { %v2141_v41 = vadd.f32 %v4515_v11, %v5972_v19  ;;  %v2132_v56 = vpop.f32.mrb[65].mxu0  ;;  %v4327_v36 = vadd.f32 %v4326_v54, %v4325_v27  ;;  %v4328_v0 = vpop.f32.mrb[74].mxu1 }
 0x1cd   : > { %v2133_v14 = vadd.f32 %v5950_v8, %v2132_v56  ;;  %v4516_v1 = vpop.f32.mrb[66].mxu0  ;;  %v4329_v57 = vpop.f32.mrb[75].mxu1 }
 0x1ce   : > { %v6100_v55 = vadd.f32 %v6012_v26, %v2141_v41  ;;  %v2144_v37 = vadd.f32 %v4516_v1, %v5974_v45  ;;  %v2135_v43 = vpop.f32.mrb[67].mxu0  ;;  %v6103_v24 = vadd.f32 %v4327_v36, %v4191_v20  ;;  %v4330_v16 = vadd.f32 %v4329_v57, %v4328_v0 }
 0x1cf   : > { %v2438_v23 = vadd.f32 %v6000_v47, %v2133_v14  ;;  %v2136_v19 = vadd.f32 %v5955_v33, %v2135_v43 }
 0x1d0   : > { %v2449_v30 = vadd.f32 %v6014_v62, %v2144_v37  ;;  %v6108_v60 = vadd.f32 %v4330_v16, %v4194_v5 }
 0x1d1   : > { %v2441_v8 = vadd.f32 %v6002_v3, %v2136_v19 }
 0x1d2   : > { %v4331_v50 = vpop.f32.mrb[76].mxu1 }
 0x1d3   : > { %v4519_v27 = vpop.f32.mrb[68].mxu0  ;;  %v4332_v26 = vpop.f32.mrb[77].mxu1 }
 0x1d4   : > { %v2157_v11 = vadd.f32 %v4519_v27, %v6007_v34  ;;  %v2148_v45 = vpop.f32.mrb[69].mxu0  ;;  %v4333_v54 = vadd.f32 %v4332_v26, %v4331_v50  ;;  %v4334_v20 = vpop.f32.mrb[78].mxu1 }
 0x1d5   : > { %v2149_v41 = vadd.f32 %v5988_v25, %v2148_v45  ;;  %v4520_v56 = vpop.f32.mrb[70].mxu0  ;;  %v4335_v47 = vpop.f32.mrb[79].mxu1 }
 0x1d6   : > { %v6114_v33 = vadd.f32 %v6032_v31, %v2157_v11  ;;  %v2160_v62 = vadd.f32 %v4520_v56, %v6010_v4  ;;  %v2151_v5 = vpop.f32.mrb[71].mxu0  ;;  %v6117_v36 = vadd.f32 %v4333_v54, %v4197_v6  ;;  %v4336_v3 = vadd.f32 %v4335_v47, %v4334_v20 }
 0x1d7   : > { %v2454_v0 = vadd.f32 %v6020_v38, %v2149_v41  ;;  %v2152_v34 = vadd.f32 %v5990_v29, %v2151_v5 }
 0x1d8   : > { %v2465_v14 = vadd.f32 %v6036_v32, %v2160_v62  ;;  %v6122_v1 = vadd.f32 %v4336_v3, %v4200_v15 }
 0x1d9   : > { %v2457_v25 = vadd.f32 %v6024_v21, %v2152_v34 }
 0x1db   : > { %v4523_v57 = vpop.f32.mrb[72].mxu0 }
 0x1dc   : > { %v2173_v31 = vadd.f32 %v4523_v57, %v6034_v49  ;;  %v2164_v37 = vpop.f32.mrb[73].mxu0 }
 0x1dd   : > { %v2165_v4 = vadd.f32 %v6022_v42, %v2164_v37  ;;  %v4524_v43 = vpop.f32.mrb[74].mxu0 }
 0x1de   : > { %v6128_v6 = vadd.f32 %v6055_v44, %v2173_v31  ;;  %v2176_v38 = vadd.f32 %v4524_v43, %v6038_v52  ;;  %v2167_v16 = vpop.f32.mrb[75].mxu0 }
 0x1df   : > { %v2470_v29 = vadd.f32 %v6044_v9, %v2165_v4  ;;  %v2168_v32 = vadd.f32 %v6026_v18, %v2167_v16 }
 0x1e0   : > { %v2481_v15 = vadd.f32 %v6060_v17, %v2176_v38 }
 0x1e1   : > { %v2473_v21 = vadd.f32 %v6049_v59, %v2168_v32 }
 0x1e3   : > { %v4527_v19 = vpop.f32.mrb[76].mxu0 }
 0x1e4   : > { %v2189_v49 = vadd.f32 %v4527_v19, %v6057_v2  ;;  %v2180_v50 = vpop.f32.mrb[77].mxu0 }
 0x1e5   : > { %v2181_v42 = vadd.f32 %v6047_v58, %v2180_v50  ;;  %v4528_v27 = vpop.f32.mrb[78].mxu0 }
 0x1e6   : > { %v6138_v44 = vadd.f32 %v6069_v12, %v2189_v49  ;;  %v2192_v52 = vadd.f32 %v4528_v27, %v6062_v10  ;;  %v2183_v26 = vpop.f32.mrb[79].mxu0 }
 0x1e7   : > { %v6142_v9 = vadd.f32 %v6065_v63, %v2181_v42  ;;  %v2184_v18 = vadd.f32 %v6051_v39, %v2183_v26 }
 0x1e8   : > { %v6146_v59 = vadd.f32 %v6071_v46, %v2192_v52 }
 0x1e9   : > { %v6149_v2 = vadd.f32 %v6067_v40, %v2184_v18 }
 0x1eb   : > { %v4377_v17 = vpop.f32.mrb[80].mxu0 }
 0x1ec   : > { %v4378_v58 = vpop.f32.mrb[81].mxu0 }
 0x1ed   : > { %v4379_v11 = vadd.f32 %v4378_v58, %v4377_v17  ;;  %v4380_v45 = vpop.f32.mrb[82].mxu0 }
 0x1ee   : > { %v4381_v12 = vpop.f32.mrb[83].mxu0 }
 0x1ef   : > { %v4382_v54 = vadd.f32 %v4381_v12, %v4380_v45  ;;  %v4663_v20 = vadd.f32 %v4379_v11, %v2438_v23 }
 0x1f1   : > { %v4671_v10 = vadd.f32 %v4382_v54, %v2441_v8 }
 0x1f3   : > { %v4383_v41 = vpop.f32.mrb[84].mxu0 }
 0x1f4   : > { %v4384_v56 = vpop.f32.mrb[85].mxu0 }
 0x1f5   : > { %v4385_v63 = vadd.f32 %v4384_v56, %v4383_v41  ;;  %v4386_v47 = vpop.f32.mrb[86].mxu0 }
 0x1f6   : > { %v4387_v62 = vpop.f32.mrb[87].mxu0 }
 0x1f7   : > { %v4388_v39 = vadd.f32 %v4387_v62, %v4386_v47  ;;  %v4659_v46 = vadd.f32 %v4385_v63, %v6100_v55 }
 0x1f9   : > { %v4667_v5 = vadd.f32 %v4388_v39, %v2449_v30 }
 0x1fb   : > { %v4389_v3 = vpop.f32.mrb[88].mxu0 }
 0x1fc   : > { %v4390_v40 = vpop.f32.mrb[89].mxu0 }
 0x1fd   : > { %v4391_v34 = vadd.f32 %v4390_v40, %v4389_v3  ;;  %v4392_v57 = vpop.f32.mrb[90].mxu0 }
 0x1fe   : > { %v4393_v31 = vpop.f32.mrb[91].mxu0 }
 0x1ff   : > { %v4394_v37 = vadd.f32 %v4393_v31, %v4392_v57  ;;  %v4679_v4 = vadd.f32 %v4391_v34, %v2454_v0 }
 0x201   : > { %v6152_v43 = vadd.f32 %v4394_v37, %v2457_v25 }
 0x203   : > { %v4395_v23 = vpop.f32.mrb[92].mxu0 }
 0x204   : > { %v4396_v8 = vpop.f32.mrb[93].mxu0 }
 0x205   : > { %v4397_v38 = vadd.f32 %v4396_v8, %v4395_v23  ;;  %v4398_v16 = vpop.f32.mrb[94].mxu0 }
 0x206   : > { %v4399_v32 = vpop.f32.mrb[95].mxu0 }
 0x207   : > { %v4400_v19 = vadd.f32 %v4399_v32, %v4398_v16  ;;  %v4675_v49 = vadd.f32 %v4397_v38, %v6114_v33 }
 0x209   : > { %v4683_v50 = vadd.f32 %v4400_v19, %v2465_v14 }
 0x20b   : > { %v4401_v55 = vpop.f32.mrb[96].mxu0 }
 0x20c   : > { %v4402_v30 = vpop.f32.mrb[97].mxu0 }
 0x20d   : > { %v4403_v42 = vadd.f32 %v4402_v30, %v4401_v55  ;;  %v4404_v27 = vpop.f32.mrb[98].mxu0 }
 0x20e   : > { %v4405_v52 = vpop.f32.mrb[99].mxu0 }
 0x20f   : > { %v4406_v26 = vadd.f32 %v4405_v52, %v4404_v27  ;;  %v6155_v18 = vadd.f32 %v4403_v42, %v2470_v29 }
 0x211   : > { %v6157_v0 = vadd.f32 %v4406_v26, %v2473_v21 }
 0x213   : > { %v4407_v25 = vpop.f32.mrb[100].mxu0 }
 0x214   : > { %v4408_v17 = vpop.f32.mrb[101].mxu0 }
 0x215   : > { %v4409_v58 = vadd.f32 %v4408_v17, %v4407_v25  ;;  %v4410_v11 = vpop.f32.mrb[102].mxu0 }
 0x216   : > { %v4411_v45 = vpop.f32.mrb[103].mxu0 }
 0x217   : > { %v4412_v12 = vadd.f32 %v4411_v45, %v4410_v11  ;;  %v6160_v33 = vadd.f32 %v4409_v58, %v6128_v6 }
 0x219   : > { %v6162_v14 = vadd.f32 %v4412_v12, %v2481_v15 }
 0x21a   : > { %v4611_v54 = vpop.f32.mrb[80].mxu1 }
 0x21b   : > { %v4413_v41 = vpop.f32.mrb[104].mxu0  ;;  %v4660_v56 = vadd.f32 %v4659_v46, %v4611_v54  ;;  %v3112_v63 = vpop.f32.mrb[81].mxu1 }
 0x21c   : > { %v4414_v29 = vpop.f32.mrb[105].mxu0  ;;  %v4664_v47 = vadd.f32 %v4663_v20, %v3112_v63  ;;  %v4612_v21 = vpop.f32.mrb[82].mxu1 }
 0x21d   : > { %v4415_v62 = vadd.f32 %v4414_v29, %v4413_v41  ;;  %v4416_v39 = vpop.f32.mrb[106].mxu0  ;;  %v4668_v3 = vadd.f32 %v4667_v5, %v4612_v21  ;;  %v3115_v40 = vpop.f32.mrb[83].mxu1  ;;  %v3465_v8 = vmul.f32 %v4660_v56, %v4660_v56 }
 0x21e   : > { %v4417_v34 = vpop.f32.mrb[107].mxu0  ;;  %v4672_v6 = vadd.f32 %v4671_v10, %v3115_v40  ;;  %v3463_v20 = vmul.f32 %v4664_v47, %v4664_v47 }
 0x21f   : > { %v4418_v15 = vadd.f32 %v4417_v34, %v4416_v39  ;;  %v3987_v46 = vpack.c.bf16 %v4668_v3, %v4660_v56  ;;  %v6172_v57 = vadd.f32 %v4415_v62, %v6142_v9  ;;  %v3466_v42 = vmul.f32 %v4668_v3, %v4668_v3 }
 0x220   : > { %v3982_v31 = vpack.c.bf16 %v4672_v6, %v4664_v47  ;;  %v3431_v37 = vadd.f32 %v4672_v6, %v4664_v47  ;;  %v3464_v5 = vmul.f32 %v4672_v6, %v4672_v6 }
 0x221   : > { %4074 = vst [vmem:[%s6169_s17 + $0x8] sm:$0xff] %v3987_v46   ;;  %v6176_v23 = vadd.f32 %v4418_v15, %v6149_v2 }
 0x222   : > { %3983 = vst [vmem:[%s6169_s17] sm:$0xff] %v3982_v31   ;;  %v3432_v38 = vadd.f32 %v4660_v56, %v3431_v37  ;;  %v3495_v16 = vadd.f32 %v3464_v5, %v3463_v20  ;;  %v4615_v32 = vpop.f32.mrb[84].mxu1 }
 0x223   : > { %v4419_v19 = vpop.f32.mrb[108].mxu0  ;;  %v4676_v10 = vadd.f32 %v4675_v49, %v4615_v32  ;;  %v3128_v55 = vpop.f32.mrb[85].mxu1 }
 0x224   : > { %v4420_v30 = vpop.f32.mrb[109].mxu0  ;;  %v3496_v9 = vadd.f32 %v3495_v16, %v3465_v8  ;;  %v4680_v27 = vadd.f32 %v4679_v4, %v3128_v55  ;;  %v3433_v52 = vadd.f32 %v4668_v3, %v3432_v38  ;;  %v4616_v26 = vpop.f32.mrb[86].mxu1 }
 0x225   : > { %v4421_v25 = vadd.f32 %v4420_v30, %v4419_v19  ;;  %v4422_v17 = vpop.f32.mrb[110].mxu0  ;;  %v4684_v58 = vadd.f32 %v4683_v50, %v4616_v26  ;;  %v3131_v2 = vpop.f32.mrb[87].mxu1  ;;  %v3469_v50 = vmul.f32 %v4676_v10, %v4676_v10 }
 0x226   : > { %v4423_v11 = vpop.f32.mrb[111].mxu0  ;;  %v3434_v45 = vadd.f32 %v4680_v27, %v3433_v52  ;;  %v3467_v12 = vmul.f32 %v4680_v27, %v4680_v27  ;;  %v3497_v54 = vadd.f32 %v3496_v9, %v3466_v42  ;;  %v4688_v41 = vadd.f32 %v6152_v43, %v3131_v2 }
 0x227   : > { %v4424_v49 = vadd.f32 %v4423_v11, %v4422_v17  ;;  %v3997_v56 = vpack.c.bf16 %v4684_v58, %v4676_v10  ;;  %v4707_v63 = vadd.f32 %v4421_v25, %v6138_v44  ;;  %v3470_v46 = vmul.f32 %v4684_v58, %v4684_v58 }
 0x228   : > { %v3498_v29 = vadd.f32 %v3497_v54, %v3467_v12  ;;  %v3992_v4 = vpack.c.bf16 %v4688_v41, %v4680_v27  ;;  %v3435_v47 = vadd.f32 %v4688_v41, %v3434_v45  ;;  %v3468_v21 = vmul.f32 %v4688_v41, %v4688_v41 }
 0x229   : > { %4076 = vst [vmem:[%s6169_s17 + $0x18] sm:$0xff] %v3997_v56   ;;  %v4715_v62 = vadd.f32 %v4424_v49, %v6146_v59 }
 0x22a   : > { %4075 = vst [vmem:[%s6169_s17 + $0x10] sm:$0xff] %v3992_v4   ;;  %v3436_v39 = vadd.f32 %v4676_v10, %v3435_v47  ;;  %v3499_v3 = vadd.f32 %v3498_v29, %v3468_v21  ;;  %v4619_v40 = vpop.f32.mrb[88].mxu1 }
 0x22b   : > { %v4425_v34 = vpop.f32.mrb[112].mxu0  ;;  %v4692_v6 = vadd.f32 %v6160_v33, %v4619_v40  ;;  %v3144_v43 = vpop.f32.mrb[89].mxu1 }
 0x22c   : > { %v4426_v15 = vpop.f32.mrb[113].mxu0  ;;  %v3500_v20 = vadd.f32 %v3499_v3, %v3469_v50  ;;  %v4696_v44 = vadd.f32 %v6155_v18, %v3144_v43  ;;  %v3437_v31 = vadd.f32 %v4684_v58, %v3436_v39  ;;  %v4620_v37 = vpop.f32.mrb[90].mxu1 }
 0x22d   : > { %v4427_v5 = vadd.f32 %v4426_v15, %v4425_v34  ;;  %v4428_v8 = vpop.f32.mrb[114].mxu0  ;;  %v4700_v59 = vadd.f32 %v6162_v14, %v4620_v37  ;;  %v3147_v38 = vpop.f32.mrb[91].mxu1  ;;  %v3473_v14 = vmul.f32 %v4692_v6, %v4692_v6 }
 0x22e   : > { %v4429_v16 = vpop.f32.mrb[115].mxu0  ;;  %v3438_v32 = vadd.f32 %v4696_v44, %v3437_v31  ;;  %v3471_v19 = vmul.f32 %v4696_v44, %v4696_v44  ;;  %v3501_v10 = vadd.f32 %v3500_v20, %v3470_v46  ;;  %v4704_v33 = vadd.f32 %v6157_v0, %v3147_v38 }
 0x22f   : > { %v4430_v55 = vadd.f32 %v4429_v16, %v4428_v8  ;;  %v4007_v30 = vpack.c.bf16 %v4700_v59, %v4692_v6  ;;  %v4725_v42 = vadd.f32 %v6073_v35, %v4427_v5  ;;  %v3474_v12 = vmul.f32 %v4700_v59, %v4700_v59 }
 0x230   : > { %v3502_v18 = vadd.f32 %v3501_v10, %v3471_v19  ;;  %v4002_v9 = vpack.c.bf16 %v4704_v33, %v4696_v44  ;;  %v3439_v27 = vadd.f32 %v4704_v33, %v3438_v32  ;;  %v3472_v52 = vmul.f32 %v4704_v33, %v4704_v33 }
 0x231   : > { %4078 = vst [vmem:[%s6169_s17 + $0x28] sm:$0xff] %v4007_v30   ;;  %v4731_v26 = vadd.f32 %v6075_v48, %v4430_v55 }
 0x232   : > { %4077 = vst [vmem:[%s6169_s17 + $0x20] sm:$0xff] %v4002_v9   ;;  %v3440_v25 = vadd.f32 %v4692_v6, %v3439_v27  ;;  %v3503_v17 = vadd.f32 %v3502_v18, %v3472_v52  ;;  %v4623_v58 = vpop.f32.mrb[92].mxu1 }
 0x233   : > { %v4431_v2 = vpop.f32.mrb[116].mxu0  ;;  %v4708_v11 = vadd.f32 %v4707_v63, %v4623_v58  ;;  %v3160_v45 = vpop.f32.mrb[93].mxu1 }
 0x234   : > { %v4432_v0 = vpop.f32.mrb[117].mxu0  ;;  %v3504_v54 = vadd.f32 %v3503_v17, %v3473_v14  ;;  %v4712_v35 = vadd.f32 %v6172_v57, %v3160_v45  ;;  %v3441_v41 = vadd.f32 %v4700_v59, %v3440_v25  ;;  %v4624_v49 = vpop.f32.mrb[94].mxu1 }
 0x235   : > { %v4433_v56 = vadd.f32 %v4432_v0, %v4431_v2  ;;  %v4434_v29 = vpop.f32.mrb[118].mxu0  ;;  %v4716_v4 = vadd.f32 %v4715_v62, %v4624_v49  ;;  %v3163_v48 = vpop.f32.mrb[95].mxu1  ;;  %v3477_v62 = vmul.f32 %v4708_v11, %v4708_v11 }
 0x236   : > { %v4435_v47 = vpop.f32.mrb[119].mxu0  ;;  %v3442_v21 = vadd.f32 %v4712_v35, %v3441_v41  ;;  %v3475_v50 = vmul.f32 %v4712_v35, %v4712_v35  ;;  %v3505_v39 = vadd.f32 %v3504_v54, %v3474_v12  ;;  %v4720_v63 = vadd.f32 %v6176_v23, %v3163_v48 }
 0x237   : > { %v4436_v3 = vadd.f32 %v4435_v47, %v4434_v29  ;;  %v4017_v40 = vpack.c.bf16 %v4716_v4, %v4708_v11  ;;  %v4722_v34 = vadd.f32 %v6077_v53, %v4433_v56  ;;  %v3478_v59 = vmul.f32 %v4716_v4, %v4716_v4 }
 0x238   : > { %v3506_v6 = vadd.f32 %v3505_v39, %v3475_v50  ;;  %v4012_v57 = vpack.c.bf16 %v4720_v63, %v4712_v35  ;;  %v3443_v43 = vadd.f32 %v4720_v63, %v3442_v21  ;;  %v3476_v15 = vmul.f32 %v4720_v63, %v4720_v63 }
 0x239   : > { %4080 = vst [vmem:[%s6169_s17 + $0x38] sm:$0xff] %v4017_v40   ;;  %v4728_v46 = vadd.f32 %v6079_v51, %v4436_v3 }
 0x23a   : > { %4079 = vst [vmem:[%s6169_s17 + $0x30] sm:$0xff] %v4012_v57   ;;  %v3444_v20 = vadd.f32 %v4708_v11, %v3443_v43  ;;  %v3507_v44 = vadd.f32 %v3506_v6, %v3476_v15  ;;  %v4627_v31 = vpop.f32.mrb[0].mxu1  ;;  %v6269_v11 = vld [vmem:[#allocation3_spill] sm:$0xff]  ;;  %v6270_v57 = vld [vmem:[#allocation4_spill] sm:$0xff] }
 0x23b   : > { %v4437_v37 = vpop.f32.mrb[120].mxu0  ;;  %v4723_v5 = vadd.f32 %v4722_v34, %v4627_v31  ;;  %v3176_v8 = vpop.f32.mrb[1].mxu1  ;;  %v6271_v31 = vld [vmem:[#allocation5_spill] sm:$0xff] }
 0x23c   : > { %v4438_v23 = vpop.f32.mrb[121].mxu0  ;;  %v3508_v38 = vadd.f32 %v3507_v44, %v3477_v62  ;;  %v4726_v16 = vadd.f32 %v4725_v42, %v3176_v8  ;;  %v3445_v53 = vadd.f32 %v4716_v4, %v3444_v20  ;;  %v4628_v32 = vpop.f32.mrb[2].mxu1 }
 0x23d   : > { %v4439_v19 = vadd.f32 %v4438_v23, %v4437_v37  ;;  %v4440_v10 = vpop.f32.mrb[122].mxu0  ;;  %v4729_v33 = vadd.f32 %v4728_v46, %v4628_v32  ;;  %v3179_v55 = vpop.f32.mrb[3].mxu1  ;;  %v3481_v0 = vmul.f32 %v4723_v5, %v4723_v5 }
 0x23e   : > { %v4441_v51 = vpop.f32.mrb[123].mxu0  ;;  %v3446_v30 = vadd.f32 %v4726_v16, %v3445_v53  ;;  %v3479_v18 = vmul.f32 %v4726_v16, %v4726_v16  ;;  %v3509_v9 = vadd.f32 %v3508_v38, %v3478_v59  ;;  %v4732_v27 = vadd.f32 %v4731_v26, %v3179_v55 }
 0x23f   : > { %v4442_v52 = vadd.f32 %v4441_v51, %v4440_v10  ;;  %v4027_v14 = vpack.c.bf16 %v4729_v33, %v4723_v5  ;;  %v4737_v25 = vadd.f32 %v6081_v13, %v4439_v19  ;;  %v3482_v26 = vmul.f32 %v4729_v33, %v4729_v33 }
 0x240   : > { %v3510_v17 = vadd.f32 %v3509_v9, %v3479_v18  ;;  %v4022_v58 = vpack.c.bf16 %v4732_v27, %v4726_v16  ;;  %v3447_v42 = vadd.f32 %v4732_v27, %v3446_v30  ;;  %v3480_v2 = vmul.f32 %v4732_v27, %v4732_v27 }
 0x241   : > { %4082 = vst [vmem:[%s6169_s17 + $0x48] sm:$0xff] %v4027_v14   ;;  %v4743_v45 = vadd.f32 %v6269_v11, %v4442_v52 }
 0x242   : > { %4081 = vst [vmem:[%s6169_s17 + $0x40] sm:$0xff] %v4022_v58   ;;  %v3448_v12 = vadd.f32 %v4723_v5, %v3447_v42  ;;  %v3511_v54 = vadd.f32 %v3510_v17, %v3480_v2  ;;  %v4631_v35 = vpop.f32.mrb[4].mxu1 }
 0x243   : > { %v4443_v41 = vpop.f32.mrb[124].mxu0  ;;  %v3192_v49 = vpop.f32.mrb[5].mxu1 }
 0x244   : > { %v4444_v56 = vpop.f32.mrb[125].mxu0  ;;  %v3512_v29 = vadd.f32 %v3511_v54, %v3481_v0  ;;  %v4738_v4 = vadd.f32 %v4737_v25, %v3192_v49  ;;  %v3449_v48 = vadd.f32 %v4729_v33, %v3448_v12  ;;  %v4632_v13 = vpop.f32.mrb[6].mxu1 }
 0x245   : > { %v4445_v47 = vadd.f32 %v4444_v56, %v4443_v41  ;;  %v4446_v21 = vpop.f32.mrb[126].mxu0  ;;  %v3195_v50 = vpop.f32.mrb[7].mxu1 }
 0x246   : > { %v4447_v39 = vpop.f32.mrb[127].mxu0  ;;  %v3450_v63 = vadd.f32 %v4738_v4, %v3449_v48  ;;  %v3483_v3 = vmul.f32 %v4738_v4, %v4738_v4  ;;  %v3513_v40 = vadd.f32 %v3512_v29, %v3482_v26  ;;  %v4744_v34 = vadd.f32 %v4743_v45, %v3195_v50 }
 0x247   : > { %v4448_v6 = vadd.f32 %v4447_v39, %v4446_v21  ;;  %v4734_v43 = vadd.f32 %v6270_v57, %v4445_v47 }
 0x248   : > { %v3514_v15 = vadd.f32 %v3513_v40, %v3483_v3  ;;  %v4032_v46 = vpack.c.bf16 %v4744_v34, %v4738_v4  ;;  %v3451_v62 = vadd.f32 %v4744_v34, %v3450_v63  ;;  %v3484_v20 = vmul.f32 %v4744_v34, %v4744_v34 }
 0x249   : > { %v4735_v44 = vadd.f32 %v4734_v43, %v4631_v35  ;;  %v4740_v37 = vadd.f32 %v6271_v31, %v4448_v6 }
 0x24a   : > { %4083 = vst [vmem:[%s6169_s17 + $0x50] sm:$0xff] %v4032_v46   ;;  %v3515_v5 = vadd.f32 %v3514_v15, %v3484_v20  ;;  %v4635_v8 = vpop.f32.mrb[8].mxu1 }
 0x24b   : > { %v4449_v23 = vpop.f32.mrb[128].mxu0  ;;  %v3485_v59 = vmul.f32 %v4735_v44, %v4735_v44  ;;  %v4741_v38 = vadd.f32 %v4740_v37, %v4632_v13  ;;  %v3452_v16 = vadd.f32 %v4735_v44, %v3451_v62  ;;  %v3208_v53 = vpop.f32.mrb[9].mxu1 }
 0x24c   : > { %v4450_v32 = vpop.f32.mrb[129].mxu0  ;;  %v4636_v19 = vpop.f32.mrb[10].mxu1 }
 0x24d   : > { %v4451_v10 = vadd.f32 %v4450_v32, %v4449_v23  ;;  %v4452_v33 = vpop.f32.mrb[130].mxu0  ;;  %v4037_v55 = vpack.c.bf16 %v4741_v38, %v4735_v44  ;;  %v3486_v51 = vmul.f32 %v4741_v38, %v4741_v38  ;;  %v3516_v30 = vadd.f32 %v3515_v5, %v3485_v59  ;;  %v3211_v18 = vpop.f32.mrb[11].mxu1 }
 0x24e   : > { %v4453_v9 = vpop.f32.mrb[131].mxu0  ;;  %v3453_v27 = vadd.f32 %v4741_v38, %v3452_v16 }
 0x24f   : > { %v4454_v52 = vadd.f32 %v4453_v9, %v4452_v33  ;;  %4084 = vst [vmem:[%s6169_s17 + $0x58] sm:$0xff] %v4037_v55   ;;  %v4749_v14 = vadd.f32 %v6089_v22, %v4451_v10  ;;  %v3517_v25 = vadd.f32 %v3516_v30, %v3486_v51 }
 0x251   : > { %v4750_v17 = vadd.f32 %v4749_v14, %v3208_v53  ;;  %v4755_v58 = vadd.f32 %v6091_v61, %v4454_v52 }
 0x252   : > { %v4639_v42 = vpop.f32.mrb[12].mxu1 }
 0x253   : > { %v4455_v2 = vpop.f32.mrb[132].mxu0  ;;  %v3454_v11 = vadd.f32 %v4750_v17, %v3453_v27  ;;  %v3487_v45 = vmul.f32 %v4750_v17, %v4750_v17  ;;  %v4756_v0 = vadd.f32 %v4755_v58, %v3211_v18  ;;  %v3224_v12 = vpop.f32.mrb[13].mxu1 }
 0x254   : > { %v4456_v54 = vpop.f32.mrb[133].mxu0  ;;  %v4640_v35 = vpop.f32.mrb[14].mxu1 }
 0x255   : > { %v4457_v41 = vadd.f32 %v4456_v54, %v4455_v2  ;;  %v4458_v49 = vpop.f32.mrb[134].mxu0  ;;  %v3518_v56 = vadd.f32 %v3517_v25, %v3487_v45  ;;  %v4042_v26 = vpack.c.bf16 %v4756_v0, %v4750_v17  ;;  %v3455_v29 = vadd.f32 %v4756_v0, %v3454_v11  ;;  %v3227_v4 = vpop.f32.mrb[15].mxu1 }
 0x256   : > { %v4459_v22 = vpop.f32.mrb[135].mxu0  ;;  %v3488_v48 = vmul.f32 %v4756_v0, %v4756_v0 }
 0x257   : > { %v4460_v13 = vadd.f32 %v4459_v22, %v4458_v49  ;;  %v4746_v61 = vadd.f32 %v6093_v28, %v4457_v41  ;;  %4085 = vst [vmem:[%s6169_s17 + $0x60] sm:$0xff] %v4042_v26  }
 0x258   : > { %v3519_v47 = vadd.f32 %v3518_v56, %v3488_v48 }
 0x259   : > { %v4747_v21 = vadd.f32 %v4746_v61, %v4635_v8  ;;  %v4752_v50 = vadd.f32 %v6095_v7, %v4460_v13 }
 0x25b   : > { %v3489_v39 = vmul.f32 %v4747_v21, %v4747_v21  ;;  %v4753_v63 = vadd.f32 %v4752_v50, %v4636_v19  ;;  %v3456_v3 = vadd.f32 %v4747_v21, %v3455_v29  ;;  %v4461_v40 = vpop.f32.mrb[136].mxu0 }
 0x25c   : > { %v4462_v34 = vpop.f32.mrb[137].mxu0 }
 0x25d   : > { %v4047_v6 = vpack.c.bf16 %v4753_v63, %v4747_v21  ;;  %v3490_v57 = vmul.f32 %v4753_v63, %v4753_v63  ;;  %v3520_v43 = vadd.f32 %v3519_v47, %v3489_v39  ;;  %v4463_v15 = vadd.f32 %v4462_v34, %v4461_v40  ;;  %v4464_v46 = vpop.f32.mrb[138].mxu0 }
 0x25e   : > { %v4465_v62 = vpop.f32.mrb[139].mxu0  ;;  %v3457_v20 = vadd.f32 %v4753_v63, %v3456_v3 }
 0x25f   : > { %4086 = vst [vmem:[%s6169_s17 + $0x68] sm:$0xff] %v4047_v6   ;;  %v4466_v28 = vadd.f32 %v4465_v62, %v4464_v46  ;;  %v4761_v44 = vadd.f32 %v6103_v24, %v4463_v15  ;;  %v3521_v31 = vadd.f32 %v3520_v43, %v3490_v57 }
 0x261   : > { %v4762_v37 = vadd.f32 %v4761_v44, %v3224_v12  ;;  %v4767_v7 = vadd.f32 %v6108_v60, %v4466_v28 }
 0x263   : > { %v3458_v5 = vadd.f32 %v4762_v37, %v3457_v20  ;;  %v3491_v8 = vmul.f32 %v4762_v37, %v4762_v37  ;;  %v4768_v23 = vadd.f32 %v4767_v7, %v3227_v4  ;;  %v4467_v59 = vpop.f32.mrb[140].mxu0 }
 0x264   : > { %v4468_v38 = vpop.f32.mrb[141].mxu0 }
 0x265   : > { %v3522_v16 = vadd.f32 %v3521_v31, %v3491_v8  ;;  %v4052_v53 = vpack.c.bf16 %v4768_v23, %v4762_v37  ;;  %v3459_v32 = vadd.f32 %v4768_v23, %v3458_v5  ;;  %v3492_v19 = vmul.f32 %v4768_v23, %v4768_v23  ;;  %v4470_v10 = vpop.f32.mrb[142].mxu0 }
 0x266   : > { %v4469_v33 = vadd.f32 %v4468_v38, %v4467_v59  ;;  %v4471_v55 = vpop.f32.mrb[143].mxu0 }
 0x267   : > { %4087 = vst [vmem:[%s6169_s17 + $0x70] sm:$0xff] %v4052_v53   ;;  %v3523_v24 = vadd.f32 %v3522_v16, %v3492_v19  ;;  %v4472_v51 = vadd.f32 %v4471_v55, %v4470_v10 }
 0x268   : > { %v4758_v30 = vadd.f32 %v6117_v36, %v4469_v33 }
 0x269   : > { %v4764_v60 = vadd.f32 %v6122_v1, %v4472_v51 }
 0x26a   : > { %v4759_v18 = vadd.f32 %v4758_v30, %v4639_v42 }
 0x26b   : > { %v4765_v9 = vadd.f32 %v4764_v60, %v4640_v35 }
 0x26c   : > { %v3460_v27 = vadd.f32 %v4759_v18, %v3459_v32  ;;  %v3493_v52 = vmul.f32 %v4759_v18, %v4759_v18 }
 0x26d   : > { %v4057_v14 = vpack.c.bf16 %v4765_v9, %v4759_v18  ;;  %v3494_v25 = vmul.f32 %v4765_v9, %v4765_v9 }
 0x26e   : > { %v3524_v17 = vadd.f32 %v3523_v24, %v3493_v52  ;;  %v3461_v58 = vadd.f32 %v4765_v9, %v3460_v27 }
 0x26f   : > { %4088 = vst [vmem:[%s6169_s17 + $0x78] sm:$0xff] %v4057_v14  }
 0x270   : > { %3462 = vst [vmem:[%s268_s20] sm:$0xff] %v3461_v58  ;;  %v3525_v36 = vadd.f32 %v3524_v17, %v3494_v25 }
 0x272   : > { %3526 = vst [vmem:[%s272_s25] sm:$0xff] %v3525_v36 }
 0x273 PF: > { %s17_s21 = sadd.s32 1, %s4978_s21  }
 0x274   : > { %p14_p4 = scmp.ge.s32.totalorder %s17_s21, 4  }
 0x276   :  { %16 = sbr.rel (!%p14_p4) target bundleno = 1 (0x1), region = 92 }

</bundles_post_ra>
